<compile_context>
chip_gen: v7x
topology: tpu7x:2x2x1
jax: 0.10.0
libtpu: 0.0.40
codegen_flags: <defaults>
</compile_context>

<pallas_src>
import jax
import jax.numpy as jnp
from jax import lax
from jax.experimental import pallas as pl
from jax.experimental.pallas import tpu as pltpu

C_IN, C_OUT, K = 3, 3, 3          # nn.Conv2d(3, 3, kernel_size=3, stride=1, padding=0)
PK, PS = 3, 2                     # nn.MaxPool2d(3, 2, ceil_mode=True)


def _pool_out(n):
    # PyTorch MaxPool2d(kernel=3, stride=2, padding=0, ceil_mode=True) output size.
    return (n - PK + PS - 1) // PS + 1


def _make_kernel(H, W, NB):
    Hc, Wc = H - (K - 1), W - (K - 1)                 # conv output (VALID)
    Hp, Wp = _pool_out(Hc), _pool_out(Wc)             # ceil_mode pool output

    def kernel(w_ref, b_ref, x_ref, o_ref):
        f32 = jnp.float32
        hi = lax.Precision.HIGHEST

        # ---- one-hot clamped-window selection matrices (built once per step) ----
        # rsel[d][p, r] = 1 iff r == min(PS*p + d, Hc-1)   (conv rows -> pooled rows)
        rp = lax.broadcasted_iota(jnp.int32, (Hp, Hc), 0)
        rr = lax.broadcasted_iota(jnp.int32, (Hp, Hc), 1)
        rsel = [(rr == jnp.minimum(PS * rp + d, Hc - 1)).astype(f32) for d in range(PK)]
        # csel[e][w, q] = 1 iff w == min(PS*q + e, Wc-1)   (conv cols -> pooled cols)
        cw = lax.broadcasted_iota(jnp.int32, (Wc, Wp), 0)
        cq = lax.broadcasted_iota(jnp.int32, (Wc, Wp), 1)
        csel = [(cw == jnp.minimum(PS * cq + e, Wc - 1)).astype(f32) for e in range(PK)]

        # ---- hoisted scalar parameters (SMEM reads, once per grid step) ----
        wv = [w_ref[i] for i in range(C_OUT * C_IN * K * K)]
        bv = [b_ref[c] for c in range(C_OUT)]

        for n in range(NB):                            # sub-batch handled this step
            x = x_ref[n].astype(f32)                   # (C_IN, H, W)

            # ---------- conv2d 3x3, stride 1, no padding (VPU) ----------
            # Shared shifted slice per (ci, kh, kw); all C_OUT accumulators updated
            # together; bias deferred until after pooling.
            accs = [jnp.zeros((Hc, Wc), f32) for _ in range(C_OUT)]
            for ci in range(C_IN):
                for kh in range(K):
                    for kw in range(K):
                        s = x[ci, kh:kh + Hc, kw:kw + Wc]
                        for co in range(C_OUT):
                            widx = ((co * C_IN + ci) * K + kh) * K + kw
                            accs[co] = accs[co] + s * wv[widx]

            # ---------- maxpool 3x3 s=2 ceil_mode=True + bias + sigmoid ----------
            for co in range(C_OUT):
                y = accs[co]                                       # (Hc, Wc)
                # row-direction pooling: MXU selection + elementwise max
                t = jnp.dot(rsel[0], y, preferred_element_type=f32, precision=hi)
                for d in range(1, PK):
                    t = jnp.maximum(
                        t, jnp.dot(rsel[d], y, preferred_element_type=f32, precision=hi))
                # col-direction pooling
                p = jnp.dot(t, csel[0], preferred_element_type=f32, precision=hi)
                for e in range(1, PK):
                    p = jnp.maximum(
                        p, jnp.dot(t, csel[e], preferred_element_type=f32, precision=hi))
                p = p + bv[co]                                     # bias (exact)
                # sigmoid via EUP exp + reciprocal (no VALU divide)
                o_ref[n, co] = pl.reciprocal(1.0 + jnp.exp(-p),
                                             approx=False).astype(o_ref.dtype)

    return kernel, (Hp, Wp)


def mynet_forward(x, w, b):
    N, C, H, W = x.shape
    assert C == C_IN
    # At most two grid steps over the batch: both v7x TensorCores get work via the
    # "parallel" axis, while v5e/v6e see <= 2 sequential steps with a whole
    # sub-batch per DMA.
    G = 2 if (N >= 2 and N % 2 == 0) else 1
    NB = N // G
    kernel, (Hp, Wp) = _make_kernel(H, W, NB)
    w_flat = w.reshape(-1).astype(jnp.float32)        # OIHW flattened for SMEM
    b = b.astype(jnp.float32)

    return pl.pallas_call(
        kernel,
        out_shape=jax.ShapeDtypeStruct((N, C_OUT, Hp, Wp), jnp.float32),
        grid_spec=pltpu.PrefetchScalarGridSpec(
            num_scalar_prefetch=0,
            grid=(G,),
            in_specs=[
                pl.BlockSpec(memory_space=pltpu.MemorySpace.SMEM),   # conv weight (81,)
                pl.BlockSpec(memory_space=pltpu.MemorySpace.SMEM),   # conv bias (3,)
                pl.BlockSpec((NB, C_IN, H, W), lambda g: (g, 0, 0, 0)),
            ],
            out_specs=pl.BlockSpec((NB, C_OUT, Hp, Wp), lambda g: (g, 0, 0, 0)),
        ),
        compiler_params=pltpu.CompilerParams(dimension_semantics=("parallel",)),
    )(w_flat, b, x)


def mynet_reference(x, w, b):
    """Pure-JAX reference matching PyTorch semantics."""
    y = lax.conv_general_dilated(
        x, w, window_strides=(1, 1), padding="VALID",
        dimension_numbers=("NCHW", "OIHW", "NCHW"),
        precision=lax.Precision.HIGHEST) + b[None, :, None, None]
    Hc, Wc = y.shape[2], y.shape[3]
    Hp, Wp = _pool_out(Hc), _pool_out(Wc)
    ph = (Hp - 1) * PS + PK - Hc
    pw = (Wp - 1) * PS + PK - Wc
    ypad = jnp.pad(y, ((0, 0), (0, 0), (0, ph), (0, pw)), constant_values=-jnp.inf)
    pooled = lax.reduce_window(ypad, -jnp.inf, lax.max,
                               (1, 1, PK, PK), (1, 1, PS, PS), "VALID")
    return jax.nn.sigmoid(pooled)


if __name__ == "__main__":
    key = jax.random.PRNGKey(0)
    kx, kw, kb = jax.random.split(key, 3)

    N, H, W = 2, 16, 16
    x = jax.random.normal(kx, (N, C_IN, H, W), jnp.float32)

    # Deterministic parameter init (PyTorch-style uniform(-1/sqrt(fan_in), +)).
    fan_in = C_IN * K * K
    bound = 1.0 / (fan_in ** 0.5)
    w = jax.random.uniform(kw, (C_OUT, C_IN, K, K), jnp.float32, -bound, bound)
    b = jax.random.uniform(kb, (C_OUT,), jnp.float32, -bound, bound)

    out = jax.block_until_ready(mynet_forward(x, w, b))
    ref = jax.block_until_ready(mynet_reference(x, w, b))

    assert out.shape == (N, C_OUT, 7, 7), out.shape
    err = float(jnp.max(jnp.abs(out - ref)))
    assert jnp.allclose(out, ref, atol=5e-5, rtol=5e-5), err
    print("KERNEL_OK")
</pallas_src>

<mosaic_0001>
module attributes {stable_mosaic.version = 11 : i64} {
  func.func @kernel(%arg0: i32, %arg1: memref<81xf32, #tpu.memory_space<smem>>, %arg2: memref<3xf32, #tpu.memory_space<smem>>, %arg3: memref<1x3x16x16xf32, #tpu.memory_space<vmem>>, %arg4: memref<1x3x7x7xf32, #tpu.memory_space<vmem>>) attributes {dimension_semantics = [#tpu.dimension_semantics<parallel>], iteration_bounds = array<i64: 2>, scalar_prefetch = 0 : i64, scratch_operands = 0 : i64, tpu.core_type = #tpu.core_type<tc>, window_params = [{transform_indices = @transform_0, window_bounds = array<i64: 81>}, {transform_indices = @transform_1, window_bounds = array<i64: 3>}, {transform_indices = @transform_2, window_bounds = array<i64: 1, 3, 16, 16>}, {transform_indices = @transform_3, window_bounds = array<i64: 1, 3, 7, 7>}]} {
    %0 = tpu.iota {dimensions = array<i32: 0>} : vector<7x14xi32>
    %1 = tpu.iota {dimensions = array<i32: 1>} : vector<7x14xi32>
    %c2_i32 = arith.constant 2 : i32
    %2 = vector.broadcast %c2_i32 : i32 to vector<7x14xi32>
    %3 = arith.muli %2, %0 : vector<7x14xi32>
    %c0_i32 = arith.constant 0 : i32
    %4 = vector.broadcast %c0_i32 : i32 to vector<7x14xi32>
    %5 = arith.addi %3, %4 : vector<7x14xi32>
    %c13_i32 = arith.constant 13 : i32
    %6 = vector.broadcast %c13_i32 : i32 to vector<7x14xi32>
    %7 = arith.minsi %5, %6 : vector<7x14xi32>
    %8 = arith.cmpi eq, %1, %7 : vector<7x14xi32>
    %9 = arith.extui %8 : vector<7x14xi1> to vector<7x14xi32>
    %10 = arith.sitofp %9 : vector<7x14xi32> to vector<7x14xf32>
    %c2_i32_0 = arith.constant 2 : i32
    %11 = vector.broadcast %c2_i32_0 : i32 to vector<7x14xi32>
    %12 = arith.muli %11, %0 : vector<7x14xi32>
    %c1_i32 = arith.constant 1 : i32
    %13 = vector.broadcast %c1_i32 : i32 to vector<7x14xi32>
    %14 = arith.addi %12, %13 : vector<7x14xi32>
    %c13_i32_1 = arith.constant 13 : i32
    %15 = vector.broadcast %c13_i32_1 : i32 to vector<7x14xi32>
    %16 = arith.minsi %14, %15 : vector<7x14xi32>
    %17 = arith.cmpi eq, %1, %16 : vector<7x14xi32>
    %18 = arith.extui %17 : vector<7x14xi1> to vector<7x14xi32>
    %19 = arith.sitofp %18 : vector<7x14xi32> to vector<7x14xf32>
    %c2_i32_2 = arith.constant 2 : i32
    %20 = vector.broadcast %c2_i32_2 : i32 to vector<7x14xi32>
    %21 = arith.muli %20, %0 : vector<7x14xi32>
    %c2_i32_3 = arith.constant 2 : i32
    %22 = vector.broadcast %c2_i32_3 : i32 to vector<7x14xi32>
    %23 = arith.addi %21, %22 : vector<7x14xi32>
    %c13_i32_4 = arith.constant 13 : i32
    %24 = vector.broadcast %c13_i32_4 : i32 to vector<7x14xi32>
    %25 = arith.minsi %23, %24 : vector<7x14xi32>
    %26 = arith.cmpi eq, %1, %25 : vector<7x14xi32>
    %27 = arith.extui %26 : vector<7x14xi1> to vector<7x14xi32>
    %28 = arith.sitofp %27 : vector<7x14xi32> to vector<7x14xf32>
    %29 = tpu.iota {dimensions = array<i32: 0>} : vector<14x7xi32>
    %30 = tpu.iota {dimensions = array<i32: 1>} : vector<14x7xi32>
    %c2_i32_5 = arith.constant 2 : i32
    %31 = vector.broadcast %c2_i32_5 : i32 to vector<14x7xi32>
    %32 = arith.muli %31, %30 : vector<14x7xi32>
    %c0_i32_6 = arith.constant 0 : i32
    %33 = vector.broadcast %c0_i32_6 : i32 to vector<14x7xi32>
    %34 = arith.addi %32, %33 : vector<14x7xi32>
    %c13_i32_7 = arith.constant 13 : i32
    %35 = vector.broadcast %c13_i32_7 : i32 to vector<14x7xi32>
    %36 = arith.minsi %34, %35 : vector<14x7xi32>
    %37 = arith.cmpi eq, %29, %36 : vector<14x7xi32>
    %38 = arith.extui %37 : vector<14x7xi1> to vector<14x7xi32>
    %39 = arith.sitofp %38 : vector<14x7xi32> to vector<14x7xf32>
    %c2_i32_8 = arith.constant 2 : i32
    %40 = vector.broadcast %c2_i32_8 : i32 to vector<14x7xi32>
    %41 = arith.muli %40, %30 : vector<14x7xi32>
    %c1_i32_9 = arith.constant 1 : i32
    %42 = vector.broadcast %c1_i32_9 : i32 to vector<14x7xi32>
    %43 = arith.addi %41, %42 : vector<14x7xi32>
    %c13_i32_10 = arith.constant 13 : i32
    %44 = vector.broadcast %c13_i32_10 : i32 to vector<14x7xi32>
    %45 = arith.minsi %43, %44 : vector<14x7xi32>
    %46 = arith.cmpi eq, %29, %45 : vector<14x7xi32>
    %47 = arith.extui %46 : vector<14x7xi1> to vector<14x7xi32>
    %48 = arith.sitofp %47 : vector<14x7xi32> to vector<14x7xf32>
    %c2_i32_11 = arith.constant 2 : i32
    %49 = vector.broadcast %c2_i32_11 : i32 to vector<14x7xi32>
    %50 = arith.muli %49, %30 : vector<14x7xi32>
    %c2_i32_12 = arith.constant 2 : i32
    %51 = vector.broadcast %c2_i32_12 : i32 to vector<14x7xi32>
    %52 = arith.addi %50, %51 : vector<14x7xi32>
    %c13_i32_13 = arith.constant 13 : i32
    %53 = vector.broadcast %c13_i32_13 : i32 to vector<14x7xi32>
    %54 = arith.minsi %52, %53 : vector<14x7xi32>
    %55 = arith.cmpi eq, %29, %54 : vector<14x7xi32>
    %56 = arith.extui %55 : vector<14x7xi1> to vector<14x7xi32>
    %57 = arith.sitofp %56 : vector<14x7xi32> to vector<14x7xf32>
    %c0 = arith.constant 0 : index
    %58 = memref.load %arg1[%c0] : memref<81xf32, #tpu.memory_space<smem>>
    %c1 = arith.constant 1 : index
    %59 = memref.load %arg1[%c1] : memref<81xf32, #tpu.memory_space<smem>>
    %c2 = arith.constant 2 : index
    %60 = memref.load %arg1[%c2] : memref<81xf32, #tpu.memory_space<smem>>
    %c3 = arith.constant 3 : index
    %61 = memref.load %arg1[%c3] : memref<81xf32, #tpu.memory_space<smem>>
    %c4 = arith.constant 4 : index
    %62 = memref.load %arg1[%c4] : memref<81xf32, #tpu.memory_space<smem>>
    %c5 = arith.constant 5 : index
    %63 = memref.load %arg1[%c5] : memref<81xf32, #tpu.memory_space<smem>>
    %c6 = arith.constant 6 : index
    %64 = memref.load %arg1[%c6] : memref<81xf32, #tpu.memory_space<smem>>
    %c7 = arith.constant 7 : index
    %65 = memref.load %arg1[%c7] : memref<81xf32, #tpu.memory_space<smem>>
    %c8 = arith.constant 8 : index
    %66 = memref.load %arg1[%c8] : memref<81xf32, #tpu.memory_space<smem>>
    %c9 = arith.constant 9 : index
    %67 = memref.load %arg1[%c9] : memref<81xf32, #tpu.memory_space<smem>>
    %c10 = arith.constant 10 : index
    %68 = memref.load %arg1[%c10] : memref<81xf32, #tpu.memory_space<smem>>
    %c11 = arith.constant 11 : index
    %69 = memref.load %arg1[%c11] : memref<81xf32, #tpu.memory_space<smem>>
    %c12 = arith.constant 12 : index
    %70 = memref.load %arg1[%c12] : memref<81xf32, #tpu.memory_space<smem>>
    %c13 = arith.constant 13 : index
    %71 = memref.load %arg1[%c13] : memref<81xf32, #tpu.memory_space<smem>>
    %c14 = arith.constant 14 : index
    %72 = memref.load %arg1[%c14] : memref<81xf32, #tpu.memory_space<smem>>
    %c15 = arith.constant 15 : index
    %73 = memref.load %arg1[%c15] : memref<81xf32, #tpu.memory_space<smem>>
    %c16 = arith.constant 16 : index
    %74 = memref.load %arg1[%c16] : memref<81xf32, #tpu.memory_space<smem>>
    %c17 = arith.constant 17 : index
    %75 = memref.load %arg1[%c17] : memref<81xf32, #tpu.memory_space<smem>>
    %c18 = arith.constant 18 : index
    %76 = memref.load %arg1[%c18] : memref<81xf32, #tpu.memory_space<smem>>
    %c19 = arith.constant 19 : index
    %77 = memref.load %arg1[%c19] : memref<81xf32, #tpu.memory_space<smem>>
    %c20 = arith.constant 20 : index
    %78 = memref.load %arg1[%c20] : memref<81xf32, #tpu.memory_space<smem>>
    %c21 = arith.constant 21 : index
    %79 = memref.load %arg1[%c21] : memref<81xf32, #tpu.memory_space<smem>>
    %c22 = arith.constant 22 : index
    %80 = memref.load %arg1[%c22] : memref<81xf32, #tpu.memory_space<smem>>
    %c23 = arith.constant 23 : index
    %81 = memref.load %arg1[%c23] : memref<81xf32, #tpu.memory_space<smem>>
    %c24 = arith.constant 24 : index
    %82 = memref.load %arg1[%c24] : memref<81xf32, #tpu.memory_space<smem>>
    %c25 = arith.constant 25 : index
    %83 = memref.load %arg1[%c25] : memref<81xf32, #tpu.memory_space<smem>>
    %c26 = arith.constant 26 : index
    %84 = memref.load %arg1[%c26] : memref<81xf32, #tpu.memory_space<smem>>
    %c27 = arith.constant 27 : index
    %85 = memref.load %arg1[%c27] : memref<81xf32, #tpu.memory_space<smem>>
    %c28 = arith.constant 28 : index
    %86 = memref.load %arg1[%c28] : memref<81xf32, #tpu.memory_space<smem>>
    %c29 = arith.constant 29 : index
    %87 = memref.load %arg1[%c29] : memref<81xf32, #tpu.memory_space<smem>>
    %c30 = arith.constant 30 : index
    %88 = memref.load %arg1[%c30] : memref<81xf32, #tpu.memory_space<smem>>
    %c31 = arith.constant 31 : index
    %89 = memref.load %arg1[%c31] : memref<81xf32, #tpu.memory_space<smem>>
    %c32 = arith.constant 32 : index
    %90 = memref.load %arg1[%c32] : memref<81xf32, #tpu.memory_space<smem>>
    %c33 = arith.constant 33 : index
    %91 = memref.load %arg1[%c33] : memref<81xf32, #tpu.memory_space<smem>>
    %c34 = arith.constant 34 : index
    %92 = memref.load %arg1[%c34] : memref<81xf32, #tpu.memory_space<smem>>
    %c35 = arith.constant 35 : index
    %93 = memref.load %arg1[%c35] : memref<81xf32, #tpu.memory_space<smem>>
    %c36 = arith.constant 36 : index
    %94 = memref.load %arg1[%c36] : memref<81xf32, #tpu.memory_space<smem>>
    %c37 = arith.constant 37 : index
    %95 = memref.load %arg1[%c37] : memref<81xf32, #tpu.memory_space<smem>>
    %c38 = arith.constant 38 : index
    %96 = memref.load %arg1[%c38] : memref<81xf32, #tpu.memory_space<smem>>
    %c39 = arith.constant 39 : index
    %97 = memref.load %arg1[%c39] : memref<81xf32, #tpu.memory_space<smem>>
    %c40 = arith.constant 40 : index
    %98 = memref.load %arg1[%c40] : memref<81xf32, #tpu.memory_space<smem>>
    %c41 = arith.constant 41 : index
    %99 = memref.load %arg1[%c41] : memref<81xf32, #tpu.memory_space<smem>>
    %c42 = arith.constant 42 : index
    %100 = memref.load %arg1[%c42] : memref<81xf32, #tpu.memory_space<smem>>
    %c43 = arith.constant 43 : index
    %101 = memref.load %arg1[%c43] : memref<81xf32, #tpu.memory_space<smem>>
    %c44 = arith.constant 44 : index
    %102 = memref.load %arg1[%c44] : memref<81xf32, #tpu.memory_space<smem>>
    %c45 = arith.constant 45 : index
    %103 = memref.load %arg1[%c45] : memref<81xf32, #tpu.memory_space<smem>>
    %c46 = arith.constant 46 : index
    %104 = memref.load %arg1[%c46] : memref<81xf32, #tpu.memory_space<smem>>
    %c47 = arith.constant 47 : index
    %105 = memref.load %arg1[%c47] : memref<81xf32, #tpu.memory_space<smem>>
    %c48 = arith.constant 48 : index
    %106 = memref.load %arg1[%c48] : memref<81xf32, #tpu.memory_space<smem>>
    %c49 = arith.constant 49 : index
    %107 = memref.load %arg1[%c49] : memref<81xf32, #tpu.memory_space<smem>>
    %c50 = arith.constant 50 : index
    %108 = memref.load %arg1[%c50] : memref<81xf32, #tpu.memory_space<smem>>
    %c51 = arith.constant 51 : index
    %109 = memref.load %arg1[%c51] : memref<81xf32, #tpu.memory_space<smem>>
    %c52 = arith.constant 52 : index
    %110 = memref.load %arg1[%c52] : memref<81xf32, #tpu.memory_space<smem>>
    %c53 = arith.constant 53 : index
    %111 = memref.load %arg1[%c53] : memref<81xf32, #tpu.memory_space<smem>>
    %c54 = arith.constant 54 : index
    %112 = memref.load %arg1[%c54] : memref<81xf32, #tpu.memory_space<smem>>
    %c55 = arith.constant 55 : index
    %113 = memref.load %arg1[%c55] : memref<81xf32, #tpu.memory_space<smem>>
    %c56 = arith.constant 56 : index
    %114 = memref.load %arg1[%c56] : memref<81xf32, #tpu.memory_space<smem>>
    %c57 = arith.constant 57 : index
    %115 = memref.load %arg1[%c57] : memref<81xf32, #tpu.memory_space<smem>>
    %c58 = arith.constant 58 : index
    %116 = memref.load %arg1[%c58] : memref<81xf32, #tpu.memory_space<smem>>
    %c59 = arith.constant 59 : index
    %117 = memref.load %arg1[%c59] : memref<81xf32, #tpu.memory_space<smem>>
    %c60 = arith.constant 60 : index
    %118 = memref.load %arg1[%c60] : memref<81xf32, #tpu.memory_space<smem>>
    %c61 = arith.constant 61 : index
    %119 = memref.load %arg1[%c61] : memref<81xf32, #tpu.memory_space<smem>>
    %c62 = arith.constant 62 : index
    %120 = memref.load %arg1[%c62] : memref<81xf32, #tpu.memory_space<smem>>
    %c63 = arith.constant 63 : index
    %121 = memref.load %arg1[%c63] : memref<81xf32, #tpu.memory_space<smem>>
    %c64 = arith.constant 64 : index
    %122 = memref.load %arg1[%c64] : memref<81xf32, #tpu.memory_space<smem>>
    %c65 = arith.constant 65 : index
    %123 = memref.load %arg1[%c65] : memref<81xf32, #tpu.memory_space<smem>>
    %c66 = arith.constant 66 : index
    %124 = memref.load %arg1[%c66] : memref<81xf32, #tpu.memory_space<smem>>
    %c67 = arith.constant 67 : index
    %125 = memref.load %arg1[%c67] : memref<81xf32, #tpu.memory_space<smem>>
    %c68 = arith.constant 68 : index
    %126 = memref.load %arg1[%c68] : memref<81xf32, #tpu.memory_space<smem>>
    %c69 = arith.constant 69 : index
    %127 = memref.load %arg1[%c69] : memref<81xf32, #tpu.memory_space<smem>>
    %c70 = arith.constant 70 : index
    %128 = memref.load %arg1[%c70] : memref<81xf32, #tpu.memory_space<smem>>
    %c71 = arith.constant 71 : index
    %129 = memref.load %arg1[%c71] : memref<81xf32, #tpu.memory_space<smem>>
    %c72 = arith.constant 72 : index
    %130 = memref.load %arg1[%c72] : memref<81xf32, #tpu.memory_space<smem>>
    %c73 = arith.constant 73 : index
    %131 = memref.load %arg1[%c73] : memref<81xf32, #tpu.memory_space<smem>>
    %c74 = arith.constant 74 : index
    %132 = memref.load %arg1[%c74] : memref<81xf32, #tpu.memory_space<smem>>
    %c75 = arith.constant 75 : index
    %133 = memref.load %arg1[%c75] : memref<81xf32, #tpu.memory_space<smem>>
    %c76 = arith.constant 76 : index
    %134 = memref.load %arg1[%c76] : memref<81xf32, #tpu.memory_space<smem>>
    %c77 = arith.constant 77 : index
    %135 = memref.load %arg1[%c77] : memref<81xf32, #tpu.memory_space<smem>>
    %c78 = arith.constant 78 : index
    %136 = memref.load %arg1[%c78] : memref<81xf32, #tpu.memory_space<smem>>
    %c79 = arith.constant 79 : index
    %137 = memref.load %arg1[%c79] : memref<81xf32, #tpu.memory_space<smem>>
    %c80 = arith.constant 80 : index
    %138 = memref.load %arg1[%c80] : memref<81xf32, #tpu.memory_space<smem>>
    %c0_14 = arith.constant 0 : index
    %139 = memref.load %arg2[%c0_14] : memref<3xf32, #tpu.memory_space<smem>>
    %c1_15 = arith.constant 1 : index
    %140 = memref.load %arg2[%c1_15] : memref<3xf32, #tpu.memory_space<smem>>
    %c2_16 = arith.constant 2 : index
    %141 = memref.load %arg2[%c2_16] : memref<3xf32, #tpu.memory_space<smem>>
    %c0_17 = arith.constant 0 : index
    %c0_18 = arith.constant 0 : index
    %c0_19 = arith.constant 0 : index
    %c0_20 = arith.constant 0 : index
    %142 = vector.load %arg3[%c0_17, %c0_18, %c0_19, %c0_20] : memref<1x3x16x16xf32, #tpu.memory_space<vmem>>, vector<1x3x16x16xf32>
    %143 = vector.shape_cast %142 : vector<1x3x16x16xf32> to vector<3x16x16xf32>
    %cst = arith.constant 0.000000e+00 : f32
    %144 = vector.broadcast %cst : f32 to vector<14x14xf32>
    %cst_21 = arith.constant 0.000000e+00 : f32
    %145 = vector.broadcast %cst_21 : f32 to vector<14x14xf32>
    %cst_22 = arith.constant 0.000000e+00 : f32
    %146 = vector.broadcast %cst_22 : f32 to vector<14x14xf32>
    %147 = vector.extract_strided_slice %143 {offsets = [0, 0, 0], sizes = [1, 14, 14], strides = [1, 1, 1]} : vector<3x16x16xf32> to vector<1x14x14xf32>
    %148 = vector.shape_cast %147 : vector<1x14x14xf32> to vector<14x14xf32>
    %149 = vector.broadcast %58 : f32 to vector<14x14xf32>
    %150 = arith.mulf %148, %149 : vector<14x14xf32>
    %151 = arith.addf %144, %150 : vector<14x14xf32>
    %152 = vector.broadcast %85 : f32 to vector<14x14xf32>
    %153 = arith.mulf %148, %152 : vector<14x14xf32>
    %154 = arith.addf %145, %153 : vector<14x14xf32>
    %155 = vector.broadcast %112 : f32 to vector<14x14xf32>
    %156 = arith.mulf %148, %155 : vector<14x14xf32>
    %157 = arith.addf %146, %156 : vector<14x14xf32>
    %158 = vector.extract_strided_slice %143 {offsets = [0, 0, 1], sizes = [1, 14, 14], strides = [1, 1, 1]} : vector<3x16x16xf32> to vector<1x14x14xf32>
    %159 = vector.shape_cast %158 : vector<1x14x14xf32> to vector<14x14xf32>
    %160 = vector.broadcast %59 : f32 to vector<14x14xf32>
    %161 = arith.mulf %159, %160 : vector<14x14xf32>
    %162 = arith.addf %151, %161 : vector<14x14xf32>
    %163 = vector.broadcast %86 : f32 to vector<14x14xf32>
    %164 = arith.mulf %159, %163 : vector<14x14xf32>
    %165 = arith.addf %154, %164 : vector<14x14xf32>
    %166 = vector.broadcast %113 : f32 to vector<14x14xf32>
    %167 = arith.mulf %159, %166 : vector<14x14xf32>
    %168 = arith.addf %157, %167 : vector<14x14xf32>
    %169 = vector.extract_strided_slice %143 {offsets = [0, 0, 2], sizes = [1, 14, 14], strides = [1, 1, 1]} : vector<3x16x16xf32> to vector<1x14x14xf32>
    %170 = vector.shape_cast %169 : vector<1x14x14xf32> to vector<14x14xf32>
    %171 = vector.broadcast %60 : f32 to vector<14x14xf32>
    %172 = arith.mulf %170, %171 : vector<14x14xf32>
    %173 = arith.addf %162, %172 : vector<14x14xf32>
    %174 = vector.broadcast %87 : f32 to vector<14x14xf32>
    %175 = arith.mulf %170, %174 : vector<14x14xf32>
    %176 = arith.addf %165, %175 : vector<14x14xf32>
    %177 = vector.broadcast %114 : f32 to vector<14x14xf32>
    %178 = arith.mulf %170, %177 : vector<14x14xf32>
    %179 = arith.addf %168, %178 : vector<14x14xf32>
    %180 = vector.extract_strided_slice %143 {offsets = [0, 1, 0], sizes = [1, 14, 14], strides = [1, 1, 1]} : vector<3x16x16xf32> to vector<1x14x14xf32>
    %181 = vector.shape_cast %180 : vector<1x14x14xf32> to vector<14x14xf32>
    %182 = vector.broadcast %61 : f32 to vector<14x14xf32>
    %183 = arith.mulf %181, %182 : vector<14x14xf32>
    %184 = arith.addf %173, %183 : vector<14x14xf32>
    %185 = vector.broadcast %88 : f32 to vector<14x14xf32>
    %186 = arith.mulf %181, %185 : vector<14x14xf32>
    %187 = arith.addf %176, %186 : vector<14x14xf32>
    %188 = vector.broadcast %115 : f32 to vector<14x14xf32>
    %189 = arith.mulf %181, %188 : vector<14x14xf32>
    %190 = arith.addf %179, %189 : vector<14x14xf32>
    %191 = vector.extract_strided_slice %143 {offsets = [0, 1, 1], sizes = [1, 14, 14], strides = [1, 1, 1]} : vector<3x16x16xf32> to vector<1x14x14xf32>
    %192 = vector.shape_cast %191 : vector<1x14x14xf32> to vector<14x14xf32>
    %193 = vector.broadcast %62 : f32 to vector<14x14xf32>
    %194 = arith.mulf %192, %193 : vector<14x14xf32>
    %195 = arith.addf %184, %194 : vector<14x14xf32>
    %196 = vector.broadcast %89 : f32 to vector<14x14xf32>
    %197 = arith.mulf %192, %196 : vector<14x14xf32>
    %198 = arith.addf %187, %197 : vector<14x14xf32>
    %199 = vector.broadcast %116 : f32 to vector<14x14xf32>
    %200 = arith.mulf %192, %199 : vector<14x14xf32>
    %201 = arith.addf %190, %200 : vector<14x14xf32>
    %202 = vector.extract_strided_slice %143 {offsets = [0, 1, 2], sizes = [1, 14, 14], strides = [1, 1, 1]} : vector<3x16x16xf32> to vector<1x14x14xf32>
    %203 = vector.shape_cast %202 : vector<1x14x14xf32> to vector<14x14xf32>
    %204 = vector.broadcast %63 : f32 to vector<14x14xf32>
    %205 = arith.mulf %203, %204 : vector<14x14xf32>
    %206 = arith.addf %195, %205 : vector<14x14xf32>
    %207 = vector.broadcast %90 : f32 to vector<14x14xf32>
    %208 = arith.mulf %203, %207 : vector<14x14xf32>
    %209 = arith.addf %198, %208 : vector<14x14xf32>
    %210 = vector.broadcast %117 : f32 to vector<14x14xf32>
    %211 = arith.mulf %203, %210 : vector<14x14xf32>
    %212 = arith.addf %201, %211 : vector<14x14xf32>
    %213 = vector.extract_strided_slice %143 {offsets = [0, 2, 0], sizes = [1, 14, 14], strides = [1, 1, 1]} : vector<3x16x16xf32> to vector<1x14x14xf32>
    %214 = vector.shape_cast %213 : vector<1x14x14xf32> to vector<14x14xf32>
    %215 = vector.broadcast %64 : f32 to vector<14x14xf32>
    %216 = arith.mulf %214, %215 : vector<14x14xf32>
    %217 = arith.addf %206, %216 : vector<14x14xf32>
    %218 = vector.broadcast %91 : f32 to vector<14x14xf32>
    %219 = arith.mulf %214, %218 : vector<14x14xf32>
    %220 = arith.addf %209, %219 : vector<14x14xf32>
    %221 = vector.broadcast %118 : f32 to vector<14x14xf32>
    %222 = arith.mulf %214, %221 : vector<14x14xf32>
    %223 = arith.addf %212, %222 : vector<14x14xf32>
    %224 = vector.extract_strided_slice %143 {offsets = [0, 2, 1], sizes = [1, 14, 14], strides = [1, 1, 1]} : vector<3x16x16xf32> to vector<1x14x14xf32>
    %225 = vector.shape_cast %224 : vector<1x14x14xf32> to vector<14x14xf32>
    %226 = vector.broadcast %65 : f32 to vector<14x14xf32>
    %227 = arith.mulf %225, %226 : vector<14x14xf32>
    %228 = arith.addf %217, %227 : vector<14x14xf32>
    %229 = vector.broadcast %92 : f32 to vector<14x14xf32>
    %230 = arith.mulf %225, %229 : vector<14x14xf32>
    %231 = arith.addf %220, %230 : vector<14x14xf32>
    %232 = vector.broadcast %119 : f32 to vector<14x14xf32>
    %233 = arith.mulf %225, %232 : vector<14x14xf32>
    %234 = arith.addf %223, %233 : vector<14x14xf32>
    %235 = vector.extract_strided_slice %143 {offsets = [0, 2, 2], sizes = [1, 14, 14], strides = [1, 1, 1]} : vector<3x16x16xf32> to vector<1x14x14xf32>
    %236 = vector.shape_cast %235 : vector<1x14x14xf32> to vector<14x14xf32>
    %237 = vector.broadcast %66 : f32 to vector<14x14xf32>
    %238 = arith.mulf %236, %237 : vector<14x14xf32>
    %239 = arith.addf %228, %238 : vector<14x14xf32>
    %240 = vector.broadcast %93 : f32 to vector<14x14xf32>
    %241 = arith.mulf %236, %240 : vector<14x14xf32>
    %242 = arith.addf %231, %241 : vector<14x14xf32>
    %243 = vector.broadcast %120 : f32 to vector<14x14xf32>
    %244 = arith.mulf %236, %243 : vector<14x14xf32>
    %245 = arith.addf %234, %244 : vector<14x14xf32>
    %246 = vector.extract_strided_slice %143 {offsets = [1, 0, 0], sizes = [1, 14, 14], strides = [1, 1, 1]} : vector<3x16x16xf32> to vector<1x14x14xf32>
    %247 = vector.shape_cast %246 : vector<1x14x14xf32> to vector<14x14xf32>
    %248 = vector.broadcast %67 : f32 to vector<14x14xf32>
    %249 = arith.mulf %247, %248 : vector<14x14xf32>
    %250 = arith.addf %239, %249 : vector<14x14xf32>
    %251 = vector.broadcast %94 : f32 to vector<14x14xf32>
    %252 = arith.mulf %247, %251 : vector<14x14xf32>
    %253 = arith.addf %242, %252 : vector<14x14xf32>
    %254 = vector.broadcast %121 : f32 to vector<14x14xf32>
    %255 = arith.mulf %247, %254 : vector<14x14xf32>
    %256 = arith.addf %245, %255 : vector<14x14xf32>
    %257 = vector.extract_strided_slice %143 {offsets = [1, 0, 1], sizes = [1, 14, 14], strides = [1, 1, 1]} : vector<3x16x16xf32> to vector<1x14x14xf32>
    %258 = vector.shape_cast %257 : vector<1x14x14xf32> to vector<14x14xf32>
    %259 = vector.broadcast %68 : f32 to vector<14x14xf32>
    %260 = arith.mulf %258, %259 : vector<14x14xf32>
    %261 = arith.addf %250, %260 : vector<14x14xf32>
    %262 = vector.broadcast %95 : f32 to vector<14x14xf32>
    %263 = arith.mulf %258, %262 : vector<14x14xf32>
    %264 = arith.addf %253, %263 : vector<14x14xf32>
    %265 = vector.broadcast %122 : f32 to vector<14x14xf32>
    %266 = arith.mulf %258, %265 : vector<14x14xf32>
    %267 = arith.addf %256, %266 : vector<14x14xf32>
    %268 = vector.extract_strided_slice %143 {offsets = [1, 0, 2], sizes = [1, 14, 14], strides = [1, 1, 1]} : vector<3x16x16xf32> to vector<1x14x14xf32>
    %269 = vector.shape_cast %268 : vector<1x14x14xf32> to vector<14x14xf32>
    %270 = vector.broadcast %69 : f32 to vector<14x14xf32>
    %271 = arith.mulf %269, %270 : vector<14x14xf32>
    %272 = arith.addf %261, %271 : vector<14x14xf32>
    %273 = vector.broadcast %96 : f32 to vector<14x14xf32>
    %274 = arith.mulf %269, %273 : vector<14x14xf32>
    %275 = arith.addf %264, %274 : vector<14x14xf32>
    %276 = vector.broadcast %123 : f32 to vector<14x14xf32>
    %277 = arith.mulf %269, %276 : vector<14x14xf32>
    %278 = arith.addf %267, %277 : vector<14x14xf32>
    %279 = vector.extract_strided_slice %143 {offsets = [1, 1, 0], sizes = [1, 14, 14], strides = [1, 1, 1]} : vector<3x16x16xf32> to vector<1x14x14xf32>
    %280 = vector.shape_cast %279 : vector<1x14x14xf32> to vector<14x14xf32>
    %281 = vector.broadcast %70 : f32 to vector<14x14xf32>
    %282 = arith.mulf %280, %281 : vector<14x14xf32>
    %283 = arith.addf %272, %282 : vector<14x14xf32>
    %284 = vector.broadcast %97 : f32 to vector<14x14xf32>
    %285 = arith.mulf %280, %284 : vector<14x14xf32>
    %286 = arith.addf %275, %285 : vector<14x14xf32>
    %287 = vector.broadcast %124 : f32 to vector<14x14xf32>
    %288 = arith.mulf %280, %287 : vector<14x14xf32>
    %289 = arith.addf %278, %288 : vector<14x14xf32>
    %290 = vector.extract_strided_slice %143 {offsets = [1, 1, 1], sizes = [1, 14, 14], strides = [1, 1, 1]} : vector<3x16x16xf32> to vector<1x14x14xf32>
    %291 = vector.shape_cast %290 : vector<1x14x14xf32> to vector<14x14xf32>
    %292 = vector.broadcast %71 : f32 to vector<14x14xf32>
    %293 = arith.mulf %291, %292 : vector<14x14xf32>
    %294 = arith.addf %283, %293 : vector<14x14xf32>
    %295 = vector.broadcast %98 : f32 to vector<14x14xf32>
    %296 = arith.mulf %291, %295 : vector<14x14xf32>
    %297 = arith.addf %286, %296 : vector<14x14xf32>
    %298 = vector.broadcast %125 : f32 to vector<14x14xf32>
    %299 = arith.mulf %291, %298 : vector<14x14xf32>
    %300 = arith.addf %289, %299 : vector<14x14xf32>
    %301 = vector.extract_strided_slice %143 {offsets = [1, 1, 2], sizes = [1, 14, 14], strides = [1, 1, 1]} : vector<3x16x16xf32> to vector<1x14x14xf32>
    %302 = vector.shape_cast %301 : vector<1x14x14xf32> to vector<14x14xf32>
    %303 = vector.broadcast %72 : f32 to vector<14x14xf32>
    %304 = arith.mulf %302, %303 : vector<14x14xf32>
    %305 = arith.addf %294, %304 : vector<14x14xf32>
    %306 = vector.broadcast %99 : f32 to vector<14x14xf32>
    %307 = arith.mulf %302, %306 : vector<14x14xf32>
    %308 = arith.addf %297, %307 : vector<14x14xf32>
    %309 = vector.broadcast %126 : f32 to vector<14x14xf32>
    %310 = arith.mulf %302, %309 : vector<14x14xf32>
    %311 = arith.addf %300, %310 : vector<14x14xf32>
    %312 = vector.extract_strided_slice %143 {offsets = [1, 2, 0], sizes = [1, 14, 14], strides = [1, 1, 1]} : vector<3x16x16xf32> to vector<1x14x14xf32>
    %313 = vector.shape_cast %312 : vector<1x14x14xf32> to vector<14x14xf32>
    %314 = vector.broadcast %73 : f32 to vector<14x14xf32>
    %315 = arith.mulf %313, %314 : vector<14x14xf32>
    %316 = arith.addf %305, %315 : vector<14x14xf32>
    %317 = vector.broadcast %100 : f32 to vector<14x14xf32>
    %318 = arith.mulf %313, %317 : vector<14x14xf32>
    %319 = arith.addf %308, %318 : vector<14x14xf32>
    %320 = vector.broadcast %127 : f32 to vector<14x14xf32>
    %321 = arith.mulf %313, %320 : vector<14x14xf32>
    %322 = arith.addf %311, %321 : vector<14x14xf32>
    %323 = vector.extract_strided_slice %143 {offsets = [1, 2, 1], sizes = [1, 14, 14], strides = [1, 1, 1]} : vector<3x16x16xf32> to vector<1x14x14xf32>
    %324 = vector.shape_cast %323 : vector<1x14x14xf32> to vector<14x14xf32>
    %325 = vector.broadcast %74 : f32 to vector<14x14xf32>
    %326 = arith.mulf %324, %325 : vector<14x14xf32>
    %327 = arith.addf %316, %326 : vector<14x14xf32>
    %328 = vector.broadcast %101 : f32 to vector<14x14xf32>
    %329 = arith.mulf %324, %328 : vector<14x14xf32>
    %330 = arith.addf %319, %329 : vector<14x14xf32>
    %331 = vector.broadcast %128 : f32 to vector<14x14xf32>
    %332 = arith.mulf %324, %331 : vector<14x14xf32>
    %333 = arith.addf %322, %332 : vector<14x14xf32>
    %334 = vector.extract_strided_slice %143 {offsets = [1, 2, 2], sizes = [1, 14, 14], strides = [1, 1, 1]} : vector<3x16x16xf32> to vector<1x14x14xf32>
    %335 = vector.shape_cast %334 : vector<1x14x14xf32> to vector<14x14xf32>
    %336 = vector.broadcast %75 : f32 to vector<14x14xf32>
    %337 = arith.mulf %335, %336 : vector<14x14xf32>
    %338 = arith.addf %327, %337 : vector<14x14xf32>
    %339 = vector.broadcast %102 : f32 to vector<14x14xf32>
    %340 = arith.mulf %335, %339 : vector<14x14xf32>
    %341 = arith.addf %330, %340 : vector<14x14xf32>
    %342 = vector.broadcast %129 : f32 to vector<14x14xf32>
    %343 = arith.mulf %335, %342 : vector<14x14xf32>
    %344 = arith.addf %333, %343 : vector<14x14xf32>
    %345 = vector.extract_strided_slice %143 {offsets = [2, 0, 0], sizes = [1, 14, 14], strides = [1, 1, 1]} : vector<3x16x16xf32> to vector<1x14x14xf32>
    %346 = vector.shape_cast %345 : vector<1x14x14xf32> to vector<14x14xf32>
    %347 = vector.broadcast %76 : f32 to vector<14x14xf32>
    %348 = arith.mulf %346, %347 : vector<14x14xf32>
    %349 = arith.addf %338, %348 : vector<14x14xf32>
    %350 = vector.broadcast %103 : f32 to vector<14x14xf32>
    %351 = arith.mulf %346, %350 : vector<14x14xf32>
    %352 = arith.addf %341, %351 : vector<14x14xf32>
    %353 = vector.broadcast %130 : f32 to vector<14x14xf32>
    %354 = arith.mulf %346, %353 : vector<14x14xf32>
    %355 = arith.addf %344, %354 : vector<14x14xf32>
    %356 = vector.extract_strided_slice %143 {offsets = [2, 0, 1], sizes = [1, 14, 14], strides = [1, 1, 1]} : vector<3x16x16xf32> to vector<1x14x14xf32>
    %357 = vector.shape_cast %356 : vector<1x14x14xf32> to vector<14x14xf32>
    %358 = vector.broadcast %77 : f32 to vector<14x14xf32>
    %359 = arith.mulf %357, %358 : vector<14x14xf32>
    %360 = arith.addf %349, %359 : vector<14x14xf32>
    %361 = vector.broadcast %104 : f32 to vector<14x14xf32>
    %362 = arith.mulf %357, %361 : vector<14x14xf32>
    %363 = arith.addf %352, %362 : vector<14x14xf32>
    %364 = vector.broadcast %131 : f32 to vector<14x14xf32>
    %365 = arith.mulf %357, %364 : vector<14x14xf32>
    %366 = arith.addf %355, %365 : vector<14x14xf32>
    %367 = vector.extract_strided_slice %143 {offsets = [2, 0, 2], sizes = [1, 14, 14], strides = [1, 1, 1]} : vector<3x16x16xf32> to vector<1x14x14xf32>
    %368 = vector.shape_cast %367 : vector<1x14x14xf32> to vector<14x14xf32>
    %369 = vector.broadcast %78 : f32 to vector<14x14xf32>
    %370 = arith.mulf %368, %369 : vector<14x14xf32>
    %371 = arith.addf %360, %370 : vector<14x14xf32>
    %372 = vector.broadcast %105 : f32 to vector<14x14xf32>
    %373 = arith.mulf %368, %372 : vector<14x14xf32>
    %374 = arith.addf %363, %373 : vector<14x14xf32>
    %375 = vector.broadcast %132 : f32 to vector<14x14xf32>
    %376 = arith.mulf %368, %375 : vector<14x14xf32>
    %377 = arith.addf %366, %376 : vector<14x14xf32>
    %378 = vector.extract_strided_slice %143 {offsets = [2, 1, 0], sizes = [1, 14, 14], strides = [1, 1, 1]} : vector<3x16x16xf32> to vector<1x14x14xf32>
    %379 = vector.shape_cast %378 : vector<1x14x14xf32> to vector<14x14xf32>
    %380 = vector.broadcast %79 : f32 to vector<14x14xf32>
    %381 = arith.mulf %379, %380 : vector<14x14xf32>
    %382 = arith.addf %371, %381 : vector<14x14xf32>
    %383 = vector.broadcast %106 : f32 to vector<14x14xf32>
    %384 = arith.mulf %379, %383 : vector<14x14xf32>
    %385 = arith.addf %374, %384 : vector<14x14xf32>
    %386 = vector.broadcast %133 : f32 to vector<14x14xf32>
    %387 = arith.mulf %379, %386 : vector<14x14xf32>
    %388 = arith.addf %377, %387 : vector<14x14xf32>
    %389 = vector.extract_strided_slice %143 {offsets = [2, 1, 1], sizes = [1, 14, 14], strides = [1, 1, 1]} : vector<3x16x16xf32> to vector<1x14x14xf32>
    %390 = vector.shape_cast %389 : vector<1x14x14xf32> to vector<14x14xf32>
    %391 = vector.broadcast %80 : f32 to vector<14x14xf32>
    %392 = arith.mulf %390, %391 : vector<14x14xf32>
    %393 = arith.addf %382, %392 : vector<14x14xf32>
    %394 = vector.broadcast %107 : f32 to vector<14x14xf32>
    %395 = arith.mulf %390, %394 : vector<14x14xf32>
    %396 = arith.addf %385, %395 : vector<14x14xf32>
    %397 = vector.broadcast %134 : f32 to vector<14x14xf32>
    %398 = arith.mulf %390, %397 : vector<14x14xf32>
    %399 = arith.addf %388, %398 : vector<14x14xf32>
    %400 = vector.extract_strided_slice %143 {offsets = [2, 1, 2], sizes = [1, 14, 14], strides = [1, 1, 1]} : vector<3x16x16xf32> to vector<1x14x14xf32>
    %401 = vector.shape_cast %400 : vector<1x14x14xf32> to vector<14x14xf32>
    %402 = vector.broadcast %81 : f32 to vector<14x14xf32>
    %403 = arith.mulf %401, %402 : vector<14x14xf32>
    %404 = arith.addf %393, %403 : vector<14x14xf32>
    %405 = vector.broadcast %108 : f32 to vector<14x14xf32>
    %406 = arith.mulf %401, %405 : vector<14x14xf32>
    %407 = arith.addf %396, %406 : vector<14x14xf32>
    %408 = vector.broadcast %135 : f32 to vector<14x14xf32>
    %409 = arith.mulf %401, %408 : vector<14x14xf32>
    %410 = arith.addf %399, %409 : vector<14x14xf32>
    %411 = vector.extract_strided_slice %143 {offsets = [2, 2, 0], sizes = [1, 14, 14], strides = [1, 1, 1]} : vector<3x16x16xf32> to vector<1x14x14xf32>
    %412 = vector.shape_cast %411 : vector<1x14x14xf32> to vector<14x14xf32>
    %413 = vector.broadcast %82 : f32 to vector<14x14xf32>
    %414 = arith.mulf %412, %413 : vector<14x14xf32>
    %415 = arith.addf %404, %414 : vector<14x14xf32>
    %416 = vector.broadcast %109 : f32 to vector<14x14xf32>
    %417 = arith.mulf %412, %416 : vector<14x14xf32>
    %418 = arith.addf %407, %417 : vector<14x14xf32>
    %419 = vector.broadcast %136 : f32 to vector<14x14xf32>
    %420 = arith.mulf %412, %419 : vector<14x14xf32>
    %421 = arith.addf %410, %420 : vector<14x14xf32>
    %422 = vector.extract_strided_slice %143 {offsets = [2, 2, 1], sizes = [1, 14, 14], strides = [1, 1, 1]} : vector<3x16x16xf32> to vector<1x14x14xf32>
    %423 = vector.shape_cast %422 : vector<1x14x14xf32> to vector<14x14xf32>
    %424 = vector.broadcast %83 : f32 to vector<14x14xf32>
    %425 = arith.mulf %423, %424 : vector<14x14xf32>
    %426 = arith.addf %415, %425 : vector<14x14xf32>
    %427 = vector.broadcast %110 : f32 to vector<14x14xf32>
    %428 = arith.mulf %423, %427 : vector<14x14xf32>
    %429 = arith.addf %418, %428 : vector<14x14xf32>
    %430 = vector.broadcast %137 : f32 to vector<14x14xf32>
    %431 = arith.mulf %423, %430 : vector<14x14xf32>
    %432 = arith.addf %421, %431 : vector<14x14xf32>
    %433 = vector.extract_strided_slice %143 {offsets = [2, 2, 2], sizes = [1, 14, 14], strides = [1, 1, 1]} : vector<3x16x16xf32> to vector<1x14x14xf32>
    %434 = vector.shape_cast %433 : vector<1x14x14xf32> to vector<14x14xf32>
    %435 = vector.broadcast %84 : f32 to vector<14x14xf32>
    %436 = arith.mulf %434, %435 : vector<14x14xf32>
    %437 = arith.addf %426, %436 : vector<14x14xf32>
    %438 = vector.broadcast %111 : f32 to vector<14x14xf32>
    %439 = arith.mulf %434, %438 : vector<14x14xf32>
    %440 = arith.addf %429, %439 : vector<14x14xf32>
    %441 = vector.broadcast %138 : f32 to vector<14x14xf32>
    %442 = arith.mulf %434, %441 : vector<14x14xf32>
    %443 = arith.addf %432, %442 : vector<14x14xf32>
    %cst_23 = arith.constant dense<0.000000e+00> : vector<7x14xf32>
    %444 = tpu.matmul %10, %437, %cst_23 {dimension_numbers = #tpu.dot_dimension_numbers<[1], [0], [0], [1], [0, 0, 1, 1], [], []>, precision = #tpu.contract_precision<fp32>} : vector<7x14xf32>, vector<14x14xf32>, vector<7x14xf32> -> vector<7x14xf32>
    %cst_24 = arith.constant dense<0.000000e+00> : vector<7x14xf32>
    %445 = tpu.matmul %19, %437, %cst_24 {dimension_numbers = #tpu.dot_dimension_numbers<[1], [0], [0], [1], [0, 0, 1, 1], [], []>, precision = #tpu.contract_precision<fp32>} : vector<7x14xf32>, vector<14x14xf32>, vector<7x14xf32> -> vector<7x14xf32>
    %446 = arith.maximumf %444, %445 : vector<7x14xf32>
    %cst_25 = arith.constant dense<0.000000e+00> : vector<7x14xf32>
    %447 = tpu.matmul %28, %437, %cst_25 {dimension_numbers = #tpu.dot_dimension_numbers<[1], [0], [0], [1], [0, 0, 1, 1], [], []>, precision = #tpu.contract_precision<fp32>} : vector<7x14xf32>, vector<14x14xf32>, vector<7x14xf32> -> vector<7x14xf32>
    %448 = arith.maximumf %446, %447 : vector<7x14xf32>
    %cst_26 = arith.constant dense<0.000000e+00> : vector<7x7xf32>
    %449 = tpu.matmul %448, %39, %cst_26 {dimension_numbers = #tpu.dot_dimension_numbers<[1], [0], [0], [1], [0, 0, 1, 1], [], []>, precision = #tpu.contract_precision<fp32>} : vector<7x14xf32>, vector<14x7xf32>, vector<7x7xf32> -> vector<7x7xf32>
    %cst_27 = arith.constant dense<0.000000e+00> : vector<7x7xf32>
    %450 = tpu.matmul %448, %48, %cst_27 {dimension_numbers = #tpu.dot_dimension_numbers<[1], [0], [0], [1], [0, 0, 1, 1], [], []>, precision = #tpu.contract_precision<fp32>} : vector<7x14xf32>, vector<14x7xf32>, vector<7x7xf32> -> vector<7x7xf32>
    %451 = arith.maximumf %449, %450 : vector<7x7xf32>
    %cst_28 = arith.constant dense<0.000000e+00> : vector<7x7xf32>
    %452 = tpu.matmul %448, %57, %cst_28 {dimension_numbers = #tpu.dot_dimension_numbers<[1], [0], [0], [1], [0, 0, 1, 1], [], []>, precision = #tpu.contract_precision<fp32>} : vector<7x14xf32>, vector<14x7xf32>, vector<7x7xf32> -> vector<7x7xf32>
    %453 = arith.maximumf %451, %452 : vector<7x7xf32>
    %454 = vector.broadcast %139 : f32 to vector<7x7xf32>
    %455 = arith.addf %453, %454 : vector<7x7xf32>
    %cst_29 = arith.constant 0.000000e+00 : f32
    %456 = vector.broadcast %cst_29 : f32 to vector<7x7xf32>
    %457 = arith.subf %456, %455 : vector<7x7xf32>
    %458 = math.exp %457 : vector<7x7xf32>
    %cst_30 = arith.constant 1.000000e+00 : f32
    %459 = vector.broadcast %cst_30 : f32 to vector<7x7xf32>
    %460 = arith.addf %459, %458 : vector<7x7xf32>
    %461 = tpu.reciprocal %460 : vector<7x7xf32> -> vector<7x7xf32>
    %c0_31 = arith.constant 0 : index
    %c0_32 = arith.constant 0 : index
    %c0_33 = arith.constant 0 : index
    %c0_34 = arith.constant 0 : index
    %462 = vector.load %arg4[%c0_31, %c0_32, %c0_33, %c0_34] : memref<1x3x7x7xf32, #tpu.memory_space<vmem>>, vector<1x1x7x7xf32>
    %463 = vector.shape_cast %462 : vector<1x1x7x7xf32> to vector<7x7xf32>
    %464 = vector.shape_cast %461 : vector<7x7xf32> to vector<1x1x7x7xf32>
    tpu.vector_store %arg4[%c0_31, %c0_32, %c0_33, %c0_34], %464 {strides = array<i32>} : memref<1x3x7x7xf32, #tpu.memory_space<vmem>>, vector<1x1x7x7xf32>,
    %cst_35 = arith.constant dense<0.000000e+00> : vector<7x14xf32>
    %465 = tpu.matmul %10, %440, %cst_35 {dimension_numbers = #tpu.dot_dimension_numbers<[1], [0], [0], [1], [0, 0, 1, 1], [], []>, precision = #tpu.contract_precision<fp32>} : vector<7x14xf32>, vector<14x14xf32>, vector<7x14xf32> -> vector<7x14xf32>
    %cst_36 = arith.constant dense<0.000000e+00> : vector<7x14xf32>
    %466 = tpu.matmul %19, %440, %cst_36 {dimension_numbers = #tpu.dot_dimension_numbers<[1], [0], [0], [1], [0, 0, 1, 1], [], []>, precision = #tpu.contract_precision<fp32>} : vector<7x14xf32>, vector<14x14xf32>, vector<7x14xf32> -> vector<7x14xf32>
    %467 = arith.maximumf %465, %466 : vector<7x14xf32>
    %cst_37 = arith.constant dense<0.000000e+00> : vector<7x14xf32>
    %468 = tpu.matmul %28, %440, %cst_37 {dimension_numbers = #tpu.dot_dimension_numbers<[1], [0], [0], [1], [0, 0, 1, 1], [], []>, precision = #tpu.contract_precision<fp32>} : vector<7x14xf32>, vector<14x14xf32>, vector<7x14xf32> -> vector<7x14xf32>
    %469 = arith.maximumf %467, %468 : vector<7x14xf32>
    %cst_38 = arith.constant dense<0.000000e+00> : vector<7x7xf32>
    %470 = tpu.matmul %469, %39, %cst_38 {dimension_numbers = #tpu.dot_dimension_numbers<[1], [0], [0], [1], [0, 0, 1, 1], [], []>, precision = #tpu.contract_precision<fp32>} : vector<7x14xf32>, vector<14x7xf32>, vector<7x7xf32> -> vector<7x7xf32>
    %cst_39 = arith.constant dense<0.000000e+00> : vector<7x7xf32>
    %471 = tpu.matmul %469, %48, %cst_39 {dimension_numbers = #tpu.dot_dimension_numbers<[1], [0], [0], [1], [0, 0, 1, 1], [], []>, precision = #tpu.contract_precision<fp32>} : vector<7x14xf32>, vector<14x7xf32>, vector<7x7xf32> -> vector<7x7xf32>
    %472 = arith.maximumf %470, %471 : vector<7x7xf32>
    %cst_40 = arith.constant dense<0.000000e+00> : vector<7x7xf32>
    %473 = tpu.matmul %469, %57, %cst_40 {dimension_numbers = #tpu.dot_dimension_numbers<[1], [0], [0], [1], [0, 0, 1, 1], [], []>, precision = #tpu.contract_precision<fp32>} : vector<7x14xf32>, vector<14x7xf32>, vector<7x7xf32> -> vector<7x7xf32>
    %474 = arith.maximumf %472, %473 : vector<7x7xf32>
    %475 = vector.broadcast %140 : f32 to vector<7x7xf32>
    %476 = arith.addf %474, %475 : vector<7x7xf32>
    %cst_41 = arith.constant 0.000000e+00 : f32
    %477 = vector.broadcast %cst_41 : f32 to vector<7x7xf32>
    %478 = arith.subf %477, %476 : vector<7x7xf32>
    %479 = math.exp %478 : vector<7x7xf32>
    %cst_42 = arith.constant 1.000000e+00 : f32
    %480 = vector.broadcast %cst_42 : f32 to vector<7x7xf32>
    %481 = arith.addf %480, %479 : vector<7x7xf32>
    %482 = tpu.reciprocal %481 : vector<7x7xf32> -> vector<7x7xf32>
    %c0_43 = arith.constant 0 : index
    %c1_44 = arith.constant 1 : index
    %c0_45 = arith.constant 0 : index
    %c0_46 = arith.constant 0 : index
    %483 = vector.load %arg4[%c0_43, %c1_44, %c0_45, %c0_46] : memref<1x3x7x7xf32, #tpu.memory_space<vmem>>, vector<1x1x7x7xf32>
    %484 = vector.shape_cast %483 : vector<1x1x7x7xf32> to vector<7x7xf32>
    %485 = vector.shape_cast %482 : vector<7x7xf32> to vector<1x1x7x7xf32>
    tpu.vector_store %arg4[%c0_43, %c1_44, %c0_45, %c0_46], %485 {strides = array<i32>} : memref<1x3x7x7xf32, #tpu.memory_space<vmem>>, vector<1x1x7x7xf32>,
    %cst_47 = arith.constant dense<0.000000e+00> : vector<7x14xf32>
    %486 = tpu.matmul %10, %443, %cst_47 {dimension_numbers = #tpu.dot_dimension_numbers<[1], [0], [0], [1], [0, 0, 1, 1], [], []>, precision = #tpu.contract_precision<fp32>} : vector<7x14xf32>, vector<14x14xf32>, vector<7x14xf32> -> vector<7x14xf32>
    %cst_48 = arith.constant dense<0.000000e+00> : vector<7x14xf32>
    %487 = tpu.matmul %19, %443, %cst_48 {dimension_numbers = #tpu.dot_dimension_numbers<[1], [0], [0], [1], [0, 0, 1, 1], [], []>, precision = #tpu.contract_precision<fp32>} : vector<7x14xf32>, vector<14x14xf32>, vector<7x14xf32> -> vector<7x14xf32>
    %488 = arith.maximumf %486, %487 : vector<7x14xf32>
    %cst_49 = arith.constant dense<0.000000e+00> : vector<7x14xf32>
    %489 = tpu.matmul %28, %443, %cst_49 {dimension_numbers = #tpu.dot_dimension_numbers<[1], [0], [0], [1], [0, 0, 1, 1], [], []>, precision = #tpu.contract_precision<fp32>} : vector<7x14xf32>, vector<14x14xf32>, vector<7x14xf32> -> vector<7x14xf32>
    %490 = arith.maximumf %488, %489 : vector<7x14xf32>
    %cst_50 = arith.constant dense<0.000000e+00> : vector<7x7xf32>
    %491 = tpu.matmul %490, %39, %cst_50 {dimension_numbers = #tpu.dot_dimension_numbers<[1], [0], [0], [1], [0, 0, 1, 1], [], []>, precision = #tpu.contract_precision<fp32>} : vector<7x14xf32>, vector<14x7xf32>, vector<7x7xf32> -> vector<7x7xf32>
    %cst_51 = arith.constant dense<0.000000e+00> : vector<7x7xf32>
    %492 = tpu.matmul %490, %48, %cst_51 {dimension_numbers = #tpu.dot_dimension_numbers<[1], [0], [0], [1], [0, 0, 1, 1], [], []>, precision = #tpu.contract_precision<fp32>} : vector<7x14xf32>, vector<14x7xf32>, vector<7x7xf32> -> vector<7x7xf32>
    %493 = arith.maximumf %491, %492 : vector<7x7xf32>
    %cst_52 = arith.constant dense<0.000000e+00> : vector<7x7xf32>
    %494 = tpu.matmul %490, %57, %cst_52 {dimension_numbers = #tpu.dot_dimension_numbers<[1], [0], [0], [1], [0, 0, 1, 1], [], []>, precision = #tpu.contract_precision<fp32>} : vector<7x14xf32>, vector<14x7xf32>, vector<7x7xf32> -> vector<7x7xf32>
    %495 = arith.maximumf %493, %494 : vector<7x7xf32>
    %496 = vector.broadcast %141 : f32 to vector<7x7xf32>
    %497 = arith.addf %495, %496 : vector<7x7xf32>
    %cst_53 = arith.constant 0.000000e+00 : f32
    %498 = vector.broadcast %cst_53 : f32 to vector<7x7xf32>
    %499 = arith.subf %498, %497 : vector<7x7xf32>
    %500 = math.exp %499 : vector<7x7xf32>
    %cst_54 = arith.constant 1.000000e+00 : f32
    %501 = vector.broadcast %cst_54 : f32 to vector<7x7xf32>
    %502 = arith.addf %501, %500 : vector<7x7xf32>
    %503 = tpu.reciprocal %502 : vector<7x7xf32> -> vector<7x7xf32>
    %c0_55 = arith.constant 0 : index
    %c2_56 = arith.constant 2 : index
    %c0_57 = arith.constant 0 : index
    %c0_58 = arith.constant 0 : index
    %504 = vector.load %arg4[%c0_55, %c2_56, %c0_57, %c0_58] : memref<1x3x7x7xf32, #tpu.memory_space<vmem>>, vector<1x1x7x7xf32>
    %505 = vector.shape_cast %504 : vector<1x1x7x7xf32> to vector<7x7xf32>
    %506 = vector.shape_cast %503 : vector<7x7xf32> to vector<1x1x7x7xf32>
    tpu.vector_store %arg4[%c0_55, %c2_56, %c0_57, %c0_58], %506 {strides = array<i32>} : memref<1x3x7x7xf32, #tpu.memory_space<vmem>>, vector<1x1x7x7xf32>,
    return
  }
  func.func @transform_0(%arg0: i32) -> i32 {
    %c0_i32 = arith.constant 0 : i32
    %c0_i32_0 = arith.constant 0 : i32
    return %c0_i32 : i32
  }
  func.func @transform_1(%arg0: i32) -> i32 {
    %c0_i32 = arith.constant 0 : i32
    %c0_i32_0 = arith.constant 0 : i32
    return %c0_i32 : i32
  }
  func.func @transform_2(%arg0: i32) -> (i32, i32, i32, i32) {
    %c0_i32 = arith.constant 0 : i32
    %c0_i32_0 = arith.constant 0 : i32
    %c0_i32_1 = arith.constant 0 : i32
    %c0_i32_2 = arith.constant 0 : i32
    return %arg0, %c0_i32, %c0_i32_0, %c0_i32_1 : i32, i32, i32, i32
  }
  func.func @transform_3(%arg0: i32) -> (i32, i32, i32, i32) {
    %c0_i32 = arith.constant 0 : i32
    %c0_i32_0 = arith.constant 0 : i32
    %c0_i32_1 = arith.constant 0 : i32
    %c0_i32_2 = arith.constant 0 : i32
    return %arg0, %c0_i32, %c0_i32_0, %c0_i32_1 : i32, i32, i32, i32
  }
}

</mosaic_0001>

<bundles_post_ra>
// kernel: tpu_custom_call.1
= control target key start
LH: loop header
LB: loop body
LE: loop exit
PB: predicated region body
PF: predicated region fallthrough
CT: control target
= control target key end

     0   :  { %8 = vsyncpa [#allocation4], 0  ;;  %s13304_s0 = inlined_call_operand.hbm [shape: f32[81], index: 0, kind: input, shape index: {}]   ;;  %s13305_s1 = inlined_call_operand.vmem [shape: f32[3], index: 1, kind: input, shape index: {}]   ;;  %s13306_s2 = inlined_call_operand.hbm [shape: f32[2,3,16,16], index: 2, kind: input, shape index: {}]   ;;  %s13307_s3 = inlined_call_operand.vmem [shape: f32[2,3,7,7], index: 3, kind: output, shape index: {}]  }
   0x1   :  { %9 = vsyncpa [#allocation5], 0 }
   0x2   :  { %10 = vsyncpa [#allocation3], 0 }
   0x3   :  { %12 = vsyncpa [#allocation3 + $0x1], 0  ;;  %s11880_s12 = smov 0   ;;  %s11882_s13 = smov 0  }
   0x4   :  { %s11884_s14 = smov 0   ;;  %s11886_s15 = smov 0  }
   0x5 LB: > { %s11899_s16 = sadd.s32 4294967295, %s11847_s15   ;;  %s11902_s17 = sadd.s32 1, %s11847_s15   ;;  %s11847_s15 = sphi %s11886_s15, %s13328_s15   ;;  %s11843_s14 = sphi %s11884_s14, %s13327_s14   ;;  %s11839_s13 = sphi %s11882_s13, %s13326_s13   ;;  %s11835_s12 = sphi %s11880_s12, %s13325_s12  }
   0x6   : > { %s64_s18 = ssub.s32 %s11847_s15, %s11902_s17  ;;  %s67_s19 = sadd.s32 1, %s11843_s14 }
   0x7   : > { %p65_p0 = scmp.eq.s32.totalorder %s64_s18, 0  ;;  %p74_p1 = scmp.ne.s32.totalorder %s11843_s14, %s11839_s13 }
   0x8   : > { %p75_p2 = scmp.eq.s32.totalorder %s11847_s15, 0  ;;  %p80_p3 = scmp.ne.s32.totalorder %s11839_s13, %s11835_s12 }
   0x9   : > { %s11912_s20 = scalar_select %p65_p0, %s11843_s14, %s67_s19  }
   0xa   : > { %p76_p4 = por %p75_p2, %p74_p1  ;;  %p13308_p5 = scmp.eq.s32.totalorder %s11899_s16, 0 }
   0xb   : > { %p9859_p6 = scmp.ge.s32.totalorder %s11847_s15, 1  ;;  %p117_p7 = scmp.lt.s32.totalorder %s11847_s15, 3 }
   0xc   : > { %p11919_p8 = por %p13308_p5, %p80_p3  ;;  %p11682_p10 = scmp.lt.s32.totalorder %s11847_s15, 2 }
   0xd   : > { %p11923_p9 = pnand %p9859_p6, %p117_p7  ;;  %s139_s25 = sshll.u32 %s13305_s1, 4  ;;  %s140_s25 = int_to_ptr.vmem [resolvable:$true] %s139_s25 }
   0xe   : > { %s13310_s21 = scalar_select %p11919_p8, 1, 0 }
   0xf   : > { %p11669_p11 = pneg %p11923_p9  ;;  %p11933_p12 = pnand %p11682_p10, %p76_p4 }
  0x10   : > { %s150_s28 = sand.u32 1, %s11843_s14   ;;  %s11747_s4 = scalar_lea.hbm %s13304_s0, 16 }
  0x11   : > { %p11939_p13 = pnand %p11669_p11, %p13308_p5  ;;  %p11748_p0 = scmp.ne.s32.totalorder %s13304_s0, %s11747_s4 }
  0x12   : > { %p11754_p4 = scmp.lt.u32.totalorder %s11747_s4, %s13304_s0 }
  0x13   : > { %p11749_p1 = pneg %p11939_p13 }
  0x15   : > { %p11750_p2 = pnand %p11749_p1, %p11748_p0 }
  0x17   : > { %p11751_p3 = pneg %p11750_p2 }
  0x19   : > { %p11756_p6 = pnand %p11754_p4, %p11751_p3 }
  0x1b   : > { %11759 = shalt.err (!%p11756_p6)
}
  0x1c   : > { %s11849_s9 = smov [#allocation2]   ;;  %s11760_s12 = scalar_lea.vmem %s140_s25, 16 }
  0x1d   : > { %11672 = dma.hbm_to_smem (!%p11939_p13), %s13304_s0, 16, %s11849_s9, [#allocation4]  }
  0x1e   : > { %p11761_p7 = scmp.ne.s32.totalorder %s140_s25, %s11760_s12  ;;  %p11768_p5 = scmp.lt.s32.totalorder %s140_s25, %s140_s25 }
  0x1f   : > { %p11769_p0 = scmp.lt.s32.totalorder %s11760_s12, %s11760_s12 }
  0x20   : > { %p11763_p10 = pnand %p11761_p7, %p11749_p1 }
  0x21   : > { %p11770_p2 = por %p11769_p0, %p11768_p5 }
  0x22   : > { %p11764_p11 = pneg %p11763_p10 }
  0x24   : > { %p11771_p8 = pnand %p11770_p2, %p11764_p11 }
  0x26   : > { %11774 = shalt.err (!%p11771_p8)
}
  0x27   : > { %s11850_s18 = smov [#allocation6]   ;;  %s11655_s19 = smul.u32 48, %s150_s28 }
  0x28   : > { %11675 = dma.vmem_to_smem (!%p11939_p13), %s140_s25, 16, %s11850_s18, [#allocation5]  }
  0x29   : > { %s11656_s23 = smul.u32 768, %s11847_s15  ;;  %s154_s4 = scalar_lea.vmem [#allocation7], %s11655_s19 }
  0x2a   : > { %s161_s5 = sshll.u32 %s154_s4, 4  ;;  %s11970_s27 = scalar_lea.sflag [#allocation3], %s150_s28  ;;  %s11968_s5 = int_to_ptr.vmem [resolvable:$true] %s161_s5 }
  0x2b   : > { %s11966_s30 = scalar_lea.hbm %s13306_s2, %s11656_s23  ;;  %p11777_p8 = pneg %p11933_p12 }
  0x2c   : > { %s11775_s6 = scalar_lea.hbm %s11966_s30, 768  ;;  %s11780_s7 = scalar_lea.hbm %s13306_s2, 1536 }
  0x2d   : > { %p11776_p5 = scmp.ne.s32.totalorder %s11966_s30, %s11775_s6  ;;  %p11781_p3 = scmp.lt.u32.totalorder %s11966_s30, %s13306_s2 }
  0x2e   : > { %p11782_p4 = scmp.lt.u32.totalorder %s11780_s7, %s11775_s6  ;;  %p11784_p7 = scmp.lt.u32.totalorder %s11775_s6, %s11966_s30 }
  0x2f   : > { %p11778_p13 = pnand %p11777_p8, %p11776_p5 }
  0x30   : > { %p11783_p6 = por %p11782_p4, %p11781_p3 }
  0x31   : > { %p11779_p1 = pneg %p11778_p13 }
  0x32   : > { %p11785_p10 = por %p11784_p7, %p11783_p6 }
  0x34   : > { %p11786_p11 = pnand %p11785_p10, %p11779_p1 }
  0x36   : > { %11789 = shalt.err (!%p11786_p11)
}
  0x37   : > { %s11790_s28 = scalar_lea.vmem %s11968_s5, 768  ;;  %s11851_s10 = smov [#allocation7]  }
  0x38   : > { %p11791_p0 = scmp.ne.s32.totalorder %s11968_s5, %s11790_s28  ;;  %s11795_s11 = sshll.u32 %s11851_s10, 4  ;;  %s11796_s11 = int_to_ptr.vmem [resolvable:$false] %s11795_s11 }
  0x39   : > { %s11797_s12 = scalar_lea.vmem %s11796_s11, 1536  ;;  %p11798_p13 = scmp.lt.s32.totalorder %s11968_s5, %s11796_s11 }
  0x3a   : > { %p11793_p2 = pnand %p11791_p0, %p11777_p8  ;;  %p11799_p3 = scmp.lt.s32.totalorder %s11797_s12, %s11790_s28 }
  0x3c   : > { %p11794_p5 = pneg %p11793_p2  ;;  %p11800_p4 = por %p11799_p3, %p11798_p13 }
  0x3e   : > { %p11801_p6 = pnand %p11800_p4, %p11794_p5 }
  0x40   : > { %11804 = shalt.err (!%p11801_p6)
}
  0x41   : > { %s11852_s18 = smov 128   ;;  %s11853_s19 = smov 8  }
  0x42   : > { %11679 = dma.hbm_to_vmem [thread:$0]  (!%p11933_p12), %s11966_s30, 768, %s11968_s5, %s11970_s27, %s11852_s18, %s11852_s18, %s11853_s19  }
  0x43   : > { %173 = sbr.rel (%p11923_p9) target bundleno = 1636 (0x664), region = 32  ;;  %p13314_p8 = scmp.eq.s32.totalorder (!%p11923_p9), %s11899_s16, 0 }
  0x4a   : > { %11822 = dma.done.wait (%p13314_p8), [#allocation4], 16   ;;  %p13315_p1 = pmov %p13314_p8 }
  0x4c   : > { %11824 = vsyncadd (%p13315_p1), [#allocation4], 4294967280  ;;  %p13316_p7 = pmov %p13315_p1 }
  0x4d   : > { %p13317_p10 = pmov %p13315_p1 }
  0x4e   : > { %11826 = dma.done.wait (%p13316_p7), [#allocation5], 16  }
  0x4f   : > { %11828 = vsyncadd (%p13317_p10), [#allocation5], 4294967280  ;;  %s183_s23 = sand.u32 1, %s11839_s13   ;;  %p13318_p9 = scmp.ne.s32.totalorder %s13310_s21, 0 }
  0x50   : > { %s11657_s26 = smul.u32 48, %s183_s23  ;;  %s184_s24 = scalar_lea.sflag [#allocation3], %s183_s23 }
  0x52   : > { %s12009_s29 = scalar_lea.vmem [#allocation7], %s11657_s26 }
  0x53   : > { %11830 = dma.done.wait (%p13318_p9), %s184_s24, 768  }
  0x54   : > { %11832 = vsyncadd (%p13318_p9), %s184_s24, 4294966528 }
  0x55   : > { %192 = sfence }
  0x56   : > { %s9878_s22 = sld [smem:[#allocation2 + $0x2]]  ;;  %s9877_s30 = sld [smem:[#allocation2 + $0x1]]  ;;  %v12018_v0 = vld [vmem:[%s12009_s29 + $0x8] sm:$0xff]  ;;  %v12023_v1 = vld [vmem:[%s12009_s29] sm:$0xff]  ;;  %vm454_vm0 = vcmask 1046528   ;;  %vm587_vm1 = vcmask 1045504  }
  0x57   : > { %s9880_s4 = sld [smem:[#allocation2 + $0x4]]  ;;  %s9881_s5 = sld [smem:[#allocation2 + $0x5]]  ;;  %v12056_v32 = vld [vmem:[%s12009_s29 + $0x10] sm:$0xff]  ;;  %v12059_v34 = vld [vmem:[%s12009_s29 + $0x18] sm:$0xff]  ;;  %vm11857_vm2 = vmmov 0   ;;  %vm1429_vm7 = vcmask 113664  }
  0x58   : > { %s12015_s27 = sld [smem:[#allocation2 + $0x7]]  ;;  %s12020_s6 = sld [smem:[#allocation2 + $0x8]] }
  0x59   : > { %s11854_s21 = smov 126   ;;  %s11855_s15 = smov 127  }
  0x5a   : > { %s9886_s25 = sld [smem:[#allocation2 + $0xa]]  ;;  %s9889_s7 = sld [smem:[#allocation2 + $0xd]] }
  0x5b   : > { %s9887_s8 = sld [smem:[#allocation2 + $0xb]]  ;;  %s9890_s9 = sld [smem:[#allocation2 + $0xe]] }
  0x5c   : > { %v410_v2 = vstv %s9878_s22  ;;  %v371_v4 = vstv %s9877_s30  ;;  %s12051_s28 = sld [smem:[#allocation2 + $0x10]]  ;;  %s9893_s10 = sld [smem:[#allocation2 + $0x11]] }
  0x5d   : > { %v412_v3 = vmul.f32 %v410_v2, %v12018_v0  ;;  %v373_v5 = vmul.f32 %v371_v4, %v12018_v0  ;;  %v486_v6 = vstv %s9880_s4  ;;  %v534_v7 = vstv %s9881_s5  ;;  %s9895_s11 = sld [smem:[#allocation2 + $0x13]]  ;;  %s9898_s12 = sld [smem:[#allocation2 + $0x16]] }
  0x5e   : > { %v411_v8 = vmul.f32 %v410_v2, %v12023_v1  ;;  %v487_v9 = vmul.f32 %v486_v6, %v12023_v1  ;;  %v488_v10 = vmul.f32 %v486_v6, %v12018_v0  ;;  %v535_v11 = vmul.f32 %v534_v7, %v12023_v1  ;;  %s9896_s18 = sld [smem:[#allocation2 + $0x14]]  ;;  %s9899_s19 = sld [smem:[#allocation2 + $0x17]]  ;;  %v12091_v2 = vld [vmem:[%s12009_s29 + $0x20] sm:$0xff] }
  0x5f   : > { %417 = vrot.lane.b32.xlu1 %v412_v3, %s11854_s21  ;;  %378 = vrot.lane.b32.xlu0 %v373_v5, %s11855_s15  ;;  %v372_v12 = vmul.f32 %v371_v4, %v12023_v1  ;;  %v536_v13 = vmul.f32 %v534_v7, %v12018_v0  ;;  %v619_v16 = vstv %s12015_s27  ;;  %v667_v18 = vstv %s12020_s6  ;;  %s9901_s23 = sld [smem:[#allocation2 + $0x19]]  ;;  %s9902_s26 = sld [smem:[#allocation2 + $0x1a]] }
  0x60   : > { %v491_v14 = vrot.slane %v487_v9, 1  ;;  %v492_v15 = vrot.slane %v488_v10, 1  ;;  %v539_v17 = vrot.slane %v535_v11, 1  ;;  %v620_v21 = vmul.f32 %v619_v16, %v12023_v1  ;;  %v12094_v4 = vld [vmem:[%s12009_s29 + $0x28] sm:$0xff]  ;;  %s266_s24 = sld [smem:[#allocation2]]  ;;  %s9879_s22 = sld [smem:[#allocation2 + $0x3]] }
  0x61   : > { %v540_v20 = vrot.slane %v536_v13, 1  ;;  %v621_v22 = vmul.f32 %v619_v16, %v12018_v0  ;;  %v668_v23 = vmul.f32 %v667_v18, %v12023_v1  ;;  %v669_v27 = vmul.f32 %v667_v18, %v12018_v0  ;;  %s9882_s30 = sld [smem:[#allocation2 + $0x6]]  ;;  %s9885_s4 = sld [smem:[#allocation2 + $0x9]] }
  0x62   : > { %v493_v19 = vsel %vm454_vm0, %v491_v14, %v492_v15  ;;  %v624_v25 = vrot.slane %v620_v21, 2  ;;  %v730_v33 = vstv %s9886_s25  ;;  %v844_v35 = vstv %s9889_s7  ;;  %s9888_s5 = sld [smem:[#allocation2 + $0xc]]  ;;  %s9891_s27 = sld [smem:[#allocation2 + $0xf]] }
  0x63   : > { %415 = vrot.lane.b32.xlu1 %v411_v8, %s11854_s21  ;;  %376 = vrot.lane.b32.xlu0 %v372_v12, %s11855_s15  ;;  %v541_v24 = vsel %vm454_vm0, %v539_v17, %v540_v20  ;;  %v625_v26 = vrot.slane %v621_v22, 2  ;;  %v672_v29 = vrot.slane %v668_v23, 2  ;;  %v673_v30 = vrot.slane %v669_v27, 2  ;;  %s12144_s6 = sld [smem:[#allocation2 + $0x15]]  ;;  %s12149_s25 = sld [smem:[#allocation2 + $0x12]] }
  0x64   : > { %v731_v36 = vmul.f32 %v730_v33, %v12056_v32  ;;  %v732_v37 = vmul.f32 %v730_v33, %v12059_v34  ;;  %v769_v38 = vstv %s9887_s8  ;;  %v845_v39 = vmul.f32 %v844_v35, %v12056_v32  ;;  %s9904_s7 = sld [smem:[#allocation2 + $0x1c]]  ;;  %s9905_s8 = sld [smem:[#allocation2 + $0x1d]] }
  0x65   : > { %v626_v28 = vsel %vm587_vm1, %v624_v25, %v625_v26  ;;  %v674_v31 = vsel %vm587_vm1, %v672_v29, %v673_v30  ;;  %v846_v40 = vmul.f32 %v844_v35, %v12059_v34  ;;  %v892_v41 = vstv %s9890_s9  ;;  %s12157_s9 = sld [smem:[#allocation2 + $0x1f]]  ;;  %p211_p12 = scmp.lt.s32.totalorder %s11899_s16, 1 }
  0x66   : > { %v770_v42 = vmul.f32 %v769_v38, %v12056_v32  ;;  %v771_v43 = vmul.f32 %v769_v38, %v12059_v34  ;;  %v976_v44 = vstv %s12051_s28  ;;  %v849_v45 = vrot.slane %v845_v39, 1  ;;  %s12159_s28 = sld [smem:[#allocation2 + $0x20]] }
  0x67   : > { %494 = vrot.lane.b32.xlu1 %v493_v19, %s11855_s15  ;;  %496 = vrot.lane.b32.xlu0 %v492_v15, %s11855_s15  ;;  %v850_v46 = vrot.slane %v846_v40, 1  ;;  %v893_v47 = vmul.f32 %v892_v41, %v12056_v32  ;;  %v894_v48 = vmul.f32 %v892_v41, %v12059_v34  ;;  %v977_v49 = vmul.f32 %v976_v44, %v12056_v32  ;;  %s13330_s16 = smov (!%p211_p12, %s11899_s16), 1 }
  0x68   : > { %v978_v53 = vmul.f32 %v976_v44, %v12059_v34  ;;  %v1024_v54 = vstv %s9893_s10  ;;  %v1087_v3 = vstv %s9895_s11  ;;  %v1201_v5 = vstv %s9898_s12  ;;  %s12168_s10 = sld [smem:[#allocation2 + $0x22]]  ;;  %s12172_s11 = sld [smem:[#allocation2 + $0x18]] }
  0x69   : > { %v851_v50 = vsel %vm454_vm0, %v849_v45, %v850_v46  ;;  %v897_v51 = vrot.slane %v893_v47, 1  ;;  %v898_v52 = vrot.slane %v894_v48, 1  ;;  %v981_v55 = vrot.slane %v977_v49, 2  ;;  %s12178_s12 = sld [smem:[#allocation2 + $0x23]] }
  0x6a   : > { %v982_v57 = vrot.slane %v978_v53, 2  ;;  %v1025_v58 = vmul.f32 %v1024_v54, %v12056_v32  ;;  %v1026_v59 = vmul.f32 %v1024_v54, %v12059_v34  ;;  %v1088_v6 = vmul.f32 %v1087_v3, %v12091_v2 }
  0x6b   : > { %542 = vrot.lane.b32.xlu1 %v541_v24, %s11854_s21  ;;  %544 = vrot.lane.b32.xlu0 %v540_v20, %s11854_s21  ;;  %v899_v56 = vsel %vm454_vm0, %v897_v51, %v898_v52  ;;  %v1089_v7 = vmul.f32 %v1087_v3, %v12094_v4  ;;  %v1126_v8 = vstv %s9896_s18  ;;  %v1202_v9 = vmul.f32 %v1201_v5, %v12091_v2  ;;  %s12217_s18 = sld [smem:[#allocation2 + $0x25]] }
  0x6c   : > { %v983_v60 = vsel %vm587_vm1, %v981_v55, %v982_v57  ;;  %v1029_v61 = vrot.slane %v1025_v58, 2  ;;  %v1030_v62 = vrot.slane %v1026_v59, 2  ;;  %v1203_v10 = vmul.f32 %v1201_v5, %v12094_v4 }
  0x6d   : > { %v1249_v11 = vstv %s9899_s19  ;;  %v1127_v12 = vmul.f32 %v1126_v8, %v12091_v2  ;;  %v1128_v14 = vmul.f32 %v1126_v8, %v12094_v4  ;;  %v1206_v15 = vrot.slane %v1202_v9, 1  ;;  %s12231_s19 = sld [smem:[#allocation2 + $0x28]] }
  0x6e   : > { %v1031_v63 = vsel %vm587_vm1, %v1029_v61, %v1030_v62  ;;  %v1250_v13 = vmul.f32 %v1249_v11, %v12091_v2  ;;  %v1207_v16 = vrot.slane %v1203_v10, 1  ;;  %v1251_v17 = vmul.f32 %v1249_v11, %v12094_v4 }
  0x6f   : > { %627 = vrot.lane.b32.xlu1 %v626_v28, %s11855_s15  ;;  %629 = vrot.lane.b32.xlu0 %v625_v26, %s11855_s15  ;;  %v1333_v18 = vstv %s9901_s23  ;;  %v1381_v20 = vstv %s9902_s26  ;;  %v11856_v35 = vmov 0.0|0.0   ;;  %s12236_s23 = sld [smem:[#allocation2 + $0x26]]  ;;  %s12241_s26 = sld [smem:[#allocation2 + $0x29]] }
  0x70   : > { %v1254_v19 = vrot.slane %v1250_v13, 1  ;;  %v1208_v21 = vsel %vm454_vm0, %v1206_v15, %v1207_v16  ;;  %v1255_v22 = vrot.slane %v1251_v17, 1  ;;  %v1334_v23 = vmul.f32 %v1333_v18, %v12091_v2  ;;  %11124 = vmatprep.subr.bf16.mxu0 %v11856_v35  ;;  %11142 = vmatprep.subr.bf16.mxu1 %v11856_v35 }
  0x71   : > { %v1335_v24 = vmul.f32 %v1333_v18, %v12094_v4  ;;  %v1382_v25 = vmul.f32 %v1381_v20, %v12091_v2  ;;  %v1383_v29 = vmul.f32 %v1381_v20, %v12094_v4  ;;  %v356_v38 = vstv %s266_s24  ;;  %s12256_s24 = sld [smem:[#allocation2 + $0x2b]] }
  0x72   : > { %v1256_v26 = vsel %vm454_vm0, %v1254_v19, %v1255_v22  ;;  %v1338_v27 = vrot.slane %v1334_v23, 2  ;;  %v358_v39 = vmul.f32 %v356_v38, %v12018_v0  ;;  %v449_v40 = vstv %s9879_s22  ;;  %s12276_s22 = sld [smem:[#allocation2 + $0x2c]] }
  0x73   : > { %675 = vrot.lane.b32.xlu1 %v674_v31, %s11854_s21  ;;  %677 = vrot.lane.b32.xlu0 %v673_v30, %s11854_s21  ;;  %v1339_v28 = vrot.slane %v1335_v24, 2  ;;  %v1386_v31 = vrot.slane %v1382_v25, 2  ;;  %v1387_v33 = vrot.slane %v1383_v29, 2  ;;  %v450_v41 = vmul.f32 %v449_v40, %v12023_v1 }
  0x74   : > { %v451_v44 = vmul.f32 %v449_v40, %v12018_v0  ;;  %v582_v47 = vstv %s9882_s30  ;;  %s9922_s30 = sld [smem:[#allocation2 + $0x2e]] }
  0x75   : > { %v1340_v30 = vsel %vm587_vm1, %v1338_v27, %v1339_v28  ;;  %v455_v48 = vrot.slane %v450_v41, 1  ;;  %v584_v53 = vmul.f32 %v582_v47, %v12018_v0 }
  0x76   : > { %v456_v51 = vrot.slane %v451_v44, 1 }
  0x77   : > { %735 = vrot.lane.b32.xlu1 %v731_v36, %s11855_s15  ;;  %737 = vrot.lane.b32.xlu0 %v732_v37, %s11855_s15  ;;  %v1388_v36 = vsel %vm587_vm1, %v1386_v31, %v1387_v33  ;;  %v11858_v37 = vmov 0.0   ;;  %v589_v61 = vrot.slane %v584_v53, 2 }
  0x78   : > { %10372 = vmatprep.mubr.msk.f32.mxu0 %vm11857_vm2, %v11858_v37  ;;  %10414 = vmatprep.mubr.msk.f32.mxu1 %vm11857_vm2, %v11858_v37 }
  0x7b   : > { %774 = vrot.lane.b32.xlu1 %v770_v42, %s11854_s21  ;;  %776 = vrot.lane.b32.xlu0 %v771_v43, %s11854_s21 }
  0x7f   : > { %852 = vrot.lane.b32.xlu1 %v851_v50, %s11855_s15  ;;  %854 = vrot.lane.b32.xlu0 %v850_v46, %s11855_s15  ;;  %v357_v46 = vmul.f32 %v356_v38, %v12023_v1 }
  0x83   : > { %900 = vrot.lane.b32.xlu1 %v899_v56, %s11854_s21  ;;  %902 = vrot.lane.b32.xlu0 %v898_v52, %s11854_s21  ;;  %v583_v52 = vmul.f32 %v582_v47, %v12023_v1  ;;  %v457_v56 = vsel %vm454_vm0, %v455_v48, %v456_v51  ;;  %v216_v47 = vlaneseq }
  0x87   : > { %984 = vrot.lane.b32.xlu1 %v983_v60, %s11855_s15  ;;  %986 = vrot.lane.b32.xlu0 %v982_v57, %s11855_s15  ;;  %v588_v60 = vrot.slane %v583_v52, 2 }
  0x89   : > { %v590_v8 = vsel %vm587_vm1, %v588_v60, %v589_v61 }
  0x8b   : > { %1032 = vrot.lane.b32.xlu1 %v1031_v63, %s11854_s21  ;;  %1034 = vrot.lane.b32.xlu0 %v1030_v62, %s11854_s21 }
  0x8f   : > { %1092 = vrot.lane.b32.xlu1 %v1088_v6, %s11855_s15  ;;  %1094 = vrot.lane.b32.xlu0 %v1089_v7, %s11855_s15 }
  0x93   : > { %1131 = vrot.lane.b32.xlu1 %v1127_v12, %s11854_s21  ;;  %1133 = vrot.lane.b32.xlu0 %v1128_v14, %s11854_s21  ;;  %v715_v14 = vstv %s9885_s4  ;;  %s9923_s4 = sld [smem:[#allocation2 + $0x2f]] }
  0x94   : > { %v716_v18 = vmul.f32 %v715_v14, %v12056_v32 }
  0x97   : > { %1209 = vrot.lane.b32.xlu1 %v1208_v21, %s11855_s15  ;;  %1211 = vrot.lane.b32.xlu0 %v1207_v16, %s11855_s15  ;;  %v808_v16 = vstv %s9888_s5  ;;  %v717_v21 = vmul.f32 %v715_v14, %v12059_v34  ;;  %s9925_s5 = sld [smem:[#allocation2 + $0x31]] }
  0x98   : > { %v810_v23 = vmul.f32 %v808_v16, %v12059_v34 }
  0x9a   : > { %v814_v31 = vrot.slane %v810_v23, 1 }
  0x9b   : > { %1257 = vrot.lane.b32.xlu1 %v1256_v26, %s11854_s21  ;;  %1259 = vrot.lane.b32.xlu0 %v1255_v22, %s11854_s21  ;;  %v809_v22 = vmul.f32 %v808_v16, %v12056_v32  ;;  %v384_v16 = vstv %s9904_s7  ;;  %s9903_s7 = sld [smem:[#allocation2 + $0x1b]] }
  0x9f   : > { %1341 = vrot.lane.b32.xlu1 %v1340_v30, %s11855_s15  ;;  %1343 = vrot.lane.b32.xlu0 %v1339_v28, %s11855_s15  ;;  %v813_v30 = vrot.slane %v809_v22, 1 }
  0xa1   : > { %v815_v41 = vsel %vm454_vm0, %v813_v30, %v814_v31 }
  0xa3   : > { %1389 = vrot.lane.b32.xlu1 %v1388_v36, %s11854_s21  ;;  %1391 = vrot.lane.b32.xlu0 %v1387_v33, %s11854_s21  ;;  %v940_v36 = vstv %s9891_s27  ;;  %s9926_s27 = sld [smem:[#allocation2 + $0x32]] }
  0xd1   : > { %v418_v42 = vpop.permute.xlu1 %417  ;;  %v379_v43 = vpop.permute.xlu0 %378 }
  0xd2   : > { %v383_v45 = vadd.f32 %v379_v43, %v358_v39  ;;  %v942_v43 = vmul.f32 %v940_v36, %v12059_v34 }
  0xd4   : > { %v422_v54 = vadd.f32 %v418_v42, %v383_v45  ;;  %v941_v42 = vmul.f32 %v940_v36, %v12056_v32  ;;  %v946_v52 = vrot.slane %v942_v43, 2 }
  0xd5   : > { %v416_v49 = vpop.permute.xlu1 %415  ;;  %v377_v50 = vpop.permute.xlu0 %376 }
  0xd6   : > { %v382_v55 = vadd.f32 %v377_v50, %v357_v46  ;;  %v461_v63 = vadd.f32 %v456_v51, %v422_v54  ;;  %v945_v51 = vrot.slane %v941_v42, 2  ;;  %v1165_v54 = vstv %s12144_s6  ;;  %s12376_s6 = sld [smem:[#allocation2 + $0x34]] }
  0xd8   : > { %v421_v57 = vadd.f32 %v416_v49, %v382_v55  ;;  %v12153_v55 = vshrl.u32 %v216_v47, 7 }
  0xd9   : > { %v495_v58 = vpop.permute.xlu1 %494  ;;  %v497_v59 = vpop.permute.xlu0 %496 }
  0xda   : > { %v460_v62 = vadd.f32 %v457_v56, %v421_v57  ;;  %v501_v5 = vadd.f32 %v497_v59, %v461_v63  ;;  %v947_v59 = vsel %vm587_vm1, %v945_v51, %v946_v52 }
  0xdc   : > { %v500_v3 = vadd.f32 %v495_v58, %v460_v62  ;;  %v1166_v62 = vmul.f32 %v1165_v54, %v12091_v2 }
  0xdd   : > { %v543_v6 = vpop.permute.xlu1 %542  ;;  %v545_v7 = vpop.permute.xlu0 %544 }
  0xde   : > { %v548_v9 = vadd.f32 %v543_v6, %v500_v3  ;;  %v549_v10 = vadd.f32 %v545_v7, %v501_v5  ;;  %v1072_v3 = vstv %s12149_s25  ;;  %v12163_v5 = vmul.f32 %v1165_v54, %v12094_v4  ;;  %s9929_s25 = sld [smem:[#allocation2 + $0x35]] }
  0xdf   : > { %v12166_v6 = vmul.u32 2, %v12153_v55 }
  0xe0   : > { %v593_v12 = vadd.f32 %v590_v8, %v548_v9  ;;  %v594_v13 = vadd.f32 %v589_v61, %v549_v10  ;;  %v1171_v14 = vrot.slane %v12163_v5, 1 }
  0xe1   : > { %v628_v11 = vpop.permute.xlu1 %627  ;;  %v630_v15 = vpop.permute.xlu0 %629  ;;  %vm221_vm3 = vcmp.lt.s32.totalorder %v12166_v6, 13 }
  0xe2   : > { %v633_v17 = vadd.f32 %v628_v11, %v593_v12  ;;  %v634_v19 = vadd.f32 %v630_v15, %v594_v13  ;;  %v1073_v11 = vmul.f32 %v1072_v3, %v12091_v2  ;;  %v1074_v12 = vmul.f32 %v1072_v3, %v12094_v4 }
  0xe3   : > { %v1170_v13 = vrot.slane %v1166_v62, 1  ;;  %v226_v15 = vadd.s32 1, %v12166_v6 }
  0xe5   : > { %v676_v20 = vpop.permute.xlu1 %675  ;;  %v678_v25 = vpop.permute.xlu0 %677  ;;  %vm227_vm4 = vcmp.lt.s32.totalorder %v226_v15, 13 }
  0xe6   : > { %v681_v24 = vadd.f32 %v676_v20, %v633_v17  ;;  %v682_v26 = vadd.f32 %v678_v25, %v634_v19  ;;  %v423_v17 = vstv %s9905_s8  ;;  %v386_v20 = vmul.f32 %v384_v16, %v12018_v0  ;;  %s9906_s8 = sld [smem:[#allocation2 + $0x1e]] }
  0xe7   : > { %v425_v23 = vmul.f32 %v423_v17, %v12018_v0  ;;  %v502_v25 = vstv %s12157_s9  ;;  %v228_v51 = vsel %vm227_vm4, %v226_v15, 13  ;;  %s9909_s9 = sld [smem:[#allocation2 + $0x21]] }
  0xe8   : > { %v718_v27 = vadd.f32 %v716_v18, %v681_v24  ;;  %v719_v29 = vadd.f32 %v717_v21, %v682_v26  ;;  %v385_v21 = vmul.f32 %v384_v16, %v12023_v1  ;;  %v424_v24 = vmul.f32 %v423_v17, %v12023_v1  ;;  %391 = vrot.lane.b32.xlu0 %v386_v20, %s11855_s15 }
  0xe9   : > { %v736_v28 = vpop.permute.xlu1 %735  ;;  %v738_v33 = vpop.permute.xlu0 %737  ;;  %v550_v26 = vstv %s12159_s28  ;;  %v504_v30 = vmul.f32 %v502_v25, %v12018_v0  ;;  %s9912_s28 = sld [smem:[#allocation2 + $0x24]] }
  0xea   : > { %v741_v38 = vadd.f32 %v736_v28, %v718_v27  ;;  %v742_v39 = vadd.f32 %v738_v33, %v719_v29  ;;  %389 = vrot.lane.b32.xlu1 %v385_v21, %s11855_s15  ;;  %v503_v29 = vmul.f32 %v502_v25, %v12023_v1  ;;  %v551_v33 = vmul.f32 %v550_v26, %v12023_v1 }
  0xeb   : > { %v552_v36 = vmul.f32 %v550_v26, %v12018_v0 }
  0xec   : > { %430 = vrot.lane.b32.xlu0 %v425_v23, %s11854_s21 }
  0xed   : > { %v775_v40 = vpop.permute.xlu1 %774  ;;  %v777_v45 = vpop.permute.xlu0 %776 }
  0xee   : > { %v780_v44 = vadd.f32 %v775_v40, %v741_v38  ;;  %v781_v46 = vadd.f32 %v777_v45, %v742_v39  ;;  %v635_v38 = vstv %s12168_s10  ;;  %v508_v40 = vrot.slane %v504_v30, 1  ;;  %428 = vrot.lane.b32.xlu1 %v424_v24, %s11854_s21  ;;  %s9915_s10 = sld [smem:[#allocation2 + $0x27]] }
  0xf0   : > { %v818_v48 = vadd.f32 %v815_v41, %v780_v44  ;;  %v819_v50 = vadd.f32 %v814_v31, %v781_v46  ;;  %v507_v41 = vrot.slane %v503_v29, 1  ;;  %v12193_v44 = vand.u32 127, %v216_v47  ;;  %512 = vrot.lane.b32.xlu0 %v508_v40, %s11855_s15 }
  0xf1   : > { %v853_v49 = vpop.permute.xlu1 %852  ;;  %v855_v53 = vpop.permute.xlu0 %854  ;;  %v1297_v46 = vstv %s12172_s11  ;;  %v555_v47 = vrot.slane %v551_v33, 1  ;;  %v743_v33 = vstv %s12217_s18  ;;  %s9918_s11 = sld [smem:[#allocation2 + $0x2a]]  ;;  %s9924_s18 = sld [smem:[#allocation2 + $0x30]] }
  0xf2   : > { %v858_v56 = vadd.f32 %v853_v49, %v818_v48  ;;  %v859_v57 = vadd.f32 %v855_v53, %v819_v50  ;;  %v222_v48 = vsel %vm221_vm3, %v12166_v6, 13  ;;  %v636_v49 = vmul.f32 %v635_v38, %v12023_v1 }
  0xf3   : > { %v637_v50 = vmul.f32 %v635_v38, %v12018_v0  ;;  %v556_v53 = vrot.slane %v552_v36, 1  ;;  %vm223_vm5 = vcmp.eq.s32.totalorder %v12193_v44, %v222_v48  ;;  %vm229_vm6 = vcmp.eq.s32.totalorder %v12193_v44, %v228_v51 }
  0xf4   : > { %v782_v48 = vstv %s12236_s23  ;;  %s9931_s23 = sld [smem:[#allocation2 + $0x37]] }
  0xf5   : > { %v901_v58 = vpop.permute.xlu1 %900  ;;  %v903_v61 = vpop.permute.xlu0 %902  ;;  %v641_v3 = vrot.slane %v637_v50, 2  ;;  %560 = vrot.lane.b32.xlu0 %v556_v53, %s11854_s21 }
  0xf6   : > { %v906_v60 = vadd.f32 %v901_v58, %v858_v56  ;;  %v907_v63 = vadd.f32 %v903_v61, %v859_v57  ;;  %v1172_v56 = vsel %vm454_vm0, %v1170_v13, %v1171_v14  ;;  %v683_v57 = vstv %s12178_s12  ;;  %s9921_s12 = sld [smem:[#allocation2 + $0x2d]] }
  0xf7   : > { %v1299_v61 = vmul.f32 %v1297_v46, %v12094_v4  ;;  %v12220_v13 = vsel %vm223_vm5, 1.0, %v11858_v37 }
  0xf8   : > { %v950_v7 = vadd.f32 %v947_v59, %v906_v60  ;;  %v951_v9 = vadd.f32 %v946_v52, %v907_v63  ;;  %v509_v52 = vsel %vm454_vm0, %v507_v41, %v508_v40  ;;  %v1298_v60 = vmul.f32 %v1297_v46, %v12091_v2 }
  0xf9   : > { %v985_v8 = vpop.permute.xlu1 %984  ;;  %v987_v10 = vpop.permute.xlu0 %986  ;;  %510 = vrot.lane.b32.xlu1 %v509_v52, %s11855_s15  ;;  %645 = vrot.lane.b32.xlu0 %v641_v3, %s11855_s15  ;;  %v745_v41 = vmul.f32 %v743_v33, %v12059_v34 }
  0xfa   : > { %v990_v18 = vadd.f32 %v985_v8, %v950_v7  ;;  %v991_v19 = vadd.f32 %v987_v10, %v951_v9  ;;  %v640_v7 = vrot.slane %v636_v49, 2  ;;  %v557_v9 = vsel %vm454_vm0, %v555_v47, %v556_v53 }
  0xfb   : > { %v684_v10 = vmul.f32 %v683_v57, %v12023_v1  ;;  %v1302_v17 = vrot.slane %v1298_v60, 2  ;;  %v908_v47 = vstv %s12241_s26  ;;  %s12613_s26 = sld [smem:[#allocation2 + $0x38]] }
  0xfc   : > { %v642_v5 = vsel %vm587_vm1, %v640_v7, %v641_v3 }
  0xfd   : > { %v1033_v22 = vpop.permute.xlu1 %1032  ;;  %v1035_v28 = vpop.permute.xlu0 %1034  ;;  %558 = vrot.lane.b32.xlu1 %v557_v9, %s11854_s21  ;;  %v688_v20 = vrot.slane %v684_v10, 2  ;;  %v909_v9 = vmul.f32 %v908_v47, %v12056_v32 }
  0xfe   : > { %v1038_v27 = vadd.f32 %v1033_v22, %v990_v18  ;;  %v1039_v31 = vadd.f32 %v1035_v28, %v991_v19  ;;  %v1303_v18 = vrot.slane %v1299_v61, 2  ;;  %v12227_v19 = vsel %vm229_vm6, 1.0, %v11858_v37 }
  0xff   : > { %v1896_v22 = vsel %vm1429_vm7, %v12227_v19, 0 }
 0x100   : > { %v1075_v39 = vadd.f32 %v1073_v11, %v1038_v27  ;;  %v1076_v43 = vadd.f32 %v1074_v12, %v1039_v31  ;;  %v685_v11 = vmul.f32 %v683_v57, %v12018_v0  ;;  %v1431_v0 = vsel %vm1429_vm7, %v12220_v13, 0 }
 0x101   : > { %v1093_v42 = vpop.permute.xlu1 %1092  ;;  %v1095_v45 = vpop.permute.xlu0 %1094  ;;  %v1304_v25 = vsel %vm587_vm1, %v1302_v17, %v1303_v18  ;;  %v12243_v28 = vsub.f32 %v1431_v0, %v1431_v0  ;;  %643 = vrot.lane.b32.xlu1 %v642_v5, %s11855_s15  ;;  %v12247_v30 = vsub.f32 %v1896_v22, %v1896_v22  ;;  %v784_v57 = vmul.f32 %v782_v48, %v12059_v34 }
 0x102   : > { %v1098_v54 = vadd.f32 %v1093_v42, %v1075_v39  ;;  %v1099_v58 = vadd.f32 %v1095_v45, %v1076_v43  ;;  %v744_v42 = vmul.f32 %v743_v33, %v12056_v32  ;;  %v860_v43 = vstv %s12231_s19  ;;  %s9927_s19 = sld [smem:[#allocation2 + $0x33]] }
 0x103   : > { %v12259_v45 = vand.u32 4294901760, %v12243_v28  ;;  %v12262_v46 = vand.u32 4294901760, %v12247_v30  ;;  %v861_v52 = vmul.f32 %v860_v43, %v12056_v32  ;;  %v862_v53 = vmul.f32 %v860_v43, %v12059_v34 }
 0x105   : > { %v1132_v59 = vpop.permute.xlu1 %1131  ;;  %v1134_v63 = vpop.permute.xlu0 %1133  ;;  %v1506_v60 = vsub.f32 %v12243_v28, %v12259_v45  ;;  %v1968_v61 = vsub.f32 %v12247_v30, %v12262_v46  ;;  %v866_v7 = vrot.slane %v862_v53, 1  ;;  %v1217_v53 = vstv %s9925_s5  ;;  %s9940_s5 = sld [smem:[#allocation2 + $0x40]] }
 0x106   : > { %v1137_v62 = vadd.f32 %v1132_v59, %v1098_v54  ;;  %v1138_v8 = vadd.f32 %v1134_v63, %v1099_v58  ;;  %v783_v58 = vmul.f32 %v782_v48, %v12056_v32  ;;  %v910_v63 = vmul.f32 %v908_v47, %v12059_v34 }
 0x107   : > { %v1100_v48 = vstv %s9922_s30  ;;  %s9937_s30 = sld [smem:[#allocation2 + $0x3d]] }
 0x108   : > { %v1175_v12 = vadd.f32 %v1172_v56, %v1137_v62  ;;  %v1176_v16 = vadd.f32 %v1171_v14, %v1138_v8  ;;  %v689_v14 = vrot.slane %v685_v11, 2  ;;  %v865_v8 = vrot.slane %v861_v52, 1 }
 0x109   : > { %v1210_v15 = vpop.permute.xlu1 %1209  ;;  %v1212_v1 = vpop.permute.xlu0 %1211  ;;  %v914_v0 = vrot.slane %v910_v63, 1 }
 0x10a   : > { %v1215_v21 = vadd.f32 %v1210_v15, %v1175_v12  ;;  %v1216_v23 = vadd.f32 %v1212_v1, %v1176_v16  ;;  %v690_v31 = vsel %vm587_vm1, %v688_v20, %v689_v14  ;;  %693 = vrot.lane.b32.xlu0 %v689_v14, %s11854_s21  ;;  %v992_v12 = vstv %s12256_s24  ;;  %s12615_s24 = sld [smem:[#allocation2 + $0x3a]] }
 0x10b   : > { %691 = vrot.lane.b32.xlu1 %v690_v31, %s11854_s21  ;;  %v12286_v15 = vand.u32 4294901760, %v1506_v60  ;;  %v12288_v16 = vand.u32 4294901760, %v1968_v61  ;;  %v867_v5 = vsel %vm454_vm0, %v865_v8, %v866_v7  ;;  %v913_v14 = vrot.slane %v909_v9, 1 }
 0x10c   : > { %v993_v20 = vmul.f32 %v992_v12, %v12056_v32  ;;  %v1265_v61 = vstv %s9926_s27  ;;  %v1349_v8 = vstv %s12376_s6  ;;  %s9941_s27 = sld [smem:[#allocation2 + $0x41]]  ;;  %s9943_s6 = sld [smem:[#allocation2 + $0x43]] }
 0x10d   : > { %v1258_v24 = vpop.permute.xlu1 %1257  ;;  %v1260_v27 = vpop.permute.xlu0 %1259 }
 0x10e   : > { %v1263_v26 = vadd.f32 %v1258_v24, %v1215_v21  ;;  %v1264_v29 = vadd.f32 %v1260_v27, %v1216_v23  ;;  %750 = vrot.lane.b32.xlu0 %v745_v41, %s11855_s15  ;;  %v994_v21 = vmul.f32 %v992_v12, %v12059_v34  ;;  %v1040_v24 = vstv %s12276_s22  ;;  %s12634_s22 = sld [smem:[#allocation2 + $0x3b]] }
 0x10f   : > { %748 = vrot.lane.b32.xlu1 %v744_v42, %s11855_s15  ;;  %v915_v27 = vsel %vm454_vm0, %v913_v14, %v914_v0  ;;  %v997_v31 = vrot.slane %v993_v20, 2 }
 0x110   : > { %v1307_v36 = vadd.f32 %v1304_v25, %v1263_v26  ;;  %v1308_v39 = vadd.f32 %v1303_v18, %v1264_v29  ;;  %v998_v29 = vrot.slane %v994_v21, 2 }
 0x111   : > { %v1342_v38 = vpop.permute.xlu1 %1341  ;;  %v1344_v40 = vpop.permute.xlu0 %1343 }
 0x112   : > { %v1347_v49 = vadd.f32 %v1342_v38, %v1307_v36  ;;  %v1348_v50 = vadd.f32 %v1344_v40, %v1308_v39  ;;  %789 = vrot.lane.b32.xlu0 %v784_v57, %s11854_s21  ;;  %v1041_v36 = vmul.f32 %v1040_v24, %v12056_v32  ;;  %v1042_v38 = vmul.f32 %v1040_v24, %v12059_v34 }
 0x113   : > { %787 = vrot.lane.b32.xlu1 %v783_v58, %s11854_s21  ;;  %v999_v40 = vsel %vm587_vm1, %v997_v31, %v998_v29  ;;  %v232_v34 = vadd.s32 2, %v12166_v6  ;;  %v1218_v58 = vmul.f32 %v1217_v53, %v12091_v2  ;;  %v238_v31 = vadd.s32 8, %v12153_v55 }
 0x114   : > { %v1046_v41 = vrot.slane %v1042_v38, 2  ;;  %v1045_v42 = vrot.slane %v1041_v36, 2 }
 0x115   : > { %v1390_v51 = vpop.permute.xlu1 %1389  ;;  %v1392_v56 = vpop.permute.xlu0 %1391  ;;  %vm233_vm8 = vcmp.lt.s32.totalorder %v232_v34, 13  ;;  %v1222_v63 = vrot.slane %v1218_v58, 1 }
 0x116   : > { %v1395_v54 = vadd.f32 %v1390_v51, %v1347_v49  ;;  %v1396_v59 = vadd.f32 %v1392_v56, %v1348_v50  ;;  %870 = vrot.lane.b32.xlu0 %v866_v7, %s11855_s15  ;;  %v1047_v43 = vsel %vm587_vm1, %v1045_v42, %v1046_v41  ;;  %v234_v6 = vsel %vm233_vm8, %v232_v34, 13 }
 0x117   : > { %868 = vrot.lane.b32.xlu1 %v867_v5, %s11855_s15  ;;  %v1102_v49 = vmul.f32 %v1100_v48, %v12094_v4  ;;  %v1101_v50 = vmul.f32 %v1100_v48, %v12091_v2  ;;  %vm235_vm9 = vcmp.eq.s32.totalorder %v12193_v44, %v234_v6  ;;  %v1139_v51 = vstv %s9923_s4  ;;  %s12692_s4 = sld [smem:[#allocation2 + $0x3e]] }
 0x118   : > { %v1437_v62 = vand.u32 4294901760, %v1395_v54  ;;  %v1434_v3 = vsel %vm587_vm1, %v1396_v59, 0  ;;  %v12368_v52 = vsel %vm235_vm9, 1.0, %v11858_v37  ;;  %v1140_v56 = vmul.f32 %v1139_v51, %v12091_v2 }
 0x119   : > { %v1440_v11 = vand.u32 4294901760, %v1434_v3  ;;  %v2359_v57 = vsel %vm1429_vm7, %v12368_v52, 0  ;;  %v1219_v59 = vmul.f32 %v1217_v53, %v12094_v4  ;;  %v1267_v7 = vmul.f32 %v1265_v61, %v12094_v4 }
 0x11a   : > { %v12281_v10 = vsub.f32 %v1395_v54, %v1437_v62  ;;  %918 = vrot.lane.b32.xlu0 %v914_v0, %s11854_s21  ;;  %v1141_v54 = vmul.f32 %v1139_v51, %v12094_v4  ;;  %v12394_v60 = vsub.f32 %v2359_v57, %v2359_v57  ;;  %v1397_v5 = vstv %s9929_s25  ;;  %s9944_s25 = sld [smem:[#allocation2 + $0x44]] }
 0x11b   : > { %v12291_v18 = vpack.c.bf16 %v1440_v11, %v1437_v62  ;;  %v12293_v1 = vsub.f32 %v1434_v3, %v1440_v11  ;;  %916 = vrot.lane.b32.xlu1 %v915_v27, %s11854_s21  ;;  %v1223_v62 = vrot.slane %v1219_v59, 1  ;;  %v1266_v3 = vmul.f32 %v1265_v61, %v12091_v2 }
 0x11c   : > { %v1516_v17 = vand.u32 4294901760, %v12281_v10  ;;  %v12406_v9 = vand.u32 4294901760, %v12394_v60  ;;  %v1350_v11 = vmul.f32 %v1349_v8, %v12091_v2  ;;  %v1271_v12 = vrot.slane %v1267_v7, 1 }
 0x11d   : > { %v1523_v23 = vand.u32 4294901760, %v12293_v1  ;;  %11126 = vmatpush3.bf16.msra.mxu0 %v12291_v18  ;;  %11144 = vmatpush3.bf16.msra.mxu1 %v12291_v18  ;;  %v12332_v32 = vpack.c.bf16 %v12293_v1, %v12281_v10  ;;  %v239_v27 = vmul.u32 2, %v12193_v44  ;;  %v11859_v44 = vmov 1.0  }
 0x11e   : > { %v1517_v22 = vsub.f32 %v12281_v10, %v1516_v17  ;;  %11127 = vmatprep.subr.bf16.mxu0 %v11856_v35  ;;  %11145 = vmatprep.subr.bf16.mxu1 %v11856_v35  ;;  %v1224_v10 = vsel %vm454_vm0, %v1222_v63, %v1223_v62  ;;  %v2431_v0 = vsub.f32 %v12394_v60, %v12406_v9  ;;  %v1354_v14 = vrot.slane %v1350_v11, 2 }
 0x11f   : > { %v1524_v26 = vsub.f32 %v12293_v1, %v1523_v23  ;;  %1002 = vrot.lane.b32.xlu0 %v998_v29, %s11855_s15  ;;  %1000 = vrot.lane.b32.xlu1 %v999_v40, %s11855_s15  ;;  %v12374_v47 = vpack.c.bf16 %v1523_v23, %v1516_v17  ;;  %v1270_v17 = vrot.slane %v1266_v3, 1  ;;  %v1351_v1 = vmul.f32 %v1349_v8, %v12094_v4 }
 0x120   : > { %v1518_v25 = vand.u32 4294901760, %v1517_v22  ;;  %10373 = vmatmul.mubr.f32.vlgmr.msra.gmra.mrb[0].mxu0 %v12286_v15  ;;  %10415 = vmatmul.mubr.f32.vlgmr.msra.gmra.mrb[0].mxu1 %v12288_v16  ;;  %v1398_v22 = vmul.f32 %v1397_v5, %v12091_v2  ;;  %v1399_v23 = vmul.f32 %v1397_v5, %v12094_v4  ;;  %v12431_v24 = vand.u32 4294901760, %v2431_v0 }
 0x121   : > { %v1525_v33 = vand.u32 4294901760, %v1524_v26  ;;  %10379 = vmatprep.mubr.msk.f32.mxu0 %vm11857_vm2, %v11858_v37  ;;  %10421 = vmatprep.mubr.msk.f32.mxu1 %vm11857_vm2, %v11858_v37  ;;  %v1272_v20 = vsel %vm454_vm0, %v1270_v17, %v1271_v12  ;;  %v1355_v21 = vrot.slane %v1351_v1, 2  ;;  %v248_v29 = vadd.s32 1, %v239_v27 }
 0x122   : > { %v1403_v4 = vrot.slane %v1399_v23, 2  ;;  %vm240_vm10 = vcmp.lt.s32.totalorder %v239_v27, 13  ;;  %v257_v0 = vadd.s32 2, %v239_v27  ;;  %v361_v5 = vstv %s9903_s7  ;;  %s9946_s7 = sld [smem:[#allocation2 + $0x46]] }
 0x123   : > { %v12321_v39 = vpack.c.bf16 %v1525_v33, %v1518_v25  ;;  %1050 = vrot.lane.b32.xlu0 %v1046_v41, %s11854_s21  ;;  %1048 = vrot.lane.b32.xlu1 %v1047_v43, %s11854_s21  ;;  %v1356_v2 = vsel %vm587_vm1, %v1354_v14, %v1355_v21  ;;  %v1402_v25 = vrot.slane %v1398_v22, 2  ;;  %vm249_vm11 = vcmp.lt.s32.totalorder %v248_v29, 13 }
 0x124   : > { %v241_v33 = vsel %vm240_vm10, %v239_v27, 13  ;;  %vm258_vm5 = vcmp.lt.s32.totalorder %v257_v0, 13  ;;  %vm4219_vm10 = vcmask 55296  }
 0x125   : > { %11129 = vmatpush3.bf16.msra.mxu0 %v12321_v39  ;;  %11147 = vmatpush3.bf16.msra.mxu1 %v12321_v39  ;;  %v1404_v26 = vsel %vm587_vm1, %v1402_v25, %v1403_v4  ;;  %vm242_vm12 = vcmp.eq.s32.totalorder %v12153_v55, %v241_v33  ;;  %vm243_vm13 = vcmp.eq.s32.totalorder %v238_v31, %v241_v33  ;;  %v12521_v14 = vsel %vm258_vm5, %v257_v0, 13 }
 0x126   : > { %11130 = vmatprep.subr.bf16.mxu0 %v11856_v35  ;;  %11148 = vmatprep.subr.bf16.mxu1 %v11856_v35  ;;  %v9872_v36 = vsel %vm243_vm13, 1.0, %v11858_v37  ;;  %vm12482_vm14 = vmpackc.low %vm587_vm1, %vm242_vm12  ;;  %v9871_v42 = vsel %vm242_vm12, 1.0, %v11858_v37  ;;  %vm261_vm6 = vcmp.eq.s32.totalorder %v238_v31, %v12521_v14  ;;  %vm260_vm8 = vcmp.eq.s32.totalorder %v12153_v55, %v12521_v14 }
 0x127   : > { %1107 = vrot.lane.b32.xlu0 %v1102_v49, %s11855_s15  ;;  %1105 = vrot.lane.b32.xlu1 %v1101_v50, %s11855_s15  ;;  %v2906_v43 = vsub.f32 %v9871_v42, %v9871_v42  ;;  %v462_v25 = vstv %s9906_s8  ;;  %vm12710_vm9 = vmpackc.low %vm587_vm1, %vm260_vm8  ;;  %s9947_s8 = sld [smem:[#allocation2 + $0x47]] }
 0x128   : > { %10380 = vmatmul.mubr.msk.f32.vlgmr.msra.gmra.mrb[0].mxu0 %vm1429_vm7, %v12220_v13  ;;  %10422 = vmatmul.mubr.msk.f32.vlgmr.msra.gmra.mrb[0].mxu1 %vm1429_vm7, %v12227_v19 }
 0x129   : > { %11132 = vmatpush3.bf16.msra.mxu0 %v12332_v32  ;;  %11150 = vmatpush3.bf16.msra.mxu1 %v12332_v32  ;;  %v2907_v50 = vand.u32 4294901760, %v2906_v43 }
 0x12a   : > { %10386 = vmatprep.mubr.msk.f32.mxu0 %vm11857_vm2, %v11858_v37  ;;  %11133 = vmatprep.subr.bf16.mxu0 %v11856_v35 }
 0x12b   : > { %10428 = vmatprep.mubr.msk.f32.mxu1 %vm11857_vm2, %v11858_v37  ;;  %11151 = vmatprep.subr.bf16.mxu1 %v11856_v35 }
 0x12c   : > { %1146 = vrot.lane.b32.xlu0 %v1141_v54, %s11854_s21  ;;  %1144 = vrot.lane.b32.xlu1 %v1140_v56, %s11854_s21  ;;  %v2908_v54 = vsub.f32 %v2906_v43, %v2907_v50 }
 0x12e   : > { %v2909_v58 = vand.u32 4294901760, %v2908_v54 }
 0x130   : > { %10387 = vmatmul.mubr.f32.vlgmr.msra.gmra.mrb[0].mxu0 %v12243_v28  ;;  %10429 = vmatmul.mubr.f32.vlgmr.msra.gmra.mrb[0].mxu1 %v12247_v30 }
 0x131   : > { %11135 = vmatpush3.bf16.msra.mxu0 %v12291_v18  ;;  %11153 = vmatpush3.bf16.msra.mxu1 %v12291_v18 }
 0x132   : > { %10393 = vmatprep.mubr.msk.f32.mxu0 %vm11857_vm2, %v11858_v37  ;;  %11136 = vmatprep.subr.bf16.mxu0 %v11856_v35 }
 0x133   : > { %10435 = vmatprep.mubr.msk.f32.mxu1 %vm11857_vm2, %v11858_v37  ;;  %11154 = vmatprep.subr.bf16.mxu1 %v11856_v35 }
 0x134   : > { %1227 = vrot.lane.b32.xlu0 %v1223_v62, %s11855_s15  ;;  %1225 = vrot.lane.b32.xlu1 %v1224_v10, %s11855_s15 }
 0x138   : > { %10394 = vmatmul.mubr.f32.vlgmr.msra.gmra.mrb[0].mxu0 %v12259_v45  ;;  %10436 = vmatmul.mubr.f32.vlgmr.msra.gmra.mrb[0].mxu1 %v12262_v46 }
 0x139   : > { %11138 = vmatpush3.bf16.msra.mxu0 %v12374_v47  ;;  %11156 = vmatpush3.bf16.msra.mxu1 %v12374_v47 }
 0x13a   : > { %10400 = vmatprep.mubr.msk.f32.mxu0 %vm11857_vm2, %v11858_v37  ;;  %11139 = vmatprep.subr.bf16.mxu0 %v11856_v35 }
 0x13b   : > { %10442 = vmatprep.mubr.msk.f32.mxu1 %vm11857_vm2, %v11858_v37  ;;  %11157 = vmatprep.subr.bf16.mxu1 %v11856_v35 }
 0x13c   : > { %1275 = vrot.lane.b32.xlu0 %v1271_v12, %s11854_s21  ;;  %1273 = vrot.lane.b32.xlu1 %v1272_v20, %s11854_s21  ;;  %v9876_v20 = vsel %vm261_vm6, 1.0, %v11858_v37 }
 0x140   : > { %10401 = vmatmul.mubr.msk.f32.vlgmr.msra.gmra.mrb[0].mxu0 %vm1429_vm7, %v12220_v13  ;;  %10443 = vmatmul.mubr.msk.f32.vlgmr.msra.gmra.mrb[0].mxu1 %vm1429_vm7, %v12227_v19 }
 0x141   : > { %11141 = vmatpush3.bf16.msra.mxu0 %v12291_v18  ;;  %11159 = vmatpush3.bf16.msra.mxu1 %v12291_v18 }
 0x142   : > { %10407 = vmatprep.mubr.msk.f32.mxu0 %vm11857_vm2, %v11858_v37  ;;  %10449 = vmatprep.mubr.msk.f32.mxu1 %vm11857_vm2, %v11858_v37 }
 0x143   : > { %11160 = vmatprep.subr.bf16.mxu0 %v11856_v35  ;;  %11178 = vmatprep.subr.bf16.mxu1 %v11856_v35 }
 0x144   : > { %1359 = vrot.lane.b32.xlu0 %v1355_v21, %s11855_s15  ;;  %1357 = vrot.lane.b32.xlu1 %v1356_v2, %s11855_s15  ;;  %v12528_v21 = vld [vmem:[%s12009_s29 + $0x8] sm:$0xff]  ;;  %v9875_v2 = vsel %vm260_vm8, 1.0, %v11858_v37 }
 0x145   : > { %v363_v22 = vmul.f32 %v12528_v21, %v361_v5  ;;  %v3831_v27 = vsub.f32 %v9875_v2, %v9875_v2 }
 0x147   : > { %v3832_v33 = vand.u32 4294901760, %v3831_v27 }
 0x148   : > { %10408 = vmatmul.mubr.msk.f32.vlgmr.msra.gmra.mrb[0].mxu0 %vm1429_vm7, %v12220_v13  ;;  %10450 = vmatmul.mubr.msk.f32.vlgmr.msra.gmra.mrb[0].mxu1 %vm1429_vm7, %v12227_v19 }
 0x149   : > { %11162 = vmatpush3.bf16.msra.mxu0 %v12291_v18  ;;  %10456 = vmatprep.mubr.msk.f32.mxu0 %vm11857_vm2, %v11858_v37 }
 0x14a   : > { %11163 = vmatprep.subr.bf16.mxu0 %v11856_v35  ;;  %10498 = vmatprep.mubr.msk.f32.mxu1 %vm11857_vm2, %v11858_v37 }
 0x14b   : > { %1407 = vrot.lane.b32.xlu0 %v1403_v4, %s11854_s21  ;;  %1405 = vrot.lane.b32.xlu1 %v1404_v26, %s11854_s21  ;;  %v3750_v4 = vsel %vm587_vm1, %v9876_v20, 0  ;;  %v12536_v26 = vpack.c.bf16 %v9876_v20, %v11859_v44 }
 0x14c   : > { %10457 = vmatmul.mubr.f32.vlgmr.msra.gmra.mrb[2].mxu0 %v12431_v24 }
 0x14d   : > { %11165 = vmatpush3.bf16.msra.mxu0 %v12321_v39  ;;  %10463 = vmatprep.mubr.msk.f32.mxu0 %vm11857_vm2, %v11858_v37  ;;  %v12487_v39 = vpack.c.bf16 %v9872_v36, %v11859_v44 }
 0x14e   : > { %11166 = vmatprep.subr.bf16.mxu0 %v11856_v35 }
 0x14f   : > { %11181 = vmatpush3.bf16.msk.msra.mxu1 %vm12482_vm14, %v12487_v39 }
 0x150   : > { %11182 = vmatprep.subr.bf16.mxu1 %v11856_v35 }
 0x154   : > { %10464 = vmatmul.mubr.msk.f32.vlgmr.msra.gmra.mrb[2].mxu0 %vm1429_vm7, %v12368_v52 }
 0x155   : > { %11168 = vmatpush3.bf16.msra.mxu0 %v12332_v32  ;;  %10470 = vmatprep.mubr.msk.f32.mxu0 %vm11857_vm2, %v11858_v37  ;;  %v2825_v32 = vsel %vm587_vm1, %v9872_v36, 0 }
 0x156   : > { %11169 = vmatprep.subr.bf16.mxu0 %v11856_v35  ;;  %v2913_v48 = vsub.f32 %v2825_v32, %v2825_v32  ;;  %v464_v32 = vmul.f32 %v12528_v21, %v462_v25 }
 0x158   : > { %v2914_v51 = vand.u32 4294901760, %v2913_v48  ;;  %v12513_v11 = vpack.c.bf16 %v2913_v48, %v2906_v43 }
 0x15a   : > { %v2915_v56 = vsub.f32 %v2913_v48, %v2914_v51  ;;  %v12517_v17 = vpack.c.bf16 %v2914_v51, %v2907_v50  ;;  %v392_v23 = vpop.permute.xlu0 %391  ;;  %v3833_v48 = vsub.f32 %v3831_v27, %v3832_v33 }
 0x15b   : > { %v396_v36 = vadd.f32 %v392_v23, %v363_v22 }
 0x15c   : > { %10471 = vmatmul.mubr.f32.vlgmr.msra.gmra.mrb[2].mxu0 %v12394_v60  ;;  %v2916_v59 = vand.u32 4294901760, %v2915_v56 }
 0x15d   : > { %11171 = vmatpush3.bf16.msra.mxu0 %v12291_v18  ;;  %10477 = vmatprep.mubr.msk.f32.mxu0 %vm11857_vm2, %v11858_v37 }
 0x15e   : > { %11172 = vmatprep.subr.bf16.mxu0 %v11856_v35  ;;  %v12509_v63 = vpack.c.bf16 %v2916_v59, %v2909_v58 }
 0x164   : > { %10478 = vmatmul.mubr.f32.vlgmr.msra.gmra.mrb[2].mxu0 %v12406_v9 }
 0x165   : > { %11174 = vmatpush3.bf16.msra.mxu0 %v12374_v47  ;;  %10484 = vmatprep.mubr.msk.f32.mxu0 %vm11857_vm2, %v11858_v37 }
 0x166   : > { %11175 = vmatprep.subr.bf16.mxu0 %v11856_v35 }
 0x16c   : > { %10485 = vmatmul.mubr.msk.f32.vlgmr.msra.gmra.mrb[2].mxu0 %vm1429_vm7, %v12368_v52 }
 0x16d   : > { %11177 = vmatpush3.bf16.msra.mxu0 %v12291_v18  ;;  %10491 = vmatprep.mubr.msk.f32.mxu0 %vm11857_vm2, %v11858_v37  ;;  %v250_v18 = vsel %vm249_vm11, %v248_v29, 13  ;;  %v3838_v29 = vsub.f32 %v3750_v4, %v3750_v4 }
 0x16e   : > { %11199 = vmatprep.subr.bf16.mxu0 %v11856_v35  ;;  %vm251_vm15 = vcmp.eq.s32.totalorder %v12153_v55, %v250_v18  ;;  %vm252_vm3 = vcmp.eq.s32.totalorder %v238_v31, %v250_v18  ;;  %v390_v31 = vpop.permute.xlu1 %389 }
 0x16f   : > { %v9874_v40 = vsel %vm252_vm3, 1.0, %v11858_v37  ;;  %vm12491_vm4 = vmpackc.low %vm587_vm1, %vm251_vm15  ;;  %v9873_v6 = vsel %vm251_vm15, 1.0, %v11858_v37  ;;  %v3839_v18 = vand.u32 4294901760, %v3838_v29 }
 0x170   : > { %v12497_v34 = vpack.c.bf16 %v9874_v40, %v11859_v44  ;;  %v3287_v49 = vsel %vm587_vm1, %v9874_v40, 0  ;;  %v3368_v53 = vsub.f32 %v9873_v6, %v9873_v6  ;;  %v12539_v40 = vld [vmem:[%s12009_s29] sm:$0xff]  ;;  %v3834_v44 = vand.u32 4294901760, %v3833_v48 }
 0x171   : > { %v3375_v47 = vsub.f32 %v3287_v49, %v3287_v49  ;;  %v362_v42 = vmul.f32 %v12539_v40, %v361_v5  ;;  %v463_v43 = vmul.f32 %v12539_v40, %v462_v25  ;;  %v3840_v6 = vsub.f32 %v3838_v29, %v3839_v18  ;;  %v431_v49 = vpop.permute.xlu0 %430 }
 0x172   : > { %v3369_v57 = vand.u32 4294901760, %v3368_v53  ;;  %v429_v54 = vpop.permute.xlu1 %428 }
 0x173   : > { %v3376_v62 = vand.u32 4294901760, %v3375_v47  ;;  %v12515_v12 = vpack.c.bf16 %v3375_v47, %v3368_v53  ;;  %v3841_v50 = vand.u32 4294901760, %v3840_v6  ;;  %v395_v51 = vadd.f32 %v390_v31, %v362_v42 }
 0x174   : > { %10492 = vmatmul.mubr.msk.f32.vlgmr.msra.gmra.mrb[2].mxu0 %vm1429_vm7, %v12368_v52  ;;  %v3370_v61 = vsub.f32 %v3368_v53, %v3369_v57  ;;  %v435_v53 = vadd.f32 %v431_v49, %v396_v36  ;;  %v467_v56 = vrot.slane %v463_v43, 1  ;;  %v720_v49 = vstv %s9912_s28  ;;  %s9952_s28 = sld [smem:[#allocation2 + $0x4c]] }
 0x175   : > { %10540 = vmatprep.mubr.msk.f32.mxu0 %vm11857_vm2, %v11858_v37  ;;  %11202 = vmatpush3.bf16.msk.msra.mxu0 %vm12491_vm4, %v12497_v34  ;;  %v3377_v7 = vsub.f32 %v3375_v47, %v3376_v62  ;;  %v12519_v1 = vpack.c.bf16 %v3376_v62, %v3369_v57  ;;  %v468_v47 = vrot.slane %v464_v32, 1  ;;  %v12544_v57 = vpack.c.bf16 %v3841_v50, %v3834_v44 }
 0x176   : > { %11203 = vmatprep.subr.bf16.mxu0 %v11856_v35  ;;  %v3371_v3 = vand.u32 4294901760, %v3370_v61  ;;  %v434_v58 = vadd.f32 %v429_v54, %v395_v51  ;;  %v513_v61 = vpop.permute.xlu0 %512  ;;  %v12552_v50 = vpack.c.bf16 %v3839_v18, %v3832_v33  ;;  %v12565_v18 = vld [vmem:[%s12009_s29 + $0x10] sm:$0xff] }
 0x177   : > { %v3378_v8 = vand.u32 4294901760, %v3377_v7  ;;  %v473_v59 = vadd.f32 %v468_v47, %v435_v53  ;;  %v469_v62 = vsel %vm454_vm0, %v467_v56, %v468_v47  ;;  %v12547_v7 = vpack.c.bf16 %v3838_v29, %v3831_v27 }
 0x178   : > { %v472_v5 = vadd.f32 %v469_v62, %v434_v58 }
 0x179   : > { %v12511_v10 = vpack.c.bf16 %v3378_v8, %v3371_v3  ;;  %v595_v3 = vstv %s9909_s9  ;;  %v511_v8 = vpop.permute.xlu1 %510  ;;  %v517_v0 = vadd.f32 %v513_v61, %v473_v59  ;;  %v12561_v61 = vld [vmem:[%s12009_s29 + $0x18] sm:$0xff]  ;;  %s9949_s9 = sld [smem:[#allocation2 + $0x49]] }
 0x17a   : > { %v597_v20 = vmul.f32 %v12528_v21, %v595_v3  ;;  %v596_v22 = vmul.f32 %v12539_v40, %v595_v3  ;;  %v561_v23 = vpop.permute.xlu0 %560  ;;  %v516_v2 = vadd.f32 %v511_v8, %v472_v5  ;;  %v722_v62 = vmul.f32 %v12561_v61, %v720_v49 }
 0x17b   : > { %v565_v4 = vadd.f32 %v561_v23, %v517_v0  ;;  %v721_v5 = vmul.f32 %v12565_v18, %v720_v49 }
 0x17c   : > { %v601_v25 = vrot.slane %v597_v20, 2  ;;  %v600_v36 = vrot.slane %v596_v22, 2  ;;  %v820_v20 = vstv %s9915_s10  ;;  %s9950_s10 = sld [smem:[#allocation2 + $0x4a]] }
 0x17d   : > { %v559_v31 = vpop.permute.xlu1 %558 }
 0x17e   : > { %v564_v42 = vadd.f32 %v559_v31, %v516_v2  ;;  %v606_v32 = vadd.f32 %v601_v25, %v565_v4  ;;  %v646_v43 = vpop.permute.xlu0 %645  ;;  %v602_v27 = vsel %vm587_vm1, %v600_v36, %v601_v25  ;;  %v822_v4 = vmul.f32 %v12561_v61, %v820_v20 }
 0x17f   : > { %v821_v25 = vmul.f32 %v12565_v18, %v820_v20 }
 0x180   : > { %v650_v48 = vadd.f32 %v646_v43, %v606_v32  ;;  %v605_v6 = vadd.f32 %v602_v27, %v564_v42  ;;  %v826_v32 = vrot.slane %v822_v4, 1 }
 0x181   : > { %v644_v29 = vpop.permute.xlu1 %643  ;;  %v825_v27 = vrot.slane %v821_v25, 1 }
 0x182   : > { %v694_v44 = vpop.permute.xlu0 %693  ;;  %v649_v58 = vadd.f32 %v644_v29, %v605_v6 }
 0x183   : > { %v698_v59 = vadd.f32 %v694_v44, %v650_v48  ;;  %v827_v49 = vsel %vm454_vm0, %v825_v27, %v826_v32  ;;  %v952_v44 = vstv %s9918_s11  ;;  %s9953_s11 = sld [smem:[#allocation2 + $0x4d]] }
 0x185   : > { %v692_v3 = vpop.permute.xlu1 %691  ;;  %v724_v0 = vadd.f32 %v722_v62, %v698_v59  ;;  %v954_v59 = vmul.f32 %v12561_v61, %v952_v44  ;;  %v953_v62 = vmul.f32 %v12565_v18, %v952_v44 }
 0x186   : > { %v697_v8 = vadd.f32 %v692_v3, %v649_v58  ;;  %v751_v33 = vpop.permute.xlu0 %750 }
 0x187   : > { %v755_v23 = vadd.f32 %v751_v33, %v724_v0  ;;  %v958_v33 = vrot.slane %v954_v59, 2  ;;  %v957_v20 = vrot.slane %v953_v62, 2  ;;  %v1177_v59 = vstv %s9924_s18  ;;  %s12894_s18 = sld [smem:[#allocation2 + $0x50]] }
 0x188   : > { %v723_v2 = vadd.f32 %v721_v5, %v697_v8 }
 0x189   : > { %v749_v22 = vpop.permute.xlu1 %748  ;;  %v959_v4 = vsel %vm587_vm1, %v957_v20, %v958_v33 }
 0x18a   : > { %v790_v31 = vpop.permute.xlu0 %789  ;;  %v754_v36 = vadd.f32 %v749_v22, %v723_v2 }
 0x18b   : > { %v794_v42 = vadd.f32 %v790_v31, %v755_v23 }
 0x18d   : > { %v788_v43 = vpop.permute.xlu1 %787  ;;  %v831_v48 = vadd.f32 %v826_v32, %v794_v42  ;;  %v1077_v42 = vstv %s9921_s12  ;;  %s12880_s12 = sld [smem:[#allocation2 + $0x4f]] }
 0x18e   : > { %v793_v29 = vadd.f32 %v788_v43, %v754_v36  ;;  %v871_v6 = vpop.permute.xlu0 %870 }
 0x190   : > { %v830_v58 = vadd.f32 %v827_v49, %v793_v29  ;;  %v12575_v29 = vld [vmem:[%s12009_s29 + $0x28] sm:$0xff] }
 0x191   : > { %v1179_v20 = vmul.f32 %v12575_v29, %v1177_v59 }
 0x192   : > { %v919_v3 = vpop.permute.xlu0 %918 }
 0x196   : > { %v1003_v2 = vpop.permute.xlu0 %1002 }
 0x19a   : > { %v1051_v32 = vpop.permute.xlu0 %1050 }
 0x21b   : > { %v12554_v51 = vpop.f32.mrb[0].mxu0  ;;  %v12556_v53 = vpop.f32.mrb[0].mxu1 }
 0x21c   : > { %v2357_v47 = vmax.f32 %v12554_v51, %v12556_v53  ;;  %v10409_v54 = vpop.f32.mrb[1].mxu0  ;;  %v10451_v56 = vpop.f32.mrb[1].mxu1 }
 0x21d   : > { %v869_v54 = vpop.permute.xlu1 %868  ;;  %v875_v56 = vadd.f32 %v871_v6, %v831_v48  ;;  %v1079_v48 = vmul.f32 %v12575_v29, %v1077_v42 }
 0x21e   : > { %v874_v8 = vadd.f32 %v869_v54, %v830_v58  ;;  %v1108_v54 = vpop.permute.xlu0 %1107 }
 0x21f   : > { %v923_v0 = vadd.f32 %v919_v3, %v875_v56  ;;  %v12579_v56 = vld [vmem:[%s12009_s29 + $0x20] sm:$0xff] }
 0x220   : > { %v1078_v58 = vmul.f32 %v12579_v56, %v1077_v42 }
 0x221   : > { %v917_v5 = vpop.permute.xlu1 %916  ;;  %v963_v23 = vadd.f32 %v958_v33, %v923_v0 }
 0x222   : > { %v922_v22 = vadd.f32 %v917_v5, %v874_v8 }
 0x223   : > { %v1007_v31 = vadd.f32 %v1003_v2, %v963_v23  ;;  %v1147_v2 = vpop.permute.xlu0 %1146 }
 0x224   : > { %v962_v36 = vadd.f32 %v959_v4, %v922_v22  ;;  %v1178_v22 = vmul.f32 %v12579_v56, %v1177_v59 }
 0x225   : > { %v1001_v25 = vpop.permute.xlu1 %1000  ;;  %v1055_v27 = vadd.f32 %v1051_v32, %v1007_v31 }
 0x226   : > { %v1006_v43 = vadd.f32 %v1001_v25, %v962_v36  ;;  %v1183_v36 = vrot.slane %v1179_v20, 1  ;;  %v1182_v53 = vrot.slane %v1178_v22, 1 }
 0x227   : > { %v1081_v44 = vadd.f32 %v1079_v48, %v1055_v27  ;;  %v1228_v27 = vpop.permute.xlu0 %1227 }
 0x229   : > { %v1049_v6 = vpop.permute.xlu1 %1048  ;;  %v1112_v33 = vadd.f32 %v1108_v54, %v1081_v44 }
 0x22a   : > { %v1054_v49 = vadd.f32 %v1049_v6, %v1006_v43  ;;  %v1184_v6 = vsel %vm454_vm0, %v1182_v53, %v1183_v36 }
 0x22b   : > { %v1151_v31 = vadd.f32 %v1147_v2, %v1112_v33 }
 0x22c   : > { %v1080_v5 = vadd.f32 %v1078_v58, %v1054_v49  ;;  %v1309_v49 = vstv %s9927_s19  ;;  %s9930_s19 = sld [smem:[#allocation2 + $0x36]] }
 0x22d   : > { %v1106_v3 = vpop.permute.xlu1 %1105  ;;  %v1188_v43 = vadd.f32 %v1183_v36, %v1151_v31 }
 0x22e   : > { %v1111_v25 = vadd.f32 %v1106_v3, %v1080_v5  ;;  %v1310_v3 = vmul.f32 %v12579_v56, %v1309_v49 }
 0x22f   : > { %v1232_v58 = vadd.f32 %v1228_v27, %v1188_v43 }
 0x230   : > { %v1314_v22 = vrot.slane %v1310_v3, 2 }
 0x231   : > { %v1145_v51 = vpop.permute.xlu1 %1144 }
 0x232   : > { %v1150_v32 = vadd.f32 %v1145_v51, %v1111_v25 }
 0x234   : > { %v1187_v59 = vadd.f32 %v1184_v6, %v1150_v32  ;;  %v436_v6 = vstv %s12613_s26  ;;  %s9939_s26 = sld [smem:[#allocation2 + $0x3f]] }
 0x235   : > { %v1226_v54 = vpop.permute.xlu1 %1225  ;;  %v437_v3 = vmul.f32 %v12539_v40, %v436_v6 }
 0x239   : > { %v1274_v20 = vpop.permute.xlu1 %1273 }
 0x23d   : > { %v1358_v32 = vpop.permute.xlu1 %1357 }
 0x247   : > { %v2816_v62 = vpop.f32.mrb[2].mxu0 }
 0x248   : > { %v2820_v8 = vmax.f32 %v2357_v47, %v2816_v62  ;;  %v10493_v0 = vpop.f32.mrb[3].mxu0  ;;  %v1311_v62 = vmul.f32 %v12575_v29, %v1309_v49  ;;  %v518_v49 = vstv %s12615_s24  ;;  %s9942_s24 = sld [smem:[#allocation2 + $0x42]] }
 0x249   : > { %v1231_v0 = vadd.f32 %v1226_v54, %v1187_v59  ;;  %v1406_v59 = vpop.permute.xlu1 %1405 }
 0x24a   : > { %v2822_v23 = vsel %vm1429_vm7, %v2820_v8, 0  ;;  %v1276_v8 = vpop.permute.xlu0 %1275  ;;  %v1315_v5 = vrot.slane %v1311_v62, 2  ;;  %v438_v62 = vmul.f32 %v12528_v21, %v436_v6 }
 0x24b   : > { %v12588_v4 = vand.u32 4294901760, %v2822_v23  ;;  %v1280_v33 = vadd.f32 %v1276_v8, %v1232_v58  ;;  %v1279_v2 = vadd.f32 %v1274_v20, %v1231_v0  ;;  %v519_v8 = vmul.f32 %v12539_v40, %v518_v49 }
 0x24c   : > { %v1316_v36 = vsel %vm587_vm1, %v1314_v22, %v1315_v5  ;;  %v520_v0 = vmul.f32 %v12528_v21, %v518_v49 }
 0x24d   : > { %v12591_v42 = vsub.f32 %v2822_v23, %v12588_v4  ;;  %v397_v23 = vstv %s9931_s23  ;;  %v1320_v25 = vadd.f32 %v1315_v5, %v1280_v33  ;;  %v1319_v43 = vadd.f32 %v1316_v36, %v1279_v2  ;;  %s9933_s23 = sld [smem:[#allocation2 + $0x39]] }
 0x24e   : > { %v1360_v31 = vpop.permute.xlu0 %1359  ;;  %v399_v51 = vmul.f32 %v12528_v21, %v397_v23  ;;  %v398_v53 = vmul.f32 %v12539_v40, %v397_v23  ;;  %v524_v20 = vrot.slane %v520_v0, 1  ;;  %v523_v22 = vrot.slane %v519_v8, 1 }
 0x24f   : > { %v12594_v47 = vand.u32 4294901760, %v12591_v42  ;;  %v1364_v27 = vadd.f32 %v1360_v31, %v1320_v25  ;;  %v1363_v54 = vadd.f32 %v1358_v32, %v1319_v43  ;;  %v566_v23 = vstv %s12634_s22  ;;  %s9945_s22 = sld [smem:[#allocation2 + $0x45]] }
 0x250   : > { %404 = vrot.lane.b32.xlu0 %v399_v51, %s11855_s15  ;;  %402 = vrot.lane.b32.xlu1 %v398_v53, %s11855_s15  ;;  %v525_v31 = vsel %vm454_vm0, %v523_v22, %v524_v20  ;;  %v567_v36 = vmul.f32 %v12539_v40, %v566_v23  ;;  %v568_v51 = vmul.f32 %v12528_v21, %v566_v23 }
 0x251   : > { %v2897_v48 = vsub.f32 %v12591_v42, %v12594_v47  ;;  %v1411_v33 = vadd.f32 %v1406_v59, %v1363_v54  ;;  %v651_v54 = vstv %s9937_s30  ;;  %s11658_s30 = smul.u32 24, %s13330_s16  ;;  %s9951_s16 = sld [smem:[#allocation2 + $0x4b]] }
 0x252   : > { %v572_v43 = vrot.slane %v568_v51, 1 }
 0x253   : > { %v12599_v44 = vand.u32 4294901760, %v2897_v48  ;;  %v1408_v48 = vpop.permute.xlu0 %1407  ;;  %v4225_v25 = vand.u32 4294901760, %v1411_v33 }
 0x254   : > { %v1412_v58 = vadd.f32 %v1408_v48, %v1364_v27  ;;  %443 = vrot.lane.b32.xlu0 %v438_v62, %s11854_s21  ;;  %441 = vrot.lane.b32.xlu1 %v437_v3, %s11854_s21  ;;  %v571_v27 = vrot.slane %v567_v36, 1  ;;  %v652_v62 = vmul.f32 %v12539_v40, %v651_v54  ;;  %v653_v3 = vmul.f32 %v12528_v21, %v651_v54 }
 0x255   : > { %10499 = vmatmul.mubr.f32.vlgmr.msra.gmra.mrb[2].mxu1 %v12599_v44  ;;  %10541 = vmatmul.mubr.f32.vlgmr.msra.gmra.mrb[4].mxu0 %v12599_v44  ;;  %v12671_v32 = vsub.f32 %v1411_v33, %v4225_v25  ;;  %v876_v54 = vstv %s9943_s6  ;;  %s12970_s6 = scalar_lea.vmem %s13307_s3, %s11658_s30 }
 0x256   : > { %11184 = vmatpush3.bf16.msra.mxu1 %v12509_v63  ;;  %11205 = vmatpush3.bf16.msra.mxu0 %v12511_v10  ;;  %v4222_v5 = vsel %vm587_vm1, %v1412_v58, 0  ;;  %v573_v49 = vsel %vm454_vm0, %v571_v27, %v572_v43  ;;  %v657_v55 = vrot.slane %v653_v3, 2  ;;  %v656_v14 = vrot.slane %v652_v62, 2 }
 0x257   : > { %10505 = vmatprep.mubr.msk.f32.mxu1 %vm11857_vm2, %v11858_v37  ;;  %10547 = vmatprep.mubr.msk.f32.mxu0 %vm11857_vm2, %v11858_v37  ;;  %v4228_v2 = vand.u32 4294901760, %v4222_v5  ;;  %v4304_v6 = vand.u32 4294901760, %v12671_v32  ;;  %v877_v3 = vmul.f32 %v12565_v18, %v876_v54 }
 0x258   : > { %11185 = vmatprep.subr.bf16.mxu1 %v11856_v35  ;;  %11206 = vmatprep.subr.bf16.mxu0 %v11856_v35  ;;  %v658_v23 = vsel %vm587_vm1, %v656_v14, %v657_v55 }
 0x259   : > { %v12669_v53 = vsub.f32 %v4222_v5, %v4228_v2  ;;  %528 = vrot.lane.b32.xlu0 %v524_v20, %s11855_s15  ;;  %526 = vrot.lane.b32.xlu1 %v525_v31, %s11855_s15  ;;  %v4305_v59 = vsub.f32 %v12671_v32, %v4304_v6  ;;  %v12714_v33 = vpack.c.bf16 %v4228_v2, %v4225_v25  ;;  %v699_v20 = vstv %s12692_s4  ;;  %s9948_s4 = sld [smem:[#allocation2 + $0x48]] }
 0x25a   : > { %v700_v2 = vmul.f32 %v12539_v40, %v699_v20  ;;  %v701_v25 = vmul.f32 %v12528_v21, %v699_v20  ;;  %v1008_v20 = vstv %s9946_s7  ;;  %s9958_s7 = sld [smem:[#allocation6 + $0x2]] }
 0x25b   : > { %v4311_v48 = vand.u32 4294901760, %v12669_v53  ;;  %v4306_v5 = vand.u32 4294901760, %v4305_v59  ;;  %v12748_v36 = vpack.c.bf16 %v12669_v53, %v12671_v32  ;;  %v878_v32 = vmul.f32 %v12561_v61, %v876_v54 }
 0x25c   : > { %v704_v31 = vrot.slane %v700_v2, 2  ;;  %v1010_v2 = vmul.f32 %v12561_v61, %v1008_v20 }
 0x25d   : > { %10506 = vmatmul.mubr.f32.vlgmr.msra.gmra.mrb[2].mxu1 %v12588_v4  ;;  %10548 = vmatmul.mubr.f32.vlgmr.msra.gmra.mrb[4].mxu0 %v12588_v4  ;;  %v4312_v58 = vsub.f32 %v12669_v53, %v4311_v48  ;;  %v881_v53 = vrot.slane %v877_v3, 1  ;;  %v1152_v3 = vstv %s9950_s10 }
 0x25e   : > { %11187 = vmatpush3.bf16.msra.mxu1 %v12513_v11  ;;  %11208 = vmatpush3.bf16.msra.mxu0 %v12515_v12 }
 0x25f   : > { %10512 = vmatprep.mubr.msk.f32.mxu1 %vm11857_vm2, %v11858_v37  ;;  %10554 = vmatprep.mubr.msk.f32.mxu0 %vm11857_vm2, %v11858_v37  ;;  %v4313_v0 = vand.u32 4294901760, %v4312_v58  ;;  %v12784_v58 = vpack.c.bf16 %v4311_v48, %v4304_v6  ;;  %v924_v6 = vstv %s9944_s25  ;;  %s9954_s25 = sld [smem:[#allocation2 + $0x4e]] }
 0x260   : > { %11188 = vmatprep.subr.bf16.mxu1 %v11856_v35  ;;  %11209 = vmatprep.subr.bf16.mxu0 %v11856_v35 }
 0x261   : > { %576 = vrot.lane.b32.xlu0 %v572_v43, %s11854_s21  ;;  %574 = vrot.lane.b32.xlu1 %v573_v49, %s11854_s21  ;;  %v12728_v22 = vpack.c.bf16 %v4313_v0, %v4306_v5  ;;  %v756_v43 = vstv %s9940_s5  ;;  %v925_v0 = vmul.f32 %v12565_v18, %v924_v6  ;;  %v926_v5 = vmul.f32 %v12561_v61, %v924_v6 }
 0x262   : > { %v758_v27 = vmul.f32 %v12561_v61, %v756_v43  ;;  %v757_v49 = vmul.f32 %v12565_v18, %v756_v43 }
 0x263   : > { %v929_v14 = vrot.slane %v925_v0, 1 }
 0x265   : > { %10513 = vmatmul.mubr.f32.vlgmr.msra.gmra.mrb[2].mxu1 %v12591_v42  ;;  %10555 = vmatmul.mubr.f32.vlgmr.msra.gmra.mrb[4].mxu0 %v12591_v42 }
 0x266   : > { %11191 = vmatpush3.bf16.msk.msra.mxu1 %vm12482_vm14, %v12487_v39  ;;  %11212 = vmatpush3.bf16.msk.msra.mxu0 %vm12491_vm4, %v12497_v34 }
 0x267   : > { %10519 = vmatprep.mubr.msk.f32.mxu1 %vm11857_vm2, %v11858_v37  ;;  %10561 = vmatprep.mubr.msk.f32.mxu0 %vm11857_vm2, %v11858_v37 }
 0x268   : > { %11192 = vmatprep.subr.bf16.mxu1 %v11856_v35  ;;  %11213 = vmatprep.subr.bf16.mxu0 %v11856_v35 }
 0x269   : > { %661 = vrot.lane.b32.xlu0 %v657_v55, %s11855_s15  ;;  %659 = vrot.lane.b32.xlu1 %v658_v23, %s11855_s15  ;;  %v930_v55 = vrot.slane %v926_v5, 1  ;;  %v1009_v23 = vmul.f32 %v12565_v18, %v1008_v20 }
 0x26d   : > { %10520 = vmatmul.mubr.f32.vlgmr.msra.gmra.mrb[2].mxu1 %v12594_v47  ;;  %10562 = vmatmul.mubr.f32.vlgmr.msra.gmra.mrb[4].mxu0 %v12594_v47 }
 0x26e   : > { %11194 = vmatpush3.bf16.msra.mxu1 %v12517_v17  ;;  %11215 = vmatpush3.bf16.msra.mxu0 %v12519_v1 }
 0x26f   : > { %10526 = vmatprep.mubr.msk.f32.mxu1 %vm11857_vm2, %v11858_v37  ;;  %10568 = vmatprep.mubr.msk.f32.mxu0 %vm11857_vm2, %v11858_v37 }
 0x270   : > { %11216 = vmatprep.subr.bf16.mxu0 %v11856_v35  ;;  %11195 = vmatprep.subr.bf16.mxu1 %v11856_v35 }
 0x275   : > { %10527 = vmatmul.mubr.f32.vlgmr.msra.gmra.mrb[2].mxu1 %v12588_v4  ;;  %10569 = vmatmul.mubr.f32.vlgmr.msra.gmra.mrb[4].mxu0 %v12588_v4 }
 0x276   : > { %11219 = vmatpush3.bf16.msk.msra.mxu0 %vm12491_vm4, %v12497_v34  ;;  %11198 = vmatpush3.bf16.msk.msra.mxu1 %vm12482_vm14, %v12487_v39 }
 0x277   : > { %10533 = vmatprep.mubr.msk.f32.mxu1 %vm11857_vm2, %v11858_v37  ;;  %10575 = vmatprep.mubr.msk.f32.mxu0 %vm11857_vm2, %v11858_v37 }
 0x278   : > { %11241 = vmatprep.subr.bf16.mxu0 %v11856_v35  ;;  %11220 = vmatprep.subr.bf16.mxu1 %v11856_v35 }
 0x27d   : > { %10534 = vmatmul.mubr.f32.vlgmr.msra.gmra.mrb[2].mxu1 %v12588_v4  ;;  %10576 = vmatmul.mubr.f32.vlgmr.msra.gmra.mrb[4].mxu0 %v12588_v4 }
 0x27e   : > { %11243 = vmatpush3.bf16.msra.mxu0 %v12714_v33  ;;  %11223 = vmatpush3.bf16.msk.msra.mxu1 %vm12710_vm9, %v12536_v26 }
 0x27f   : > { %10582 = vmatprep.mubr.msk.f32.mxu1 %vm11857_vm2, %v11858_v37  ;;  %10624 = vmatprep.mubr.msk.f32.mxu0 %vm11857_vm2, %v11858_v37 }
 0x280   : > { %11244 = vmatprep.subr.bf16.mxu0 %v11856_v35  ;;  %11224 = vmatprep.subr.bf16.mxu1 %v11856_v35 }
 0x281   : > { %10583 = vmatmul.mubr.f32.vlgmr.msra.gmra.mrb[4].mxu1 %v12599_v44  ;;  %10625 = vmatmul.mubr.f32.vlgmr.msra.gmra.mrb[6].mxu0 %v12286_v15  ;;  %v705_v44 = vrot.slane %v701_v25, 2  ;;  %v1013_v25 = vrot.slane %v1009_v23, 2 }
 0x282   : > { %11246 = vmatpush3.bf16.msra.mxu0 %v12728_v22  ;;  %11226 = vmatpush3.bf16.msra.mxu1 %v12544_v57 }
 0x283   : > { %10589 = vmatprep.mubr.msk.f32.mxu1 %vm11857_vm2, %v11858_v37  ;;  %10631 = vmatprep.mubr.msk.f32.mxu0 %vm11857_vm2, %v11858_v37  ;;  %v706_v51 = vsel %vm587_vm1, %v704_v31, %v705_v44 }
 0x284   : > { %11247 = vmatprep.subr.bf16.mxu0 %v11856_v35  ;;  %11227 = vmatprep.subr.bf16.mxu1 %v11856_v35 }
 0x285   : > { %709 = vrot.lane.b32.xlu0 %v705_v44, %s11854_s21  ;;  %707 = vrot.lane.b32.xlu1 %v706_v51, %s11854_s21  ;;  %v1056_v44 = vstv %s9947_s8 }
 0x286   : > { %v1057_v51 = vmul.f32 %v12565_v18, %v1056_v44  ;;  %v1058_v43 = vmul.f32 %v12561_v61, %v1056_v44 }
 0x289   : > { %10590 = vmatmul.mubr.f32.vlgmr.msra.gmra.mrb[4].mxu1 %v12588_v4  ;;  %10632 = vmatmul.mubr.msk.f32.vlgmr.msra.gmra.mrb[6].mxu0 %vm1429_vm7, %v12220_v13 }
 0x28a   : > { %11249 = vmatpush3.bf16.msra.mxu0 %v12748_v36  ;;  %11229 = vmatpush3.bf16.msra.mxu1 %v12547_v7 }
 0x28b   : > { %10596 = vmatprep.mubr.msk.f32.mxu1 %vm11857_vm2, %v11858_v37  ;;  %10638 = vmatprep.mubr.msk.f32.mxu0 %vm11857_vm2, %v11858_v37 }
 0x28c   : > { %11250 = vmatprep.subr.bf16.mxu0 %v11856_v35  ;;  %11230 = vmatprep.subr.bf16.mxu1 %v11856_v35 }
 0x28d   : > { %763 = vrot.lane.b32.xlu0 %v758_v27, %s11855_s15  ;;  %761 = vrot.lane.b32.xlu1 %v757_v49, %s11855_s15  ;;  %v1061_v27 = vrot.slane %v1057_v51, 2 }
 0x291   : > { %10597 = vmatmul.mubr.f32.vlgmr.msra.gmra.mrb[4].mxu1 %v12591_v42  ;;  %10639 = vmatmul.mubr.f32.vlgmr.msra.gmra.mrb[6].mxu0 %v12243_v28  ;;  %v795_v42 = vstv %s9941_s27 }
 0x292   : > { %11252 = vmatpush3.bf16.msra.mxu0 %v12714_v33  ;;  %11233 = vmatpush3.bf16.msk.msra.mxu1 %vm12710_vm9, %v12536_v26  ;;  %v797_v59 = vmul.f32 %v12561_v61, %v795_v42  ;;  %v796_v62 = vmul.f32 %v12565_v18, %v795_v42  ;;  %v1113_v42 = vstv %s9949_s9 }
 0x293   : > { %10603 = vmatprep.mubr.msk.f32.mxu1 %vm11857_vm2, %v11858_v37  ;;  %10645 = vmatprep.mubr.msk.f32.mxu0 %vm11857_vm2, %v11858_v37  ;;  %v1115_v54 = vmul.f32 %v12575_v29, %v1113_v42 }
 0x294   : > { %11253 = vmatprep.subr.bf16.mxu0 %v11856_v35  ;;  %11234 = vmatprep.subr.bf16.mxu1 %v11856_v35 }
 0x295   : > { %802 = vrot.lane.b32.xlu0 %v797_v59, %s11854_s21  ;;  %800 = vrot.lane.b32.xlu1 %v796_v62, %s11854_s21  ;;  %v1114_v59 = vmul.f32 %v12579_v56, %v1113_v42  ;;  %v1233_v62 = vstv %s9952_s28 }
 0x299   : > { %10604 = vmatmul.mubr.f32.vlgmr.msra.gmra.mrb[4].mxu1 %v12594_v47  ;;  %10646 = vmatmul.mubr.f32.vlgmr.msra.gmra.mrb[6].mxu0 %v12259_v45  ;;  %v882_v47 = vrot.slane %v878_v32, 1  ;;  %v1235_v32 = vmul.f32 %v12575_v29, %v1233_v62 }
 0x29a   : > { %11255 = vmatpush3.bf16.msra.mxu0 %v12784_v58  ;;  %11236 = vmatpush3.bf16.msra.mxu1 %v12552_v50 }
 0x29b   : > { %10610 = vmatprep.mubr.msk.f32.mxu1 %vm11857_vm2, %v11858_v37  ;;  %10652 = vmatprep.mubr.msk.f32.mxu0 %vm11857_vm2, %v11858_v37  ;;  %v883_v48 = vsel %vm454_vm0, %v881_v53, %v882_v47  ;;  %v1154_v53 = vmul.f32 %v12575_v29, %v1152_v3  ;;  %v1239_v0 = vrot.slane %v1235_v32, 1 }
 0x29c   : > { %11256 = vmatprep.subr.bf16.mxu0 %v11856_v35  ;;  %11237 = vmatprep.subr.bf16.mxu1 %v11856_v35 }
 0x29d   : > { %886 = vrot.lane.b32.xlu0 %v882_v47, %s11855_s15  ;;  %884 = vrot.lane.b32.xlu1 %v883_v48, %s11855_s15  ;;  %v1281_v47 = vstv %s9953_s11  ;;  %v1153_v48 = vmul.f32 %v12579_v56, %v1152_v3 }
 0x29e   : > { %v1283_v6 = vmul.f32 %v12575_v29, %v1281_v47 }
 0x2a0   : > { %v1287_v23 = vrot.slane %v1283_v6, 1 }
 0x2a1   : > { %10611 = vmatmul.mubr.f32.vlgmr.msra.gmra.mrb[4].mxu1 %v12588_v4  ;;  %10653 = vmatmul.mubr.msk.f32.vlgmr.msra.gmra.mrb[6].mxu0 %vm1429_vm7, %v12220_v13 }
 0x2a2   : > { %11258 = vmatpush3.bf16.msra.mxu0 %v12714_v33  ;;  %11240 = vmatpush3.bf16.msk.msra.mxu1 %vm12710_vm9, %v12536_v26 }
 0x2a3   : > { %10617 = vmatprep.mubr.msk.f32.mxu1 %vm11857_vm2, %v11858_v37  ;;  %10659 = vmatprep.mubr.msk.f32.mxu0 %vm11857_vm2, %v11858_v37 }
 0x2a4   : > { %11259 = vmatprep.subr.bf16.mxu1 %v11856_v35  ;;  %11277 = vmatprep.subr.bf16.mxu0 %v11856_v35 }
 0x2a5   : > { %934 = vrot.lane.b32.xlu0 %v930_v55, %s11854_s21 }
 0x2a9   : > { %10618 = vmatmul.mubr.f32.vlgmr.msra.gmra.mrb[4].mxu1 %v12588_v4  ;;  %10660 = vmatmul.mubr.msk.f32.vlgmr.msra.gmra.mrb[6].mxu0 %vm1429_vm7, %v12220_v13  ;;  %v931_v4 = vsel %vm454_vm0, %v929_v14, %v930_v55  ;;  %v1282_v55 = vmul.f32 %v12579_v56, %v1281_v47  ;;  %v1365_v14 = vstv %s12880_s12 }
 0x2aa   : > { %11261 = vmatpush3.bf16.msra.mxu1 %v12714_v33  ;;  %11279 = vmatpush3.bf16.msra.mxu0 %v12714_v33  ;;  %v1367_v20 = vmul.f32 %v12575_v29, %v1365_v14 }
 0x2ab   : > { %10666 = vmatprep.mubr.msk.f32.mxu1 %vm11857_vm2, %v11858_v37  ;;  %11262 = vmatprep.subr.bf16.mxu1 %v11856_v35 }
 0x2ac   : > { %10708 = vmatprep.mubr.msk.f32.mxu0 %vm11857_vm2, %v11858_v37  ;;  %11280 = vmatprep.subr.bf16.mxu0 %v11856_v35 }
 0x2ad   : > { %10667 = vmatmul.mubr.f32.vlgmr.msra.gmra.mrb[6].mxu1 %v12288_v16  ;;  %10709 = vmatmul.mubr.f32.vlgmr.msra.gmra.mrb[8].mxu0 %v12431_v24 }
 0x2ae   : > { %11264 = vmatpush3.bf16.msra.mxu1 %v12728_v22  ;;  %11282 = vmatpush3.bf16.msra.mxu0 %v12728_v22  ;;  %v1014_v22 = vrot.slane %v1010_v2, 2  ;;  %v1286_v2 = vrot.slane %v1282_v55, 1 }
 0x2af   : > { %10673 = vmatprep.mubr.msk.f32.mxu1 %vm11857_vm2, %v11858_v37  ;;  %11265 = vmatprep.subr.bf16.mxu1 %v11856_v35 }
 0x2b0   : > { %10715 = vmatprep.mubr.msk.f32.mxu0 %vm11857_vm2, %v11858_v37  ;;  %11283 = vmatprep.subr.bf16.mxu0 %v11856_v35  ;;  %v1015_v31 = vsel %vm587_vm1, %v1013_v25, %v1014_v22  ;;  %v1371_v25 = vrot.slane %v1367_v20, 2  ;;  %v1288_v44 = vsel %vm454_vm0, %v1286_v2, %v1287_v23 }
 0x2b1   : > { %932 = vrot.lane.b32.xlu1 %v931_v4, %s11854_s21  ;;  %1018 = vrot.lane.b32.xlu0 %v1014_v22, %s11855_s15  ;;  %v1366_v22 = vmul.f32 %v12579_v56, %v1365_v14 }
 0x2b5   : > { %10674 = vmatmul.mubr.msk.f32.vlgmr.msra.gmra.mrb[6].mxu1 %vm1429_vm7, %v12227_v19  ;;  %10716 = vmatmul.mubr.msk.f32.vlgmr.msra.gmra.mrb[8].mxu0 %vm1429_vm7, %v12368_v52 }
 0x2b6   : > { %11267 = vmatpush3.bf16.msra.mxu1 %v12748_v36  ;;  %11285 = vmatpush3.bf16.msra.mxu0 %v12748_v36  ;;  %v1062_v36 = vrot.slane %v1058_v43, 2 }
 0x2b7   : > { %10680 = vmatprep.mubr.msk.f32.mxu1 %vm11857_vm2, %v11858_v37  ;;  %11268 = vmatprep.subr.bf16.mxu1 %v11856_v35 }
 0x2b8   : > { %10722 = vmatprep.mubr.msk.f32.mxu0 %vm11857_vm2, %v11858_v37  ;;  %11286 = vmatprep.subr.bf16.mxu0 %v11856_v35  ;;  %v1063_v49 = vsel %vm587_vm1, %v1061_v27, %v1062_v36 }
 0x2b9   : > { %1016 = vrot.lane.b32.xlu1 %v1015_v31, %s11855_s15  ;;  %1066 = vrot.lane.b32.xlu0 %v1062_v36, %s11854_s21  ;;  %v1370_v31 = vrot.slane %v1366_v22, 2 }
 0x2bb   : > { %v1372_v36 = vsel %vm587_vm1, %v1370_v31, %v1371_v25 }
 0x2bd   : > { %10681 = vmatmul.mubr.f32.vlgmr.msra.gmra.mrb[6].mxu1 %v12247_v30  ;;  %10723 = vmatmul.mubr.f32.vlgmr.msra.gmra.mrb[8].mxu0 %v12394_v60 }
 0x2be   : > { %11270 = vmatpush3.bf16.msra.mxu1 %v12714_v33  ;;  %11288 = vmatpush3.bf16.msra.mxu0 %v12714_v33 }
 0x2bf   : > { %10687 = vmatprep.mubr.msk.f32.mxu1 %vm11857_vm2, %v11858_v37  ;;  %11271 = vmatprep.subr.bf16.mxu1 %v11856_v35 }
 0x2c0   : > { %10729 = vmatprep.mubr.msk.f32.mxu0 %vm11857_vm2, %v11858_v37  ;;  %11289 = vmatprep.subr.bf16.mxu0 %v11856_v35 }
 0x2c1   : > { %1064 = vrot.lane.b32.xlu1 %v1063_v49, %s11854_s21  ;;  %1120 = vrot.lane.b32.xlu0 %v1115_v54, %s11855_s15 }
 0x2c2   : > { %v405_v47 = vpop.permute.xlu0 %404  ;;  %v403_v6 = vpop.permute.xlu1 %402 }
 0x2c5   : > { %10688 = vmatmul.mubr.f32.vlgmr.msra.gmra.mrb[6].mxu1 %v12262_v46  ;;  %10730 = vmatmul.mubr.f32.vlgmr.msra.gmra.mrb[8].mxu0 %v12406_v9 }
 0x2c6   : > { %11273 = vmatpush3.bf16.msra.mxu1 %v12784_v58  ;;  %11291 = vmatpush3.bf16.msra.mxu0 %v12784_v58  ;;  %v1234_v58 = vmul.f32 %v12579_v56, %v1233_v62  ;;  %v442_v2 = vpop.permute.xlu1 %441 }
 0x2c7   : > { %10694 = vmatprep.mubr.msk.f32.mxu1 %vm11857_vm2, %v11858_v37  ;;  %11274 = vmatprep.subr.bf16.mxu1 %v11856_v35 }
 0x2c8   : > { %10736 = vmatprep.mubr.msk.f32.mxu0 %vm11857_vm2, %v11858_v37  ;;  %11292 = vmatprep.subr.bf16.mxu0 %v11856_v35  ;;  %v1238_v5 = vrot.slane %v1234_v58, 1  ;;  %v366_v58 = vstv %s9930_s19 }
 0x2c9   : > { %1118 = vrot.lane.b32.xlu1 %v1114_v59, %s11855_s15  ;;  %1159 = vrot.lane.b32.xlu0 %v1154_v53, %s11854_s21  ;;  %v368_v53 = vmul.f32 %v12528_v21, %v366_v58 }
 0x2ca   : > { %v1240_v4 = vsel %vm454_vm0, %v1238_v5, %v1239_v0  ;;  %v444_v5 = vpop.permute.xlu0 %443 }
 0x2cb   : > { %v409_v55 = vadd.f32 %v405_v47, %v368_v53 }
 0x2cd   : > { %10695 = vmatmul.mubr.msk.f32.vlgmr.msra.gmra.mrb[6].mxu1 %vm1429_vm7, %v12227_v19  ;;  %10737 = vmatmul.mubr.msk.f32.vlgmr.msra.gmra.mrb[8].mxu0 %vm1429_vm7, %v12368_v52 }
 0x2ce   : > { %11276 = vmatpush3.bf16.msra.mxu1 %v12714_v33  ;;  %11294 = vmatpush3.bf16.msra.mxu0 %v12714_v33  ;;  %v1413_v33 = vstv %s12894_s18 }
 0x2cf   : > { %10701 = vmatprep.mubr.msk.f32.mxu1 %vm11857_vm2, %v11858_v37  ;;  %10743 = vmatprep.mubr.msk.f32.mxu0 %vm11857_vm2, %v11858_v37  ;;  %v1415_v51 = vmul.f32 %v12575_v29, %v1413_v33  ;;  %v1414_v43 = vmul.f32 %v12579_v56, %v1413_v33 }
 0x2d0   : > { %1157 = vrot.lane.b32.xlu1 %v1153_v48, %s11854_s21  ;;  %11295 = vmatprep.subr.bf16.mxu1 %v11856_v35  ;;  %v474_v48 = vstv %s9933_s23 }
 0x2d1   : > { %11316 = vmatprep.subr.bf16.mxu0 %v11856_v35  ;;  %1243 = vrot.lane.b32.xlu0 %v1239_v0, %s11855_s15  ;;  %v1419_v27 = vrot.slane %v1415_v51, 2  ;;  %v1418_v49 = vrot.slane %v1414_v43, 2  ;;  %v367_v0 = vmul.f32 %v12539_v40, %v366_v58  ;;  %v476_v14 = vmul.f32 %v12528_v21, %v474_v48 }
 0x2d2   : > { %v475_v20 = vmul.f32 %v12539_v40, %v474_v48 }
 0x2d3   : > { %v1420_v42 = vsel %vm587_vm1, %v1418_v49, %v1419_v27  ;;  %v480_v22 = vrot.slane %v476_v14, 1 }
 0x2d4   : > { %1241 = vrot.lane.b32.xlu1 %v1240_v4, %s11855_s15  ;;  %v408_v4 = vadd.f32 %v403_v6, %v367_v0  ;;  %v479_v33 = vrot.slane %v475_v20, 1 }
 0x2d5   : > { %10702 = vmatmul.mubr.msk.f32.vlgmr.msra.gmra.mrb[6].mxu1 %vm1429_vm7, %v12227_v19  ;;  %10744 = vmatmul.mubr.msk.f32.vlgmr.msra.gmra.mrb[8].mxu0 %vm1429_vm7, %v12368_v52 }
 0x2d6   : > { %11298 = vmatpush3.bf16.msk.msra.mxu1 %vm12482_vm14, %v12487_v39  ;;  %11319 = vmatpush3.bf16.msk.msra.mxu0 %vm12491_vm4, %v12497_v34  ;;  %v481_v51 = vsel %vm454_vm0, %v479_v33, %v480_v22 }
 0x2d7   : > { %10750 = vmatprep.mubr.msk.f32.mxu1 %vm11857_vm2, %v11858_v37  ;;  %10792 = vmatprep.mubr.msk.f32.mxu0 %vm11857_vm2, %v11858_v37 }
 0x2d8   : > { %1291 = vrot.lane.b32.xlu0 %v1287_v23, %s11854_s21  ;;  %1289 = vrot.lane.b32.xlu1 %v1288_v44, %s11854_s21  ;;  %v448_v23 = vadd.f32 %v444_v5, %v409_v55  ;;  %v447_v44 = vadd.f32 %v442_v2, %v408_v4 }
 0x2d9   : > { %11299 = vmatprep.subr.bf16.mxu1 %v11856_v35  ;;  %11320 = vmatprep.subr.bf16.mxu0 %v11856_v35 }
 0x2da   : > { %v485_v31 = vadd.f32 %v480_v22, %v448_v23 }
 0x2dc   : > { %1375 = vrot.lane.b32.xlu0 %v1371_v25, %s11855_s15  ;;  %1373 = vrot.lane.b32.xlu1 %v1372_v36, %s11855_s15  ;;  %v529_v25 = vpop.permute.xlu0 %528  ;;  %v527_v36 = vpop.permute.xlu1 %526  ;;  %s347_s15 = sld [smem:[#allocation6]] }
 0x2e0   : > { %1423 = vrot.lane.b32.xlu0 %v1419_v27, %s11854_s21  ;;  %1421 = vrot.lane.b32.xlu1 %v1420_v42, %s11854_s21  ;;  %s9936_s21 = sld [smem:[#allocation2 + $0x3c]]  ;;  %v484_v27 = vadd.f32 %v481_v51, %v447_v44  ;;  %v577_v49 = vpop.permute.xlu0 %576  ;;  %v533_v42 = vadd.f32 %v529_v25, %v485_v31  ;;  %v575_v58 = vpop.permute.xlu1 %574  ;;  %v725_v25 = vstv %s9939_s26 }
 0x2e2   : > { %v4212_v23 = vstv %s347_s15 }
 0x2e4   : > { %v662_v48 = vpop.permute.xlu0 %661  ;;  %v660_v55 = vpop.permute.xlu1 %659 }
 0x2e6   : > { %v607_v43 = vstv %s9936_s21 }
 0x2f7   : > { %v710_v20 = vpop.permute.xlu0 %709 }
 0x350   : > { %v3282_v54 = vpop.f32.mrb[2].mxu1  ;;  %v3744_v59 = vpop.f32.mrb[4].mxu0 }
 0x351   : > { %v3748_v62 = vmax.f32 %v3282_v54, %v3744_v59  ;;  %v10535_v3 = vpop.f32.mrb[3].mxu1  ;;  %v10577_v32 = vpop.f32.mrb[5].mxu0  ;;  %v608_v54 = vmul.f32 %v12539_v40, %v607_v43  ;;  %v609_v59 = vmul.f32 %v12528_v21, %v607_v43 }
 0x352   : > { %v532_v3 = vadd.f32 %v527_v36, %v484_v27  ;;  %v581_v32 = vadd.f32 %v577_v49, %v533_v42  ;;  %v708_v43 = vpop.permute.xlu1 %707  ;;  %v727_v36 = vmul.f32 %v12561_v61, %v725_v25 }
 0x353   : > { %v612_v47 = vrot.slane %v608_v54, 2  ;;  %v613_v53 = vrot.slane %v609_v59, 2  ;;  %v764_v54 = vpop.permute.xlu0 %763  ;;  %v726_v59 = vmul.f32 %v12565_v18, %v725_v25  ;;  %v964_v25 = vstv %s9945_s22 }
 0x354   : > { %v580_v6 = vadd.f32 %v575_v58, %v532_v3 }
 0x355   : > { %v618_v0 = vadd.f32 %v613_v53, %v581_v32  ;;  %v614_v5 = vsel %vm587_vm1, %v612_v47, %v613_v53 }
 0x356   : > { %v617_v14 = vadd.f32 %v614_v5, %v580_v6  ;;  %v762_v32 = vpop.permute.xlu1 %761 }
 0x357   : > { %v666_v21 = vadd.f32 %v662_v48, %v618_v0  ;;  %v803_v6 = vpop.permute.xlu0 %802 }
 0x358   : > { %v665_v31 = vadd.f32 %v660_v55, %v617_v14 }
 0x359   : > { %v714_v51 = vadd.f32 %v710_v20, %v666_v21 }
 0x35a   : > { %v713_v42 = vadd.f32 %v708_v43, %v665_v31  ;;  %v801_v55 = vpop.permute.xlu1 %800  ;;  %v965_v43 = vmul.f32 %v12565_v18, %v964_v25 }
 0x35b   : > { %v729_v3 = vadd.f32 %v727_v36, %v714_v51  ;;  %v887_v21 = vpop.permute.xlu0 %886  ;;  %v966_v36 = vmul.f32 %v12561_v61, %v964_v25 }
 0x35c   : > { %v728_v58 = vadd.f32 %v726_v59, %v713_v42  ;;  %v969_v59 = vrot.slane %v965_v43, 2 }
 0x35d   : > { %v768_v47 = vadd.f32 %v764_v54, %v729_v3  ;;  %v970_v3 = vrot.slane %v966_v36, 2 }
 0x35e   : > { %v767_v0 = vadd.f32 %v762_v32, %v728_v58 }
 0x35f   : > { %v807_v5 = vadd.f32 %v803_v6, %v768_v47 }
 0x37c   : > { %v4207_v4 = vpop.f32.mrb[4].mxu1  ;;  %v12956_v40 = vpop.f32.mrb[6].mxu0 }
 0x37d   : > { %v4211_v2 = vmax.f32 %v3748_v62, %v4207_v4  ;;  %v10619_v22 = vpop.f32.mrb[5].mxu1  ;;  %v10661_v33 = vpop.f32.mrb[7].mxu0  ;;  %v832_v62 = vstv %s9942_s24 }
 0x37e   : > { %v833_v53 = vmul.f32 %v12565_v18, %v832_v62  ;;  %v834_v48 = vmul.f32 %v12561_v61, %v832_v62  ;;  %v971_v61 = vsel %vm587_vm1, %v969_v59, %v970_v3 }
 0x37f   : > { %v4213_v44 = vadd.f32 %v4212_v23, %v4211_v2  ;;  %v806_v23 = vadd.f32 %v801_v55, %v767_v0  ;;  %v1082_v0 = vstv %s9948_s4 }
 0x380   : > { %v837_v14 = vrot.slane %v833_v53, 1  ;;  %v838_v20 = vrot.slane %v834_v48, 1 }
 0x381   : > { %v4214_v27 = vsub.f32 0.0, %v4213_v44  ;;  %v885_v44 = vpop.permute.xlu1 %884 }
 0x382   : > { %v843_v22 = vadd.f32 %v838_v20, %v807_v5  ;;  %v839_v33 = vsel %vm454_vm0, %v837_v14, %v838_v20  ;;  %v1084_v20 = vmul.f32 %v12575_v29, %v1082_v0 }
 0x383   : > { %v4215_v49 = vmul.f32 1.442695, %v4214_v27  ;;  %v842_v31 = vadd.f32 %v839_v33, %v806_v23  ;;  %v935_v27 = vpop.permute.xlu0 %934 }
 0x384   : > { %v891_v51 = vadd.f32 %v887_v21, %v843_v22  ;;  %v1083_v21 = vmul.f32 %v12579_v56, %v1082_v0 }
 0x385   : > { %11727 = vpow2.f32 %v4215_v49  ;;  %v890_v49 = vadd.f32 %v885_v44, %v842_v31  ;;  %v933_v54 = vpop.permute.xlu1 %932 }
 0x386   : > { %v939_v42 = vadd.f32 %v935_v27, %v891_v51  ;;  %v1189_v51 = vstv %s9951_s16 }
 0x387   : > { %v938_v62 = vadd.f32 %v933_v54, %v890_v49  ;;  %v1019_v32 = vpop.permute.xlu0 %1018  ;;  %v1191_v54 = vmul.f32 %v12575_v29, %v1189_v51 }
 0x388   : > { %v975_v58 = vadd.f32 %v970_v3, %v939_v42  ;;  %v1190_v42 = vmul.f32 %v12579_v56, %v1189_v51 }
 0x389   : > { %v1017_v47 = vpop.permute.xlu1 %1016  ;;  %v974_v53 = vadd.f32 %v971_v61, %v938_v62 }
 0x38a   : > { %v1023_v48 = vadd.f32 %v1019_v32, %v975_v58  ;;  %v1194_v61 = vrot.slane %v1190_v42, 1 }
 0x38b   : > { %v1067_v6 = vpop.permute.xlu0 %1066  ;;  %v1022_v5 = vadd.f32 %v1017_v47, %v974_v53  ;;  %v1195_v47 = vrot.slane %v1191_v54, 1 }
 0x38c   : > { %v1071_v55 = vadd.f32 %v1067_v6, %v1023_v48 }
 0x38d   : > { %v1065_v14 = vpop.permute.xlu1 %1064  ;;  %v1196_v0 = vsel %vm454_vm0, %v1194_v61, %v1195_v47 }
 0x38e   : > { %v1086_v33 = vadd.f32 %v1084_v20, %v1071_v55 }
 0x38f   : > { %v11728_v4 = vpop.eup %11727  ;;  %v1121_v23 = vpop.permute.xlu0 %1120 }
 0x390   : > { %v4217_v2 = vadd.f32 1.0, %v11728_v4  ;;  %v1070_v4 = vadd.f32 %v1065_v14, %v1022_v5  ;;  %v1125_v49 = vadd.f32 %v1121_v23, %v1086_v33  ;;  %v1321_v5 = vstv %s9954_s25  ;;  %v11745_v23 = vld [vmem:[%s12009_s29 + $0x20] sm:$0xff] }
 0x391   : > { %v1119_v43 = vpop.permute.xlu1 %1118 }
 0x392   : > { %11729 = vrcp.f32 %v4217_v2  ;;  %v1085_v27 = vadd.f32 %v1083_v21, %v1070_v4  ;;  %v1322_v21 = vmul.f32 %v11745_v23, %v1321_v5 }
 0x393   : > { %v1160_v3 = vpop.permute.xlu0 %1159 }
 0x394   : > { %v1124_v32 = vadd.f32 %v1119_v43, %v1085_v27  ;;  %v1326_v51 = vrot.slane %v1322_v21, 2 }
 0x395   : > { %v1158_v58 = vpop.permute.xlu1 %1157 }
 0x396   : > { %v1163_v29 = vadd.f32 %v1158_v58, %v1124_v32 }
 0x397   : > { %v1244_v53 = vpop.permute.xlu0 %1243 }
 0x398   : > { %v1199_v20 = vadd.f32 %v1196_v0, %v1163_v29 }
 0x399   : > { %v1242_v14 = vpop.permute.xlu1 %1241 }
 0x39b   : > { %v1292_v33 = vpop.permute.xlu0 %1291 }
 0x39c   : > { %v11730_v18 = vpop.eup %11729 }
 0x39d   : > { %4220 = vst.msk [vmem:[%s12970_s6] sm:$0x7f] %vm4219_vm10, %v11730_v18  ;;  %v1164_v18 = vadd.f32 %v1160_v3, %v1125_v49 }
 0x39f   : > { %v1200_v6 = vadd.f32 %v1195_v47, %v1164_v18  ;;  %v1376_v27 = vpop.permute.xlu0 %1375 }
 0x3a1   : > { %v1248_v4 = vadd.f32 %v1244_v53, %v1200_v6 }
 0x3a3   : > { %v1424_v32 = vpop.permute.xlu0 %1423 }
 0x3a8   : > { %v5138_v2 = vpop.f32.mrb[6].mxu1  ;;  %v5598_v22 = vpop.f32.mrb[8].mxu0 }
 0x3a9   : > { %v5142_v25 = vmax.f32 %v12956_v40, %v5138_v2  ;;  %v10703_v44 = vpop.f32.mrb[7].mxu1  ;;  %v10745_v31 = vpop.f32.mrb[9].mxu0  ;;  %v11746_v2 = vld [vmem:[%s12009_s29 + $0x28] sm:$0xff]  ;;  %s9957_s29 = sld [smem:[#allocation6 + $0x1]] }
 0x3aa   : > { %v1296_v44 = vadd.f32 %v1292_v33, %v1248_v4  ;;  %v1290_v31 = vpop.permute.xlu1 %1289 }
 0x3ab   : > { %v5602_v36 = vmax.f32 %v5142_v25, %v5598_v22  ;;  %v1323_v22 = vmul.f32 %v11746_v2, %v1321_v5  ;;  %v1247_v25 = vadd.f32 %v1242_v14, %v1199_v20 }
 0x3ad   : > { %v5604_v59 = vsel %vm1429_vm7, %v5602_v36, 0  ;;  %v1327_v43 = vrot.slane %v1323_v22, 2  ;;  %v1295_v36 = vadd.f32 %v1290_v31, %v1247_v25 }
 0x3ae   : > { %v12981_v62 = vand.u32 4294901760, %v5604_v59  ;;  %v1374_v54 = vpop.permute.xlu1 %1373 }
 0x3af   : > { %v1332_v49 = vadd.f32 %v1327_v43, %v1296_v44  ;;  %v1328_v42 = vsel %vm587_vm1, %v1326_v51, %v1327_v43 }
 0x3b0   : > { %v12984_v40 = vsub.f32 %v5604_v59, %v12981_v62  ;;  %v1331_v59 = vadd.f32 %v1328_v42, %v1295_v36 }
 0x3b1   : > { %v1380_v3 = vadd.f32 %v1376_v27, %v1332_v49 }
 0x3b2   : > { %v12987_v56 = vand.u32 4294901760, %v12984_v40  ;;  %v1379_v18 = vadd.f32 %v1374_v54, %v1331_v59  ;;  %v1422_v61 = vpop.permute.xlu1 %1421 }
 0x3b3   : > { %v1428_v58 = vadd.f32 %v1424_v32, %v1380_v3 }
 0x3b4   : > { %v5676_v48 = vsub.f32 %v12984_v40, %v12987_v56  ;;  %v1427_v47 = vadd.f32 %v1422_v61, %v1379_v18 }
 0x3b5   : > { %v6995_v29 = vsel %vm587_vm1, %v1428_v58, 0 }
 0x3b6   : > { %v12992_v55 = vand.u32 4294901760, %v5676_v48  ;;  %v7001_v53 = vand.u32 4294901760, %v6995_v29  ;;  %v6998_v48 = vand.u32 4294901760, %v1427_v47 }
 0x3b8   : > { %10751 = vmatmul.mubr.f32.vlgmr.msra.gmra.mrb[8].mxu1 %v12992_v55  ;;  %10793 = vmatmul.mubr.f32.vlgmr.msra.gmra.mrb[10].mxu0 %v12992_v55  ;;  %v7083_v6 = vsub.f32 %v6995_v29, %v7001_v53  ;;  %v7076_v0 = vsub.f32 %v1427_v47, %v6998_v48  ;;  %v13056_v21 = vpack.c.bf16 %v7001_v53, %v6998_v48 }
 0x3b9   : > { %11301 = vmatpush3.bf16.msra.mxu1 %v12509_v63  ;;  %11322 = vmatpush3.bf16.msra.mxu0 %v12511_v10 }
 0x3ba   : > { %10757 = vmatprep.mubr.msk.f32.mxu1 %vm11857_vm2, %v11858_v37  ;;  %10799 = vmatprep.mubr.msk.f32.mxu0 %vm11857_vm2, %v11858_v37  ;;  %v7084_v5 = vand.u32 4294901760, %v7083_v6  ;;  %v7077_v14 = vand.u32 4294901760, %v7076_v0  ;;  %v11365_v33 = vpack.c.bf16 %v7083_v6, %v7076_v0 }
 0x3bb   : > { %11302 = vmatprep.subr.bf16.mxu1 %v11856_v35  ;;  %11323 = vmatprep.subr.bf16.mxu0 %v11856_v35 }
 0x3bc   : > { %v7085_v20 = vsub.f32 %v7083_v6, %v7084_v5  ;;  %v7078_v4 = vsub.f32 %v7076_v0, %v7077_v14 }
 0x3be   : > { %v7086_v23 = vand.u32 4294901760, %v7085_v20  ;;  %v7079_v2 = vand.u32 4294901760, %v7078_v4 }
 0x3c0   : > { %10758 = vmatmul.mubr.f32.vlgmr.msra.gmra.mrb[8].mxu1 %v12981_v62  ;;  %10800 = vmatmul.mubr.f32.vlgmr.msra.gmra.mrb[10].mxu0 %v12981_v62  ;;  %v11362_v22 = vpack.c.bf16 %v7086_v23, %v7079_v2 }
 0x3c1   : > { %11304 = vmatpush3.bf16.msra.mxu1 %v12513_v11  ;;  %11325 = vmatpush3.bf16.msra.mxu0 %v12515_v12 }
 0x3c2   : > { %10764 = vmatprep.mubr.msk.f32.mxu1 %vm11857_vm2, %v11858_v37  ;;  %10806 = vmatprep.mubr.msk.f32.mxu0 %vm11857_vm2, %v11858_v37 }
 0x3c3   : > { %11305 = vmatprep.subr.bf16.mxu1 %v11856_v35  ;;  %11326 = vmatprep.subr.bf16.mxu0 %v11856_v35 }
 0x3c8   : > { %10765 = vmatmul.mubr.f32.vlgmr.msra.gmra.mrb[8].mxu1 %v12984_v40  ;;  %10807 = vmatmul.mubr.f32.vlgmr.msra.gmra.mrb[10].mxu0 %v12984_v40 }
 0x3c9   : > { %11308 = vmatpush3.bf16.msk.msra.mxu1 %vm12482_vm14, %v12487_v39  ;;  %11329 = vmatpush3.bf16.msk.msra.mxu0 %vm12491_vm4, %v12497_v34 }
 0x3ca   : > { %10771 = vmatprep.mubr.msk.f32.mxu1 %vm11857_vm2, %v11858_v37  ;;  %10813 = vmatprep.mubr.msk.f32.mxu0 %vm11857_vm2, %v11858_v37 }
 0x3cb   : > { %11309 = vmatprep.subr.bf16.mxu1 %v11856_v35  ;;  %11330 = vmatprep.subr.bf16.mxu0 %v11856_v35 }
 0x3d0   : > { %10772 = vmatmul.mubr.f32.vlgmr.msra.gmra.mrb[8].mxu1 %v12987_v56  ;;  %10814 = vmatmul.mubr.f32.vlgmr.msra.gmra.mrb[10].mxu0 %v12987_v56 }
 0x3d1   : > { %11311 = vmatpush3.bf16.msra.mxu1 %v12517_v17  ;;  %11332 = vmatpush3.bf16.msra.mxu0 %v12519_v1 }
 0x3d2   : > { %10778 = vmatprep.mubr.msk.f32.mxu1 %vm11857_vm2, %v11858_v37  ;;  %10820 = vmatprep.mubr.msk.f32.mxu0 %vm11857_vm2, %v11858_v37 }
 0x3d3   : > { %11333 = vmatprep.subr.bf16.mxu0 %v11856_v35  ;;  %11312 = vmatprep.subr.bf16.mxu1 %v11856_v35 }
 0x3d8   : > { %10779 = vmatmul.mubr.f32.vlgmr.msra.gmra.mrb[8].mxu1 %v12981_v62  ;;  %10821 = vmatmul.mubr.f32.vlgmr.msra.gmra.mrb[10].mxu0 %v12981_v62 }
 0x3d9   : > { %11336 = vmatpush3.bf16.msk.msra.mxu0 %vm12491_vm4, %v12497_v34  ;;  %11315 = vmatpush3.bf16.msk.msra.mxu1 %vm12482_vm14, %v12487_v39 }
 0x3da   : > { %10785 = vmatprep.mubr.msk.f32.mxu1 %vm11857_vm2, %v11858_v37  ;;  %10827 = vmatprep.mubr.msk.f32.mxu0 %vm11857_vm2, %v11858_v37 }
 0x3db   : > { %11358 = vmatprep.subr.bf16.mxu0 %v11856_v35  ;;  %11337 = vmatprep.subr.bf16.mxu1 %v11856_v35 }
 0x3e0   : > { %10786 = vmatmul.mubr.f32.vlgmr.msra.gmra.mrb[8].mxu1 %v12981_v62  ;;  %10828 = vmatmul.mubr.f32.vlgmr.msra.gmra.mrb[10].mxu0 %v12981_v62 }
 0x3e1   : > { %11360 = vmatpush3.bf16.msra.mxu0 %v13056_v21  ;;  %11340 = vmatpush3.bf16.msk.msra.mxu1 %vm12710_vm9, %v12536_v26 }
 0x3e2   : > { %10834 = vmatprep.mubr.msk.f32.mxu1 %vm11857_vm2, %v11858_v37  ;;  %10876 = vmatprep.mubr.msk.f32.mxu0 %vm11857_vm2, %v11858_v37 }
 0x3e3   : > { %11361 = vmatprep.subr.bf16.mxu0 %v11856_v35  ;;  %11341 = vmatprep.subr.bf16.mxu1 %v11856_v35 }
 0x3e4   : > { %10835 = vmatmul.mubr.f32.vlgmr.msra.gmra.mrb[10].mxu1 %v12992_v55  ;;  %10877 = vmatmul.mubr.f32.vlgmr.msra.gmra.mrb[12].mxu0 %v12286_v15  ;;  %v11371_v15 = vpack.c.bf16 %v7084_v5, %v7077_v14 }
 0x3e5   : > { %11363 = vmatpush3.bf16.msra.mxu0 %v11362_v22  ;;  %11343 = vmatpush3.bf16.msra.mxu1 %v12544_v57 }
 0x3e6   : > { %10841 = vmatprep.mubr.msk.f32.mxu1 %vm11857_vm2, %v11858_v37  ;;  %10883 = vmatprep.mubr.msk.f32.mxu0 %vm11857_vm2, %v11858_v37 }
 0x3e7   : > { %11364 = vmatprep.subr.bf16.mxu0 %v11856_v35  ;;  %11344 = vmatprep.subr.bf16.mxu1 %v11856_v35 }
 0x3ec   : > { %10842 = vmatmul.mubr.f32.vlgmr.msra.gmra.mrb[10].mxu1 %v12981_v62  ;;  %10884 = vmatmul.mubr.msk.f32.vlgmr.msra.gmra.mrb[12].mxu0 %vm1429_vm7, %v12220_v13 }
 0x3ed   : > { %11366 = vmatpush3.bf16.msra.mxu0 %v11365_v33  ;;  %11346 = vmatpush3.bf16.msra.mxu1 %v12547_v7 }
 0x3ee   : > { %10848 = vmatprep.mubr.msk.f32.mxu1 %vm11857_vm2, %v11858_v37  ;;  %10890 = vmatprep.mubr.msk.f32.mxu0 %vm11857_vm2, %v11858_v37 }
 0x3ef   : > { %11367 = vmatprep.subr.bf16.mxu0 %v11856_v35  ;;  %11347 = vmatprep.subr.bf16.mxu1 %v11856_v35 }
 0x3f4   : > { %10849 = vmatmul.mubr.f32.vlgmr.msra.gmra.mrb[10].mxu1 %v12984_v40  ;;  %10891 = vmatmul.mubr.f32.vlgmr.msra.gmra.mrb[12].mxu0 %v12243_v28 }
 0x3f5   : > { %11369 = vmatpush3.bf16.msra.mxu0 %v13056_v21  ;;  %11350 = vmatpush3.bf16.msk.msra.mxu1 %vm12710_vm9, %v12536_v26 }
 0x3f6   : > { %10855 = vmatprep.mubr.msk.f32.mxu1 %vm11857_vm2, %v11858_v37  ;;  %10897 = vmatprep.mubr.msk.f32.mxu0 %vm11857_vm2, %v11858_v37 }
 0x3f7   : > { %11370 = vmatprep.subr.bf16.mxu0 %v11856_v35  ;;  %11351 = vmatprep.subr.bf16.mxu1 %v11856_v35 }
 0x3fc   : > { %10856 = vmatmul.mubr.f32.vlgmr.msra.gmra.mrb[10].mxu1 %v12987_v56  ;;  %10898 = vmatmul.mubr.f32.vlgmr.msra.gmra.mrb[12].mxu0 %v12259_v45 }
 0x3fd   : > { %11372 = vmatpush3.bf16.msra.mxu0 %v11371_v15  ;;  %11353 = vmatpush3.bf16.msra.mxu1 %v12552_v50 }
 0x3fe   : > { %10862 = vmatprep.mubr.msk.f32.mxu1 %vm11857_vm2, %v11858_v37  ;;  %10904 = vmatprep.mubr.msk.f32.mxu0 %vm11857_vm2, %v11858_v37 }
 0x3ff   : > { %11373 = vmatprep.subr.bf16.mxu0 %v11856_v35  ;;  %11354 = vmatprep.subr.bf16.mxu1 %v11856_v35 }
 0x404   : > { %10863 = vmatmul.mubr.f32.vlgmr.msra.gmra.mrb[10].mxu1 %v12981_v62  ;;  %10905 = vmatmul.mubr.msk.f32.vlgmr.msra.gmra.mrb[12].mxu0 %vm1429_vm7, %v12220_v13 }
 0x405   : > { %11375 = vmatpush3.bf16.msra.mxu0 %v13056_v21  ;;  %11357 = vmatpush3.bf16.msk.msra.mxu1 %vm12710_vm9, %v12536_v26 }
 0x406   : > { %10869 = vmatprep.mubr.msk.f32.mxu1 %vm11857_vm2, %v11858_v37  ;;  %10911 = vmatprep.mubr.msk.f32.mxu0 %vm11857_vm2, %v11858_v37 }
 0x407   : > { %11376 = vmatprep.subr.bf16.mxu1 %v11856_v35  ;;  %11394 = vmatprep.subr.bf16.mxu0 %v11856_v35 }
 0x40c   : > { %10870 = vmatmul.mubr.f32.vlgmr.msra.gmra.mrb[10].mxu1 %v12981_v62  ;;  %10912 = vmatmul.mubr.msk.f32.vlgmr.msra.gmra.mrb[12].mxu0 %vm1429_vm7, %v12220_v13 }
 0x40d   : > { %11378 = vmatpush3.bf16.msra.mxu1 %v13056_v21  ;;  %11396 = vmatpush3.bf16.msra.mxu0 %v13056_v21 }
 0x40e   : > { %10918 = vmatprep.mubr.msk.f32.mxu1 %vm11857_vm2, %v11858_v37  ;;  %11379 = vmatprep.subr.bf16.mxu1 %v11856_v35 }
 0x40f   : > { %10960 = vmatprep.mubr.msk.f32.mxu0 %vm11857_vm2, %v11858_v37  ;;  %11397 = vmatprep.subr.bf16.mxu0 %v11856_v35 }
 0x410   : > { %10919 = vmatmul.mubr.f32.vlgmr.msra.gmra.mrb[12].mxu1 %v12288_v16  ;;  %10961 = vmatmul.mubr.f32.vlgmr.msra.gmra.mrb[14].mxu0 %v12431_v24  ;;  %v6985_v16 = vstv %s9957_s29 }
 0x411   : > { %11381 = vmatpush3.bf16.msra.mxu1 %v11362_v22  ;;  %11399 = vmatpush3.bf16.msra.mxu0 %v11362_v22 }
 0x412   : > { %10925 = vmatprep.mubr.msk.f32.mxu1 %vm11857_vm2, %v11858_v37  ;;  %11382 = vmatprep.subr.bf16.mxu1 %v11856_v35 }
 0x413   : > { %10967 = vmatprep.mubr.msk.f32.mxu0 %vm11857_vm2, %v11858_v37  ;;  %11400 = vmatprep.subr.bf16.mxu0 %v11856_v35 }
 0x418   : > { %10926 = vmatmul.mubr.msk.f32.vlgmr.msra.gmra.mrb[12].mxu1 %vm1429_vm7, %v12227_v19  ;;  %10968 = vmatmul.mubr.msk.f32.vlgmr.msra.gmra.mrb[14].mxu0 %vm1429_vm7, %v12368_v52 }
 0x419   : > { %11384 = vmatpush3.bf16.msra.mxu1 %v11365_v33  ;;  %11402 = vmatpush3.bf16.msra.mxu0 %v11365_v33 }
 0x41a   : > { %10932 = vmatprep.mubr.msk.f32.mxu1 %vm11857_vm2, %v11858_v37  ;;  %11385 = vmatprep.subr.bf16.mxu1 %v11856_v35 }
 0x41b   : > { %10974 = vmatprep.mubr.msk.f32.mxu0 %vm11857_vm2, %v11858_v37  ;;  %11403 = vmatprep.subr.bf16.mxu0 %v11856_v35 }
 0x420   : > { %10933 = vmatmul.mubr.f32.vlgmr.msra.gmra.mrb[12].mxu1 %v12247_v30  ;;  %10975 = vmatmul.mubr.f32.vlgmr.msra.gmra.mrb[14].mxu0 %v12394_v60 }
 0x421   : > { %11387 = vmatpush3.bf16.msra.mxu1 %v13056_v21  ;;  %11405 = vmatpush3.bf16.msra.mxu0 %v13056_v21 }
 0x422   : > { %10939 = vmatprep.mubr.msk.f32.mxu1 %vm11857_vm2, %v11858_v37  ;;  %11388 = vmatprep.subr.bf16.mxu1 %v11856_v35 }
 0x423   : > { %10981 = vmatprep.mubr.msk.f32.mxu0 %vm11857_vm2, %v11858_v37  ;;  %11406 = vmatprep.subr.bf16.mxu0 %v11856_v35 }
 0x428   : > { %10940 = vmatmul.mubr.f32.vlgmr.msra.gmra.mrb[12].mxu1 %v12262_v46  ;;  %10982 = vmatmul.mubr.f32.vlgmr.msra.gmra.mrb[14].mxu0 %v12406_v9 }
 0x429   : > { %11390 = vmatpush3.bf16.msra.mxu1 %v11371_v15  ;;  %11408 = vmatpush3.bf16.msra.mxu0 %v11371_v15 }
 0x42a   : > { %10946 = vmatprep.mubr.msk.f32.mxu1 %vm11857_vm2, %v11858_v37  ;;  %11391 = vmatprep.subr.bf16.mxu1 %v11856_v35 }
 0x42b   : > { %10988 = vmatprep.mubr.msk.f32.mxu0 %vm11857_vm2, %v11858_v37  ;;  %11409 = vmatprep.subr.bf16.mxu0 %v11856_v35 }
 0x430   : > { %10947 = vmatmul.mubr.msk.f32.vlgmr.msra.gmra.mrb[12].mxu1 %vm1429_vm7, %v12227_v19  ;;  %10989 = vmatmul.mubr.msk.f32.vlgmr.msra.gmra.mrb[14].mxu0 %vm1429_vm7, %v12368_v52 }
 0x431   : > { %11393 = vmatpush3.bf16.msra.mxu1 %v13056_v21  ;;  %11411 = vmatpush3.bf16.msra.mxu0 %v13056_v21 }
 0x432   : > { %10953 = vmatprep.mubr.msk.f32.mxu1 %vm11857_vm2, %v11858_v37  ;;  %10995 = vmatprep.mubr.msk.f32.mxu0 %vm11857_vm2, %v11858_v37 }
 0x433   : > { %11412 = vmatprep.subr.bf16.mxu1 %v11856_v35  ;;  %11433 = vmatprep.subr.bf16.mxu0 %v11856_v35 }
 0x438   : > { %10954 = vmatmul.mubr.msk.f32.vlgmr.msra.gmra.mrb[12].mxu1 %vm1429_vm7, %v12227_v19  ;;  %10996 = vmatmul.mubr.msk.f32.vlgmr.msra.gmra.mrb[14].mxu0 %vm1429_vm7, %v12368_v52 }
 0x439   : > { %11415 = vmatpush3.bf16.msk.msra.mxu1 %vm12482_vm14, %v12487_v39  ;;  %11436 = vmatpush3.bf16.msk.msra.mxu0 %vm12491_vm4, %v12497_v34 }
 0x43a   : > { %11002 = vmatprep.mubr.msk.f32.mxu1 %vm11857_vm2, %v11858_v37  ;;  %11044 = vmatprep.mubr.msk.f32.mxu0 %vm11857_vm2, %v11858_v37 }
 0x43b   : > { %11416 = vmatprep.subr.bf16.mxu1 %v11856_v35  ;;  %11437 = vmatprep.subr.bf16.mxu0 %v11856_v35 }
 0x4b3   : > { %v6061_v13 = vpop.f32.mrb[8].mxu1  ;;  %v6520_v19 = vpop.f32.mrb[10].mxu0 }
 0x4b4   : > { %v6524_v28 = vmax.f32 %v6061_v13, %v6520_v19  ;;  %v10787_v30 = vpop.f32.mrb[9].mxu1  ;;  %v10829_v45 = vpop.f32.mrb[11].mxu0 }
 0x4df   : > { %v6980_v46 = vpop.f32.mrb[10].mxu1  ;;  %v7452_v52 = vpop.f32.mrb[12].mxu0 }
 0x4e0   : > { %v6984_v60 = vmax.f32 %v6524_v28, %v6980_v46  ;;  %v10871_v9 = vpop.f32.mrb[11].mxu1  ;;  %v10913_v24 = vpop.f32.mrb[13].mxu0 }
 0x4e2   : > { %v6986_v62 = vadd.f32 %v6985_v16, %v6984_v60 }
 0x4e4   : > { %v6987_v40 = vsub.f32 0.0, %v6986_v62 }
 0x4e6   : > { %v6988_v56 = vmul.f32 1.442695, %v6987_v40 }
 0x4e8   : > { %11731 = vpow2.f32 %v6988_v56 }
 0x4f2   : > { %v11732_v55 = vpop.eup %11731 }
 0x4f3   : > { %v6990_v25 = vadd.f32 1.0, %v11732_v55 }
 0x4f5   : > { %11733 = vrcp.f32 %v6990_v25 }
 0x4ff   : > { %v11734_v44 = vpop.eup %11733 }
 0x500   : > { %10013 = vst.msk [vmem:[%s12970_s6 + $0x8] sm:$0x7f] %vm4219_vm10, %v11734_v44 }
 0x50b   : > { %v7911_v31 = vpop.f32.mrb[12].mxu1  ;;  %v8371_v51 = vpop.f32.mrb[14].mxu0 }
 0x50c   : > { %v7915_v43 = vmax.f32 %v7452_v52, %v7911_v31  ;;  %v10955_v36 = vpop.f32.mrb[13].mxu1  ;;  %v10997_v27 = vpop.f32.mrb[15].mxu0 }
 0x50e   : > { %v8375_v49 = vmax.f32 %v7915_v43, %v8371_v51 }
 0x510   : > { %v8377_v42 = vsel %vm1429_vm7, %v8375_v49, 0 }
 0x511   : > { %v13201_v54 = vand.u32 4294901760, %v8377_v42 }
 0x513   : > { %v8447_v59 = vsub.f32 %v8377_v42, %v13201_v54 }
 0x515   : > { %v8448_v3 = vand.u32 4294901760, %v8447_v59 }
 0x517   : > { %v8449_v32 = vsub.f32 %v8447_v59, %v8448_v3 }
 0x519   : > { %v8450_v18 = vand.u32 4294901760, %v8449_v32 }
 0x51b   : > { %11003 = vmatmul.mubr.f32.vlgmr.msra.gmra.mrb[14].mxu1 %v8450_v18  ;;  %11045 = vmatmul.mubr.f32.vlgmr.msra.gmra.mrb[16].mxu0 %v8450_v18 }
 0x51c   : > { %11418 = vmatpush3.bf16.msra.mxu1 %v12509_v63  ;;  %11439 = vmatpush3.bf16.msra.mxu0 %v12511_v10 }
 0x51d   : > { %11009 = vmatprep.mubr.msk.f32.mxu1 %vm11857_vm2, %v11858_v37  ;;  %11051 = vmatprep.mubr.msk.f32.mxu0 %vm11857_vm2, %v11858_v37 }
 0x51e   : > { %11419 = vmatprep.subr.bf16.mxu1 %v11856_v35  ;;  %11440 = vmatprep.subr.bf16.mxu0 %v11856_v35 }
 0x523   : > { %11010 = vmatmul.mubr.f32.vlgmr.msra.gmra.mrb[14].mxu1 %v13201_v54  ;;  %11052 = vmatmul.mubr.f32.vlgmr.msra.gmra.mrb[16].mxu0 %v13201_v54 }
 0x524   : > { %11421 = vmatpush3.bf16.msra.mxu1 %v12513_v11  ;;  %11442 = vmatpush3.bf16.msra.mxu0 %v12515_v12 }
 0x525   : > { %11016 = vmatprep.mubr.msk.f32.mxu1 %vm11857_vm2, %v11858_v37  ;;  %11058 = vmatprep.mubr.msk.f32.mxu0 %vm11857_vm2, %v11858_v37 }
 0x526   : > { %11422 = vmatprep.subr.bf16.mxu1 %v11856_v35  ;;  %11443 = vmatprep.subr.bf16.mxu0 %v11856_v35 }
 0x52b   : > { %11017 = vmatmul.mubr.f32.vlgmr.msra.gmra.mrb[14].mxu1 %v8447_v59  ;;  %11059 = vmatmul.mubr.f32.vlgmr.msra.gmra.mrb[16].mxu0 %v8447_v59 }
 0x52c   : > { %11425 = vmatpush3.bf16.msk.msra.mxu1 %vm12482_vm14, %v12487_v39  ;;  %11446 = vmatpush3.bf16.msk.msra.mxu0 %vm12491_vm4, %v12497_v34 }
 0x52d   : > { %11023 = vmatprep.mubr.msk.f32.mxu1 %vm11857_vm2, %v11858_v37  ;;  %11065 = vmatprep.mubr.msk.f32.mxu0 %vm11857_vm2, %v11858_v37 }
 0x52e   : > { %11426 = vmatprep.subr.bf16.mxu1 %v11856_v35  ;;  %11447 = vmatprep.subr.bf16.mxu0 %v11856_v35 }
 0x533   : > { %11024 = vmatmul.mubr.f32.vlgmr.msra.gmra.mrb[14].mxu1 %v8448_v3  ;;  %11066 = vmatmul.mubr.f32.vlgmr.msra.gmra.mrb[16].mxu0 %v8448_v3 }
 0x534   : > { %11428 = vmatpush3.bf16.msra.mxu1 %v12517_v17  ;;  %11449 = vmatpush3.bf16.msra.mxu0 %v12519_v1 }
 0x535   : > { %11030 = vmatprep.mubr.msk.f32.mxu1 %vm11857_vm2, %v11858_v37  ;;  %11072 = vmatprep.mubr.msk.f32.mxu0 %vm11857_vm2, %v11858_v37 }
 0x536   : > { %11429 = vmatprep.subr.bf16.mxu1 %v11856_v35  ;;  %11450 = vmatprep.subr.bf16.mxu0 %v11856_v35 }
 0x53b   : > { %11031 = vmatmul.mubr.f32.vlgmr.msra.gmra.mrb[14].mxu1 %v13201_v54  ;;  %11073 = vmatmul.mubr.f32.vlgmr.msra.gmra.mrb[16].mxu0 %v13201_v54 }
 0x53c   : > { %11432 = vmatpush3.bf16.msk.msra.mxu1 %vm12482_vm14, %v12487_v39  ;;  %11453 = vmatpush3.bf16.msk.msra.mxu0 %vm12491_vm4, %v12497_v34 }
 0x53d   : > { %11037 = vmatprep.mubr.msk.f32.mxu1 %vm11857_vm2, %v11858_v37  ;;  %11079 = vmatprep.mubr.msk.f32.mxu0 %vm11857_vm2, %v11858_v37 }
 0x53e   : > { %11454 = vmatprep.subr.bf16.mxu1 %v11856_v35 }
 0x543   : > { %11038 = vmatmul.mubr.f32.vlgmr.msra.gmra.mrb[14].mxu1 %v13201_v54  ;;  %11080 = vmatmul.mubr.f32.vlgmr.msra.gmra.mrb[16].mxu0 %v13201_v54 }
 0x544   : > { %11457 = vmatpush3.bf16.msk.msra.mxu1 %vm12710_vm9, %v12536_v26  ;;  %11086 = vmatprep.mubr.msk.f32.mxu1 %vm11857_vm2, %v11858_v37 }
 0x545   : > { %11458 = vmatprep.subr.bf16.mxu1 %v11856_v35 }
 0x547   : > { %11087 = vmatmul.mubr.f32.vlgmr.msra.gmra.mrb[16].mxu1 %v8450_v18 }
 0x548   : > { %11460 = vmatpush3.bf16.msra.mxu1 %v12544_v57  ;;  %11093 = vmatprep.mubr.msk.f32.mxu1 %vm11857_vm2, %v11858_v37 }
 0x549   : > { %11461 = vmatprep.subr.bf16.mxu1 %v11856_v35 }
 0x54f   : > { %11094 = vmatmul.mubr.f32.vlgmr.msra.gmra.mrb[16].mxu1 %v13201_v54 }
 0x550   : > { %11463 = vmatpush3.bf16.msra.mxu1 %v12547_v7  ;;  %11100 = vmatprep.mubr.msk.f32.mxu1 %vm11857_vm2, %v11858_v37 }
 0x551   : > { %11464 = vmatprep.subr.bf16.mxu1 %v11856_v35 }
 0x557   : > { %11101 = vmatmul.mubr.f32.vlgmr.msra.gmra.mrb[16].mxu1 %v8447_v59 }
 0x558   : > { %11467 = vmatpush3.bf16.msk.msra.mxu1 %vm12710_vm9, %v12536_v26  ;;  %11107 = vmatprep.mubr.msk.f32.mxu1 %vm11857_vm2, %v11858_v37 }
 0x559   : > { %11468 = vmatprep.subr.bf16.mxu1 %v11856_v35 }
 0x55f   : > { %11108 = vmatmul.mubr.f32.vlgmr.msra.gmra.mrb[16].mxu1 %v8448_v3 }
 0x560   : > { %11470 = vmatpush3.bf16.msra.mxu1 %v12552_v50  ;;  %11114 = vmatprep.mubr.msk.f32.mxu1 %vm11857_vm2, %v11858_v37 }
 0x561   : > { %11471 = vmatprep.subr.bf16.mxu1 %v11856_v35  ;;  %v9758_v35 = vstv %s9958_s7 }
 0x567   : > { %11115 = vmatmul.mubr.f32.vlgmr.msra.gmra.mrb[16].mxu1 %v13201_v54 }
 0x568   : > { %11474 = vmatpush3.bf16.msk.msra.mxu1 %vm12710_vm9, %v12536_v26  ;;  %11121 = vmatprep.mubr.msk.f32.mxu1 %vm11857_vm2, %v11858_v37 }
 0x56f   : > { %11122 = vmatmul.mubr.f32.vlgmr.msra.gmra.mrb[16].mxu1 %v13201_v54 }
 0x616   : > { %v8834_v38 = vpop.f32.mrb[14].mxu1  ;;  %v9293_v39 = vpop.f32.mrb[16].mxu0 }
 0x617   : > { %v9297_v41 = vmax.f32 %v8834_v38, %v9293_v39  ;;  %v11039_v34 = vpop.f32.mrb[15].mxu1  ;;  %v11081_v63 = vpop.f32.mrb[17].mxu0 }
 0x642   : > { %v9753_v10 = vpop.f32.mrb[16].mxu1 }
 0x643   : > { %v9757_v11 = vmax.f32 %v9297_v41, %v9753_v10  ;;  %v11123_v12 = vpop.f32.mrb[17].mxu1 }
 0x645   : > { %v9759_v17 = vadd.f32 %v9758_v35, %v9757_v11 }
 0x647   : > { %v9760_v1 = vsub.f32 0.0, %v9759_v17 }
 0x649   : > { %v9761_v57 = vmul.f32 1.442695, %v9760_v1 }
 0x64b   : > { %11735 = vpow2.f32 %v9761_v57 }
 0x655   : > { %v11736_v26 = vpop.eup %11735 }
 0x656   : > { %v9763_v7 = vadd.f32 1.0, %v11736_v26 }
 0x658   : > { %11737 = vrcp.f32 %v9763_v7 }
 0x662   : > { %v11738_v37 = vpop.eup %11737 }
 0x663   : > { %10041 = vst.msk [vmem:[%s12970_s6 + $0x10] sm:$0x7f] %vm4219_vm10, %v11738_v37 }
 0x664 PF: > { %p15_p11 = scmp.ge.s32.totalorder %s11902_s17, 4   ;;  %s13325_s12 = smov %s11839_s13 }
 0x665   : > { %s13326_s13 = smov %s11843_s14  ;;  %s13327_s14 = smov %s11912_s20 }
 0x666   : > { %s13328_s15 = smov %s11902_s17  ;;  %17 = sbr.rel (!%p15_p11) target bundleno = 5 (0x5), region = 84 }
 0x66d   :  { %9788 = vsyncpa [#allocation3], 1 }
 0x66e   :  { %9790 = vsyncpa [#allocation3 + $0x1], 1 }
 0x66f   :  { %9791 = vsyncpa [#allocation4], 1 }
 0x670   :  { %9793 = vsyncpa [#allocation4 + $0x1], 1 }
 0x671   :  { %9794 = vsyncpa [#allocation5], 1 }
 0x672   :  { %9796 = vsyncpa [#allocation5 + $0x1], 1 }

</bundles_post_ra>
